<compile_context>
chip_gen: v5e
topology: v5e:2x2
jax: 0.10.0
libtpu: 0.0.40
codegen_flags: <defaults>
</compile_context>

<pallas_src>
import numpy as np
import jax
import jax.numpy as jnp
from jax import lax
from jax.experimental import pallas as pl
from jax.experimental.pallas import tpu as pltpu

_TAPS = tuple((oh, ow) for oh in (-1, 0, 1) for ow in (-1, 0, 1))


def _tap_masks(H, W, hw_pad):
    """(9, 1, hw_pad) f32 validity masks: zero-padding border + lane padding."""
    hh, ww = np.meshgrid(np.arange(H), np.arange(W), indexing="ij")
    masks = []
    for oh, ow in _TAPS:
        valid = ((hh + oh >= 0) & (hh + oh < H) &
                 (ww + ow >= 0) & (ww + ow < W)).reshape(-1)
        m = np.zeros((hw_pad,), np.float32)
        m[:H * W] = valid.astype(np.float32)
        masks.append(m)
    return jnp.asarray(np.stack(masks)[:, None, :])


def _num_tensorcores_per_chip():
    """2 on v7x (two TensorCores per chip), else 1 (v5e / v6e)."""
    try:
        kind = jax.devices()[0].device_kind.lower()
    except Exception:
        return 1
    return 2 if "v7" in kind else 1


def _pick_block_batch(n, bytes_per_image, num_tc):
    """Images per grid step: ~2 MiB per-step DMA; keep >= num_tc steps on v7x only."""
    nb = max(1, min(n, (2 * 1024 * 1024) // max(1, bytes_per_image)))
    if num_tc >= 2 and n >= num_tc:
        nb = min(nb, max(1, n // num_tc))
    while n % nb:
        nb -= 1
    return nb


def df_attention(x_nchw, params):
    """NCHW in -> NCHW out.  Wrapper does reshapes + (optional) lane padding only."""
    dww, bnb, w1, b1, w2, b2 = params
    N, C, H, W = x_nchw.shape
    Ch = w1.shape[1]
    HW = H * W
    HW_pad = ((HW + 127) // 128) * 128          # lane-dense loads/stores

    x = x_nchw.reshape(N, C, HW)                # free reshape: C->sublanes, HW->lanes
    if HW_pad != HW:
        x = jnp.pad(x, ((0, 0), (0, 0), (0, HW_pad - HW)))   # one padded HBM copy
    masks = _tap_masks(H, W, HW_pad)

    num_tc = _num_tensorcores_per_chip()
    NB = _pick_block_batch(N, C * HW_pad * x.dtype.itemsize, num_tc)
    inv_hw = np.float32(1.0 / HW)

    def kernel(x_ref, dww_ref, msk_ref, bnb_ref, w1_ref, b1_ref, w2_ref, b2_ref,
               o_ref):
        # Hoist: fold the border/pad mask into the tap weights once per grid step
        # (amortized over the NB images in the block); center tap needs no mask.
        wmask = [None if (oh == 0 and ow == 0) else dww_ref[k] * msk_ref[k]
                 for k, (oh, ow) in enumerate(_TAPS)]

        def one_image(n):
            xi = x_ref[n].astype(jnp.float32)            # (C, HW_pad) f32 compute

            # --- local flow: depthwise 3x3 as masked lane-rolls (XLU + VPU) ----
            acc = xi * dww_ref[4]                        # center tap: no roll/mask
            for k, (oh, ow) in enumerate(_TAPS):
                if oh == 0 and ow == 0:
                    continue
                shift = (-(oh * W + ow)) % HW_pad        # rolled[p] == xi[p + oh*W + ow]
                r = pltpu.roll(xi, shift, axis=1)        # XLU; co-issues with VPU MACs
                acc = acc + r * wmask[k]
            local = jnp.maximum(acc + bnb_ref[...], 0.0)           # BN shift + ReLU

            # --- global flow: GAP -> 1x1 -> ReLU -> 1x1 -> sigmoid (VPU/XLU) ---
            gap = jnp.sum(xi, axis=-1, keepdims=True) * inv_hw     # pad lanes are 0
            h1 = jnp.maximum(
                jnp.sum(w1_ref[...] * gap, axis=0, keepdims=True)
                + b1_ref[...], 0.0)                                # (1, Ch)
            gate = jax.nn.sigmoid(
                jnp.sum(w2_ref[...] * h1, axis=1, keepdims=True)
                + b2_ref[...])                                     # (C, 1)

            # --- fuse: x + local * gate, single lane-dense store ---------------
            o_ref[n] = (xi + local * gate).astype(o_ref.dtype)

        if NB <= 4:                                      # small blocks: static unroll
            for n in range(NB):
                one_image(n)
        else:                                            # large blocks: bound live ranges
            def body(n, carry):
                one_image(n)
                return carry
            lax.fori_loop(0, NB, body, 0)

    # Explicit VMEM budget: double-buffered in/out blocks + hoisted tap weights +
    # (C, HW_pad) f32 temporaries, with 2x headroom, capped below v7x's 64 MiB.
    blk_bytes = NB * C * HW_pad * x.dtype.itemsize
    vmem_need = 4 * blk_bytes + (9 + 6) * C * HW_pad * 4
    vmem_limit = int(min(48 * 2 ** 20, max(16 * 2 ** 20, 2 * vmem_need)))

    out = pl.pallas_call(
        kernel,
        out_shape=jax.ShapeDtypeStruct((N, C, HW_pad), x.dtype),
        grid_spec=pltpu.PrefetchScalarGridSpec(
            num_scalar_prefetch=0,
            grid=(N // NB,),
            in_specs=[
                pl.BlockSpec((NB, C, HW_pad), lambda b: (b, 0, 0)),  # x (batch-blocked)
                pl.BlockSpec((9, C, 1), lambda b: (0, 0, 0)),        # BN-folded taps
                pl.BlockSpec((9, 1, HW_pad), lambda b: (0, 0, 0)),   # border/pad masks
                pl.BlockSpec((C, 1), lambda b: (0, 0)),              # folded BN shift
                pl.BlockSpec((C, Ch), lambda b: (0, 0)),             # 1x1 #1 weight^T
                pl.BlockSpec((1, Ch), lambda b: (0, 0)),             # 1x1 #1 bias
                pl.BlockSpec((C, Ch), lambda b: (0, 0)),             # 1x1 #2 weight
                pl.BlockSpec((C, 1), lambda b: (0, 0)),              # 1x1 #2 bias
            ],
            out_specs=pl.BlockSpec((NB, C, HW_pad), lambda b: (b, 0, 0)),
        ),
        compiler_params=pltpu.CompilerParams(
            dimension_semantics=("parallel",),
            vmem_limit_bytes=vmem_limit,
        ),
    )(x, dww, masks, bnb, w1, b1, w2, b2)

    if HW_pad != HW:
        out = out[..., :HW]
    return out.reshape(N, C, H, W)


def init_params(key, C, reduction_ratio):
    """Deterministic synthetic parameters matching the module's shapes."""
    Ch = C // reduction_ratio
    ks = jax.random.split(key, 8)
    dw_w = 0.2 * jax.random.normal(ks[0], (3, 3, C), jnp.float32)  # (C,1,3,3)->(3,3,C)
    dw_b = 0.1 * jax.random.normal(ks[1], (C,), jnp.float32)
    gamma = 1.0 + 0.1 * jax.random.normal(ks[2], (C,), jnp.float32)
    beta = 0.1 * jax.random.normal(ks[3], (C,), jnp.float32)
    run_mean = 0.05 * jax.random.normal(ks[4], (C,), jnp.float32)
    run_var = jnp.abs(1.0 + 0.1 * jax.random.normal(ks[5], (C,), jnp.float32))
    w1 = jax.random.normal(ks[6], (C, Ch), jnp.float32) / jnp.sqrt(C)   # conv1 (Ch,C,1,1)^T
    b1 = 0.1 * jnp.ones((1, Ch), jnp.float32)
    w2 = jax.random.normal(ks[7], (C, Ch), jnp.float32) / jnp.sqrt(Ch)  # conv2 (C,Ch,1,1)
    b2 = 0.1 * jnp.ones((C, 1), jnp.float32)

    # Fold eval-mode BatchNorm: scale into the 9 depthwise taps, rest into a shift.
    eps = 1e-5
    scale = gamma / jnp.sqrt(run_var + eps)
    dww = (dw_w * scale[None, None, :]).reshape(9, C, 1)
    bnb = (scale * (dw_b - run_mean) + beta).reshape(C, 1)
    return dww, bnb, w1, b1, w2, b2


def reference_forward(x_nchw, params):
    """Pure-JAX reference of the same (eval-mode) forward pass, in NCHW."""
    dww, bnb, w1, b1, w2, b2 = params
    N, C, H, W = x_nchw.shape
    x = x_nchw.astype(jnp.float32)
    xp = jnp.pad(x, ((0, 0), (0, 0), (1, 1), (1, 1)))
    acc = jnp.zeros_like(x)
    k = 0
    for dh in range(3):
        for dw in range(3):
            acc = acc + xp[:, :, dh:dh + H, dw:dw + W] * dww[k, :, 0][None, :, None, None]
            k += 1
    local = jnp.maximum(acc + bnb[:, 0][None, :, None, None], 0.0)
    gap = jnp.mean(x, axis=(2, 3))                            # (N, C)
    h1 = jnp.maximum(gap @ w1 + b1, 0.0)                      # (N, Ch)
    gate = jax.nn.sigmoid(h1 @ w2.T + b2[:, 0][None, :])      # (N, C)
    return x + local * gate[:, :, None, None]


if __name__ == "__main__":
    key = jax.random.PRNGKey(0)
    kx, kp, kx2 = jax.random.split(key, 3)

    # 1) f32 exact check (H*W already a 128 multiple -> no lane padding).
    N, C, H, W = 2, 32, 16, 16
    params = init_params(kp, C, reduction_ratio=4)
    x = jax.random.normal(kx, (N, C, H, W), jnp.float32)
    out = jax.block_until_ready(df_attention(x, params))
    ref = jax.block_until_ready(reference_forward(x, params))
    assert out.shape == (N, C, H, W)
    assert jnp.allclose(out, ref, rtol=1e-5, atol=1e-5), \
        f"f32 max err {jnp.max(jnp.abs(out - ref))}"

    # 2) bf16 activations at the call site (halves HBM bytes); compute stays f32
    #    inside the kernel with a single final downcast -> loose tolerance only.
    xb = x.astype(jnp.bfloat16)
    out_b_raw = jax.block_until_ready(df_attention(xb, params))
    assert out_b_raw.dtype == jnp.bfloat16
    out_b = out_b_raw.astype(jnp.float32)
    ref_b = reference_forward(xb.astype(jnp.float32), params)
    assert jnp.allclose(out_b, ref_b, rtol=5e-2, atol=5e-2), \
        f"bf16 max err {jnp.max(jnp.abs(out_b - ref_b))}"

    # 3) non-128-multiple spatial size exercises the lane-padding path (144 -> 256).
    x2 = jax.random.normal(kx2, (2, 32, 12, 12), jnp.float32)
    out2 = jax.block_until_ready(df_attention(x2, params))
    ref2 = jax.block_until_ready(reference_forward(x2, params))
    assert jnp.allclose(out2, ref2, rtol=1e-5, atol=1e-5), \
        f"padded-HW max err {jnp.max(jnp.abs(out2 - ref2))}"

    print("KERNEL_OK")
</pallas_src>

<mosaic_0001>
module attributes {stable_mosaic.version = 11 : i64} {
  func.func @kernel(%arg0: i32, %arg1: memref<2x32x256xf32, #tpu.memory_space<vmem>>, %arg2: memref<9x32x1xf32, #tpu.memory_space<vmem>>, %arg3: memref<9x1x256xf32, #tpu.memory_space<vmem>>, %arg4: memref<32x1xf32, #tpu.memory_space<vmem>>, %arg5: memref<32x8xf32, #tpu.memory_space<vmem>>, %arg6: memref<1x8xf32, #tpu.memory_space<vmem>>, %arg7: memref<32x8xf32, #tpu.memory_space<vmem>>, %arg8: memref<32x1xf32, #tpu.memory_space<vmem>>, %arg9: memref<2x32x256xf32, #tpu.memory_space<vmem>>) attributes {dimension_semantics = [#tpu.dimension_semantics<parallel>], iteration_bounds = array<i64: 1>, scalar_prefetch = 0 : i64, scratch_operands = 0 : i64, tpu.core_type = #tpu.core_type<tc>, window_params = [{transform_indices = @transform_0, window_bounds = array<i64: 2, 32, 256>}, {pipeline_mode = #tpu.pipeline_mode<synchronous>, transform_indices = @transform_1, window_bounds = array<i64: 9, 32, 1>}, {pipeline_mode = #tpu.pipeline_mode<synchronous>, transform_indices = @transform_2, window_bounds = array<i64: 9, 1, 256>}, {pipeline_mode = #tpu.pipeline_mode<synchronous>, transform_indices = @transform_3, window_bounds = array<i64: 32, 1>}, {pipeline_mode = #tpu.pipeline_mode<synchronous>, transform_indices = @transform_4, window_bounds = array<i64: 32, 8>}, {pipeline_mode = #tpu.pipeline_mode<synchronous>, transform_indices = @transform_5, window_bounds = array<i64: 1, 8>}, {pipeline_mode = #tpu.pipeline_mode<synchronous>, transform_indices = @transform_6, window_bounds = array<i64: 32, 8>}, {pipeline_mode = #tpu.pipeline_mode<synchronous>, transform_indices = @transform_7, window_bounds = array<i64: 32, 1>}, {transform_indices = @transform_8, window_bounds = array<i64: 2, 32, 256>}]} {
    %c0 = arith.constant 0 : index
    %c0_0 = arith.constant 0 : index
    %c0_1 = arith.constant 0 : index
    %0 = vector.load %arg2[%c0, %c0_0, %c0_1] : memref<9x32x1xf32, #tpu.memory_space<vmem>>, vector<1x32x1xf32>
    %1 = vector.shape_cast %0 : vector<1x32x1xf32> to vector<32x1xf32>
    %c0_2 = arith.constant 0 : index
    %c0_3 = arith.constant 0 : index
    %c0_4 = arith.constant 0 : index
    %2 = vector.load %arg3[%c0_2, %c0_3, %c0_4] : memref<9x1x256xf32, #tpu.memory_space<vmem>>, vector<1x1x256xf32>
    %3 = vector.shape_cast %2 : vector<1x1x256xf32> to vector<1x256xf32>
    %4 = vector.broadcast %1 : vector<32x1xf32> to vector<32x256xf32>
    %5 = vector.broadcast %3 : vector<1x256xf32> to vector<32x256xf32>
    %6 = arith.mulf %4, %5 : vector<32x256xf32>
    %c1 = arith.constant 1 : index
    %c0_5 = arith.constant 0 : index
    %c0_6 = arith.constant 0 : index
    %7 = vector.load %arg2[%c1, %c0_5, %c0_6] : memref<9x32x1xf32, #tpu.memory_space<vmem>>, vector<1x32x1xf32>
    %8 = vector.shape_cast %7 : vector<1x32x1xf32> to vector<32x1xf32>
    %c1_7 = arith.constant 1 : index
    %c0_8 = arith.constant 0 : index
    %c0_9 = arith.constant 0 : index
    %9 = vector.load %arg3[%c1_7, %c0_8, %c0_9] : memref<9x1x256xf32, #tpu.memory_space<vmem>>, vector<1x1x256xf32>
    %10 = vector.shape_cast %9 : vector<1x1x256xf32> to vector<1x256xf32>
    %11 = vector.broadcast %8 : vector<32x1xf32> to vector<32x256xf32>
    %12 = vector.broadcast %10 : vector<1x256xf32> to vector<32x256xf32>
    %13 = arith.mulf %11, %12 : vector<32x256xf32>
    %c2 = arith.constant 2 : index
    %c0_10 = arith.constant 0 : index
    %c0_11 = arith.constant 0 : index
    %14 = vector.load %arg2[%c2, %c0_10, %c0_11] : memref<9x32x1xf32, #tpu.memory_space<vmem>>, vector<1x32x1xf32>
    %15 = vector.shape_cast %14 : vector<1x32x1xf32> to vector<32x1xf32>
    %c2_12 = arith.constant 2 : index
    %c0_13 = arith.constant 0 : index
    %c0_14 = arith.constant 0 : index
    %16 = vector.load %arg3[%c2_12, %c0_13, %c0_14] : memref<9x1x256xf32, #tpu.memory_space<vmem>>, vector<1x1x256xf32>
    %17 = vector.shape_cast %16 : vector<1x1x256xf32> to vector<1x256xf32>
    %18 = vector.broadcast %15 : vector<32x1xf32> to vector<32x256xf32>
    %19 = vector.broadcast %17 : vector<1x256xf32> to vector<32x256xf32>
    %20 = arith.mulf %18, %19 : vector<32x256xf32>
    %c3 = arith.constant 3 : index
    %c0_15 = arith.constant 0 : index
    %c0_16 = arith.constant 0 : index
    %21 = vector.load %arg2[%c3, %c0_15, %c0_16] : memref<9x32x1xf32, #tpu.memory_space<vmem>>, vector<1x32x1xf32>
    %22 = vector.shape_cast %21 : vector<1x32x1xf32> to vector<32x1xf32>
    %c3_17 = arith.constant 3 : index
    %c0_18 = arith.constant 0 : index
    %c0_19 = arith.constant 0 : index
    %23 = vector.load %arg3[%c3_17, %c0_18, %c0_19] : memref<9x1x256xf32, #tpu.memory_space<vmem>>, vector<1x1x256xf32>
    %24 = vector.shape_cast %23 : vector<1x1x256xf32> to vector<1x256xf32>
    %25 = vector.broadcast %22 : vector<32x1xf32> to vector<32x256xf32>
    %26 = vector.broadcast %24 : vector<1x256xf32> to vector<32x256xf32>
    %27 = arith.mulf %25, %26 : vector<32x256xf32>
    %c5 = arith.constant 5 : index
    %c0_20 = arith.constant 0 : index
    %c0_21 = arith.constant 0 : index
    %28 = vector.load %arg2[%c5, %c0_20, %c0_21] : memref<9x32x1xf32, #tpu.memory_space<vmem>>, vector<1x32x1xf32>
    %29 = vector.shape_cast %28 : vector<1x32x1xf32> to vector<32x1xf32>
    %c5_22 = arith.constant 5 : index
    %c0_23 = arith.constant 0 : index
    %c0_24 = arith.constant 0 : index
    %30 = vector.load %arg3[%c5_22, %c0_23, %c0_24] : memref<9x1x256xf32, #tpu.memory_space<vmem>>, vector<1x1x256xf32>
    %31 = vector.shape_cast %30 : vector<1x1x256xf32> to vector<1x256xf32>
    %32 = vector.broadcast %29 : vector<32x1xf32> to vector<32x256xf32>
    %33 = vector.broadcast %31 : vector<1x256xf32> to vector<32x256xf32>
    %34 = arith.mulf %32, %33 : vector<32x256xf32>
    %c6 = arith.constant 6 : index
    %c0_25 = arith.constant 0 : index
    %c0_26 = arith.constant 0 : index
    %35 = vector.load %arg2[%c6, %c0_25, %c0_26] : memref<9x32x1xf32, #tpu.memory_space<vmem>>, vector<1x32x1xf32>
    %36 = vector.shape_cast %35 : vector<1x32x1xf32> to vector<32x1xf32>
    %c6_27 = arith.constant 6 : index
    %c0_28 = arith.constant 0 : index
    %c0_29 = arith.constant 0 : index
    %37 = vector.load %arg3[%c6_27, %c0_28, %c0_29] : memref<9x1x256xf32, #tpu.memory_space<vmem>>, vector<1x1x256xf32>
    %38 = vector.shape_cast %37 : vector<1x1x256xf32> to vector<1x256xf32>
    %39 = vector.broadcast %36 : vector<32x1xf32> to vector<32x256xf32>
    %40 = vector.broadcast %38 : vector<1x256xf32> to vector<32x256xf32>
    %41 = arith.mulf %39, %40 : vector<32x256xf32>
    %c7 = arith.constant 7 : index
    %c0_30 = arith.constant 0 : index
    %c0_31 = arith.constant 0 : index
    %42 = vector.load %arg2[%c7, %c0_30, %c0_31] : memref<9x32x1xf32, #tpu.memory_space<vmem>>, vector<1x32x1xf32>
    %43 = vector.shape_cast %42 : vector<1x32x1xf32> to vector<32x1xf32>
    %c7_32 = arith.constant 7 : index
    %c0_33 = arith.constant 0 : index
    %c0_34 = arith.constant 0 : index
    %44 = vector.load %arg3[%c7_32, %c0_33, %c0_34] : memref<9x1x256xf32, #tpu.memory_space<vmem>>, vector<1x1x256xf32>
    %45 = vector.shape_cast %44 : vector<1x1x256xf32> to vector<1x256xf32>
    %46 = vector.broadcast %43 : vector<32x1xf32> to vector<32x256xf32>
    %47 = vector.broadcast %45 : vector<1x256xf32> to vector<32x256xf32>
    %48 = arith.mulf %46, %47 : vector<32x256xf32>
    %c8 = arith.constant 8 : index
    %c0_35 = arith.constant 0 : index
    %c0_36 = arith.constant 0 : index
    %49 = vector.load %arg2[%c8, %c0_35, %c0_36] : memref<9x32x1xf32, #tpu.memory_space<vmem>>, vector<1x32x1xf32>
    %50 = vector.shape_cast %49 : vector<1x32x1xf32> to vector<32x1xf32>
    %c8_37 = arith.constant 8 : index
    %c0_38 = arith.constant 0 : index
    %c0_39 = arith.constant 0 : index
    %51 = vector.load %arg3[%c8_37, %c0_38, %c0_39] : memref<9x1x256xf32, #tpu.memory_space<vmem>>, vector<1x1x256xf32>
    %52 = vector.shape_cast %51 : vector<1x1x256xf32> to vector<1x256xf32>
    %53 = vector.broadcast %50 : vector<32x1xf32> to vector<32x256xf32>
    %54 = vector.broadcast %52 : vector<1x256xf32> to vector<32x256xf32>
    %55 = arith.mulf %53, %54 : vector<32x256xf32>
    %c0_40 = arith.constant 0 : index
    %c0_41 = arith.constant 0 : index
    %c0_42 = arith.constant 0 : index
    %56 = vector.load %arg1[%c0_40, %c0_41, %c0_42] : memref<2x32x256xf32, #tpu.memory_space<vmem>>, vector<1x32x256xf32>
    %57 = vector.shape_cast %56 : vector<1x32x256xf32> to vector<32x256xf32>
    %c4 = arith.constant 4 : index
    %c0_43 = arith.constant 0 : index
    %c0_44 = arith.constant 0 : index
    %58 = vector.load %arg2[%c4, %c0_43, %c0_44] : memref<9x32x1xf32, #tpu.memory_space<vmem>>, vector<1x32x1xf32>
    %59 = vector.shape_cast %58 : vector<1x32x1xf32> to vector<32x1xf32>
    %60 = vector.broadcast %59 : vector<32x1xf32> to vector<32x256xf32>
    %61 = arith.mulf %57, %60 : vector<32x256xf32>
    %c17_i32 = arith.constant 17 : i32
    %62 = tpu.dynamic_rotate %57 by %c17_i32 dim 1 : vector<32x256xf32>, i32 -> vector<32x256xf32>
    %63 = arith.mulf %62, %6 : vector<32x256xf32>
    %64 = arith.addf %61, %63 : vector<32x256xf32>
    %c16_i32 = arith.constant 16 : i32
    %65 = tpu.dynamic_rotate %57 by %c16_i32 dim 1 : vector<32x256xf32>, i32 -> vector<32x256xf32>
    %66 = arith.mulf %65, %13 : vector<32x256xf32>
    %67 = arith.addf %64, %66 : vector<32x256xf32>
    %c15_i32 = arith.constant 15 : i32
    %68 = tpu.dynamic_rotate %57 by %c15_i32 dim 1 : vector<32x256xf32>, i32 -> vector<32x256xf32>
    %69 = arith.mulf %68, %20 : vector<32x256xf32>
    %70 = arith.addf %67, %69 : vector<32x256xf32>
    %c1_i32 = arith.constant 1 : i32
    %71 = tpu.dynamic_rotate %57 by %c1_i32 dim 1 : vector<32x256xf32>, i32 -> vector<32x256xf32>
    %72 = arith.mulf %71, %27 : vector<32x256xf32>
    %73 = arith.addf %70, %72 : vector<32x256xf32>
    %c255_i32 = arith.constant 255 : i32
    %74 = tpu.dynamic_rotate %57 by %c255_i32 dim 1 : vector<32x256xf32>, i32 -> vector<32x256xf32>
    %75 = arith.mulf %74, %34 : vector<32x256xf32>
    %76 = arith.addf %73, %75 : vector<32x256xf32>
    %c241_i32 = arith.constant 241 : i32
    %77 = tpu.dynamic_rotate %57 by %c241_i32 dim 1 : vector<32x256xf32>, i32 -> vector<32x256xf32>
    %78 = arith.mulf %77, %41 : vector<32x256xf32>
    %79 = arith.addf %76, %78 : vector<32x256xf32>
    %c240_i32 = arith.constant 240 : i32
    %80 = tpu.dynamic_rotate %57 by %c240_i32 dim 1 : vector<32x256xf32>, i32 -> vector<32x256xf32>
    %81 = arith.mulf %80, %48 : vector<32x256xf32>
    %82 = arith.addf %79, %81 : vector<32x256xf32>
    %c239_i32 = arith.constant 239 : i32
    %83 = tpu.dynamic_rotate %57 by %c239_i32 dim 1 : vector<32x256xf32>, i32 -> vector<32x256xf32>
    %84 = arith.mulf %83, %55 : vector<32x256xf32>
    %85 = arith.addf %82, %84 : vector<32x256xf32>
    %c0_45 = arith.constant 0 : index
    %c0_46 = arith.constant 0 : index
    %86 = vector.load %arg4[%c0_45, %c0_46] : memref<32x1xf32, #tpu.memory_space<vmem>>, vector<32x1xf32>
    %87 = vector.broadcast %86 : vector<32x1xf32> to vector<32x256xf32>
    %88 = arith.addf %85, %87 : vector<32x256xf32>
    %cst = arith.constant 0.000000e+00 : f32
    %89 = vector.broadcast %cst : f32 to vector<32x256xf32>
    %90 = arith.maximumf %88, %89 : vector<32x256xf32>
    %cst_47 = arith.constant dense<0.000000e+00> : vector<32xf32>
    %91 = vector.multi_reduction <add>, %57, %cst_47 [1] : vector<32x256xf32> to vector<32xf32>
    %92 = vector.shape_cast %91 : vector<32xf32> to vector<32x1xf32>
    %cst_48 = arith.constant 3.906250e-03 : f32
    %93 = vector.broadcast %cst_48 : f32 to vector<32x1xf32>
    %94 = arith.mulf %92, %93 : vector<32x1xf32>
    %c0_49 = arith.constant 0 : index
    %c0_50 = arith.constant 0 : index
    %95 = vector.load %arg5[%c0_49, %c0_50] : memref<32x8xf32, #tpu.memory_space<vmem>>, vector<32x8xf32>
    %96 = vector.broadcast %94 : vector<32x1xf32> to vector<32x8xf32>
    %97 = arith.mulf %95, %96 : vector<32x8xf32>
    %cst_51 = arith.constant dense<0.000000e+00> : vector<8xf32>
    %98 = vector.multi_reduction <add>, %97, %cst_51 [0] : vector<32x8xf32> to vector<8xf32>
    %99 = vector.shape_cast %98 : vector<8xf32> to vector<1x8xf32>
    %c0_52 = arith.constant 0 : index
    %c0_53 = arith.constant 0 : index
    %100 = vector.load %arg6[%c0_52, %c0_53] : memref<1x8xf32, #tpu.memory_space<vmem>>, vector<1x8xf32>
    %101 = arith.addf %99, %100 : vector<1x8xf32>
    %cst_54 = arith.constant 0.000000e+00 : f32
    %102 = vector.broadcast %cst_54 : f32 to vector<1x8xf32>
    %103 = arith.maximumf %101, %102 : vector<1x8xf32>
    %c0_55 = arith.constant 0 : index
    %c0_56 = arith.constant 0 : index
    %104 = vector.load %arg7[%c0_55, %c0_56] : memref<32x8xf32, #tpu.memory_space<vmem>>, vector<32x8xf32>
    %105 = vector.broadcast %103 : vector<1x8xf32> to vector<32x8xf32>
    %106 = arith.mulf %104, %105 : vector<32x8xf32>
    %cst_57 = arith.constant dense<0.000000e+00> : vector<32xf32>
    %107 = vector.multi_reduction <add>, %106, %cst_57 [1] : vector<32x8xf32> to vector<32xf32>
    %108 = vector.shape_cast %107 : vector<32xf32> to vector<32x1xf32>
    %c0_58 = arith.constant 0 : index
    %c0_59 = arith.constant 0 : index
    %109 = vector.load %arg8[%c0_58, %c0_59] : memref<32x1xf32, #tpu.memory_space<vmem>>, vector<32x1xf32>
    %110 = arith.addf %108, %109 : vector<32x1xf32>
    %111 = arith.negf %110 : vector<32x1xf32>
    %112 = math.exp %111 : vector<32x1xf32>
    %cst_60 = arith.constant 1.000000e+00 : f32
    %113 = vector.broadcast %cst_60 : f32 to vector<32x1xf32>
    %114 = arith.addf %113, %112 : vector<32x1xf32>
    %115 = arith.divf %113, %114 : vector<32x1xf32>
    %116 = vector.broadcast %115 : vector<32x1xf32> to vector<32x256xf32>
    %117 = arith.mulf %90, %116 : vector<32x256xf32>
    %118 = arith.addf %57, %117 : vector<32x256xf32>
    %c0_61 = arith.constant 0 : index
    %c0_62 = arith.constant 0 : index
    %c0_63 = arith.constant 0 : index
    %119 = vector.load %arg9[%c0_61, %c0_62, %c0_63] : memref<2x32x256xf32, #tpu.memory_space<vmem>>, vector<1x32x256xf32>
    %120 = vector.shape_cast %119 : vector<1x32x256xf32> to vector<32x256xf32>
    %121 = vector.shape_cast %118 : vector<32x256xf32> to vector<1x32x256xf32>
    tpu.vector_store %arg9[%c0_61, %c0_62, %c0_63], %121 {strides = array<i32>} : memref<2x32x256xf32, #tpu.memory_space<vmem>>, vector<1x32x256xf32>,
    %c1_64 = arith.constant 1 : index
    %c0_65 = arith.constant 0 : index
    %c0_66 = arith.constant 0 : index
    %122 = vector.load %arg1[%c1_64, %c0_65, %c0_66] : memref<2x32x256xf32, #tpu.memory_space<vmem>>, vector<1x32x256xf32>
    %123 = vector.shape_cast %122 : vector<1x32x256xf32> to vector<32x256xf32>
    %c4_67 = arith.constant 4 : index
    %c0_68 = arith.constant 0 : index
    %c0_69 = arith.constant 0 : index
    %124 = vector.load %arg2[%c4_67, %c0_68, %c0_69] : memref<9x32x1xf32, #tpu.memory_space<vmem>>, vector<1x32x1xf32>
    %125 = vector.shape_cast %124 : vector<1x32x1xf32> to vector<32x1xf32>
    %126 = vector.broadcast %125 : vector<32x1xf32> to vector<32x256xf32>
    %127 = arith.mulf %123, %126 : vector<32x256xf32>
    %c17_i32_70 = arith.constant 17 : i32
    %128 = tpu.dynamic_rotate %123 by %c17_i32_70 dim 1 : vector<32x256xf32>, i32 -> vector<32x256xf32>
    %129 = arith.mulf %128, %6 : vector<32x256xf32>
    %130 = arith.addf %127, %129 : vector<32x256xf32>
    %c16_i32_71 = arith.constant 16 : i32
    %131 = tpu.dynamic_rotate %123 by %c16_i32_71 dim 1 : vector<32x256xf32>, i32 -> vector<32x256xf32>
    %132 = arith.mulf %131, %13 : vector<32x256xf32>
    %133 = arith.addf %130, %132 : vector<32x256xf32>
    %c15_i32_72 = arith.constant 15 : i32
    %134 = tpu.dynamic_rotate %123 by %c15_i32_72 dim 1 : vector<32x256xf32>, i32 -> vector<32x256xf32>
    %135 = arith.mulf %134, %20 : vector<32x256xf32>
    %136 = arith.addf %133, %135 : vector<32x256xf32>
    %c1_i32_73 = arith.constant 1 : i32
    %137 = tpu.dynamic_rotate %123 by %c1_i32_73 dim 1 : vector<32x256xf32>, i32 -> vector<32x256xf32>
    %138 = arith.mulf %137, %27 : vector<32x256xf32>
    %139 = arith.addf %136, %138 : vector<32x256xf32>
    %c255_i32_74 = arith.constant 255 : i32
    %140 = tpu.dynamic_rotate %123 by %c255_i32_74 dim 1 : vector<32x256xf32>, i32 -> vector<32x256xf32>
    %141 = arith.mulf %140, %34 : vector<32x256xf32>
    %142 = arith.addf %139, %141 : vector<32x256xf32>
    %c241_i32_75 = arith.constant 241 : i32
    %143 = tpu.dynamic_rotate %123 by %c241_i32_75 dim 1 : vector<32x256xf32>, i32 -> vector<32x256xf32>
    %144 = arith.mulf %143, %41 : vector<32x256xf32>
    %145 = arith.addf %142, %144 : vector<32x256xf32>
    %c240_i32_76 = arith.constant 240 : i32
    %146 = tpu.dynamic_rotate %123 by %c240_i32_76 dim 1 : vector<32x256xf32>, i32 -> vector<32x256xf32>
    %147 = arith.mulf %146, %48 : vector<32x256xf32>
    %148 = arith.addf %145, %147 : vector<32x256xf32>
    %c239_i32_77 = arith.constant 239 : i32
    %149 = tpu.dynamic_rotate %123 by %c239_i32_77 dim 1 : vector<32x256xf32>, i32 -> vector<32x256xf32>
    %150 = arith.mulf %149, %55 : vector<32x256xf32>
    %151 = arith.addf %148, %150 : vector<32x256xf32>
    %c0_78 = arith.constant 0 : index
    %c0_79 = arith.constant 0 : index
    %152 = vector.load %arg4[%c0_78, %c0_79] : memref<32x1xf32, #tpu.memory_space<vmem>>, vector<32x1xf32>
    %153 = vector.broadcast %152 : vector<32x1xf32> to vector<32x256xf32>
    %154 = arith.addf %151, %153 : vector<32x256xf32>
    %cst_80 = arith.constant 0.000000e+00 : f32
    %155 = vector.broadcast %cst_80 : f32 to vector<32x256xf32>
    %156 = arith.maximumf %154, %155 : vector<32x256xf32>
    %cst_81 = arith.constant dense<0.000000e+00> : vector<32xf32>
    %157 = vector.multi_reduction <add>, %123, %cst_81 [1] : vector<32x256xf32> to vector<32xf32>
    %158 = vector.shape_cast %157 : vector<32xf32> to vector<32x1xf32>
    %cst_82 = arith.constant 3.906250e-03 : f32
    %159 = vector.broadcast %cst_82 : f32 to vector<32x1xf32>
    %160 = arith.mulf %158, %159 : vector<32x1xf32>
    %c0_83 = arith.constant 0 : index
    %c0_84 = arith.constant 0 : index
    %161 = vector.load %arg5[%c0_83, %c0_84] : memref<32x8xf32, #tpu.memory_space<vmem>>, vector<32x8xf32>
    %162 = vector.broadcast %160 : vector<32x1xf32> to vector<32x8xf32>
    %163 = arith.mulf %161, %162 : vector<32x8xf32>
    %cst_85 = arith.constant dense<0.000000e+00> : vector<8xf32>
    %164 = vector.multi_reduction <add>, %163, %cst_85 [0] : vector<32x8xf32> to vector<8xf32>
    %165 = vector.shape_cast %164 : vector<8xf32> to vector<1x8xf32>
    %c0_86 = arith.constant 0 : index
    %c0_87 = arith.constant 0 : index
    %166 = vector.load %arg6[%c0_86, %c0_87] : memref<1x8xf32, #tpu.memory_space<vmem>>, vector<1x8xf32>
    %167 = arith.addf %165, %166 : vector<1x8xf32>
    %cst_88 = arith.constant 0.000000e+00 : f32
    %168 = vector.broadcast %cst_88 : f32 to vector<1x8xf32>
    %169 = arith.maximumf %167, %168 : vector<1x8xf32>
    %c0_89 = arith.constant 0 : index
    %c0_90 = arith.constant 0 : index
    %170 = vector.load %arg7[%c0_89, %c0_90] : memref<32x8xf32, #tpu.memory_space<vmem>>, vector<32x8xf32>
    %171 = vector.broadcast %169 : vector<1x8xf32> to vector<32x8xf32>
    %172 = arith.mulf %170, %171 : vector<32x8xf32>
    %cst_91 = arith.constant dense<0.000000e+00> : vector<32xf32>
    %173 = vector.multi_reduction <add>, %172, %cst_91 [1] : vector<32x8xf32> to vector<32xf32>
    %174 = vector.shape_cast %173 : vector<32xf32> to vector<32x1xf32>
    %c0_92 = arith.constant 0 : index
    %c0_93 = arith.constant 0 : index
    %175 = vector.load %arg8[%c0_92, %c0_93] : memref<32x1xf32, #tpu.memory_space<vmem>>, vector<32x1xf32>
    %176 = arith.addf %174, %175 : vector<32x1xf32>
    %177 = arith.negf %176 : vector<32x1xf32>
    %178 = math.exp %177 : vector<32x1xf32>
    %cst_94 = arith.constant 1.000000e+00 : f32
    %179 = vector.broadcast %cst_94 : f32 to vector<32x1xf32>
    %180 = arith.addf %179, %178 : vector<32x1xf32>
    %181 = arith.divf %179, %180 : vector<32x1xf32>
    %182 = vector.broadcast %181 : vector<32x1xf32> to vector<32x256xf32>
    %183 = arith.mulf %156, %182 : vector<32x256xf32>
    %184 = arith.addf %123, %183 : vector<32x256xf32>
    %c1_95 = arith.constant 1 : index
    %c0_96 = arith.constant 0 : index
    %c0_97 = arith.constant 0 : index
    %185 = vector.load %arg9[%c1_95, %c0_96, %c0_97] : memref<2x32x256xf32, #tpu.memory_space<vmem>>, vector<1x32x256xf32>
    %186 = vector.shape_cast %185 : vector<1x32x256xf32> to vector<32x256xf32>
    %187 = vector.shape_cast %184 : vector<32x256xf32> to vector<1x32x256xf32>
    tpu.vector_store %arg9[%c1_95, %c0_96, %c0_97], %187 {strides = array<i32>} : memref<2x32x256xf32, #tpu.memory_space<vmem>>, vector<1x32x256xf32>,
    return
  }
  func.func @transform_0(%arg0: i32) -> (i32, i32, i32) {
    %c0_i32 = arith.constant 0 : i32
    %c0_i32_0 = arith.constant 0 : i32
    %c0_i32_1 = arith.constant 0 : i32
    return %arg0, %c0_i32, %c0_i32_0 : i32, i32, i32
  }
  func.func @transform_1(%arg0: i32) -> (i32, i32, i32) {
    %c0_i32 = arith.constant 0 : i32
    %c0_i32_0 = arith.constant 0 : i32
    %c0_i32_1 = arith.constant 0 : i32
    %c0_i32_2 = arith.constant 0 : i32
    return %c0_i32, %c0_i32_0, %c0_i32_1 : i32, i32, i32
  }
  func.func @transform_2(%arg0: i32) -> (i32, i32, i32) {
    %c0_i32 = arith.constant 0 : i32
    %c0_i32_0 = arith.constant 0 : i32
    %c0_i32_1 = arith.constant 0 : i32
    %c0_i32_2 = arith.constant 0 : i32
    return %c0_i32, %c0_i32_0, %c0_i32_1 : i32, i32, i32
  }
  func.func @transform_3(%arg0: i32) -> (i32, i32) {
    %c0_i32 = arith.constant 0 : i32
    %c0_i32_0 = arith.constant 0 : i32
    %c0_i32_1 = arith.constant 0 : i32
    return %c0_i32, %c0_i32_0 : i32, i32
  }
  func.func @transform_4(%arg0: i32) -> (i32, i32) {
    %c0_i32 = arith.constant 0 : i32
    %c0_i32_0 = arith.constant 0 : i32
    %c0_i32_1 = arith.constant 0 : i32
    return %c0_i32, %c0_i32_0 : i32, i32
  }
  func.func @transform_5(%arg0: i32) -> (i32, i32) {
    %c0_i32 = arith.constant 0 : i32
    %c0_i32_0 = arith.constant 0 : i32
    %c0_i32_1 = arith.constant 0 : i32
    return %c0_i32, %c0_i32_0 : i32, i32
  }
  func.func @transform_6(%arg0: i32) -> (i32, i32) {
    %c0_i32 = arith.constant 0 : i32
    %c0_i32_0 = arith.constant 0 : i32
    %c0_i32_1 = arith.constant 0 : i32
    return %c0_i32, %c0_i32_0 : i32, i32
  }
  func.func @transform_7(%arg0: i32) -> (i32, i32) {
    %c0_i32 = arith.constant 0 : i32
    %c0_i32_0 = arith.constant 0 : i32
    %c0_i32_1 = arith.constant 0 : i32
    return %c0_i32, %c0_i32_0 : i32, i32
  }
  func.func @transform_8(%arg0: i32) -> (i32, i32, i32) {
    %c0_i32 = arith.constant 0 : i32
    %c0_i32_0 = arith.constant 0 : i32
    %c0_i32_1 = arith.constant 0 : i32
    return %arg0, %c0_i32, %c0_i32_0 : i32, i32, i32
  }
}

</mosaic_0001>

<bundles_post_ra>
// kernel: tpu_custom_call.1
= control target key start
LH: loop header
LB: loop body
LE: loop exit
PB: predicated region body
PF: predicated region fallthrough
CT: control target
= control target key end

     0   :  { %s1707_s11 = smov 17   ;;  %s4214_s0 = inlined_call_operand.vmem [shape: f32[2,32,256], index: 0, kind: input, shape index: {}]   ;;  %s4215_s1 = inlined_call_operand.vmem [shape: f32[9,32,1], index: 1, kind: input, shape index: {}]   ;;  %s4216_s2 = inlined_call_operand.vmem [shape: f32[9,1,256], index: 2, kind: input, shape index: {}]   ;;  %s4217_s3 = inlined_call_operand.vmem [shape: f32[32,1], index: 3, kind: input, shape index: {}]   ;;  %s4218_s4 = inlined_call_operand.vmem [shape: f32[32,8], index: 4, kind: input, shape index: {}]   ;;  %s4219_s5 = inlined_call_operand.vmem [shape: f32[1,8], index: 5, kind: input, shape index: {}]   ;;  %s4220_s6 = inlined_call_operand.vmem [shape: f32[32,8], index: 6, kind: input, shape index: {}]   ;;  %s4221_s7 = inlined_call_operand.vmem [shape: f32[32,1], index: 7, kind: input, shape index: {}]   ;;  %s4222_s8 = inlined_call_operand.hbm [shape: f32[2,32,256], index: 8, kind: output, shape index: {}]  }
   0x1   :  { %v1766_v0 = vld [vmem:[%s4214_s0 + $0x10] sm:$0xff]  ;;  %v1771_v1 = vld [vmem:[%s4214_s0] sm:$0xff] }
   0x2   :  { %v1776_v2 = vld [vmem:[%s4214_s0 + $0x20] sm:$0xff]  ;;  %391 = vrot.lane.b32.xlu1 %v1766_v0, %s1707_s11  ;;  %389 = vrot.lane.b32.xlu0 %v1771_v1, %s1707_s11 }
   0x3   :  { %393 = vrot.lane.b32.xlu2 %v1776_v2, %s1707_s11 }
   0x4   :  { %13 = vsyncpa [#allocation3], 0  ;;  %v1787_v3 = vld [vmem:[%s4214_s0 + $0x8] sm:$0xff]  ;;  %v1792_v4 = vld [vmem:[%s4214_s0 + $0x30] sm:$0xff]  ;;  %s1708_s22 = smov 16   ;;  %s1709_s23 = smov 15  }
   0x5   :  { %v1797_v5 = vld [vmem:[%s4214_s0 + $0x18] sm:$0xff]  ;;  %v1813_v7 = vld [vmem:[%s4214_s0 + $0x28] sm:$0xff]  ;;  %s1710_s24 = smov 1   ;;  %s1711_s25 = smov 127   ;;  %v759_v44 = vadd.f32 %v1787_v3, %v1771_v1  ;;  %vm783_vm1 = vcmask 64512  }
   0x6   :  { %v1808_v6 = vld [vmem:[%s4214_s0 + $0x38] sm:$0xff]  ;;  %s1712_s26 = smov 113   ;;  %s1713_s27 = smov 112   ;;  %v765_v45 = vadd.f32 %v1813_v7, %v1776_v2  ;;  %v762_v49 = vadd.f32 %v1797_v5, %v1766_v0 }
   0x7   :  { %s1714_s28 = smov 111   ;;  %v768_v50 = vadd.f32 %v1808_v6, %v1792_v4  ;;  %s1546_s30 = sshll.u32 %s4222_s8, 4  ;;  %s1547_s30 = int_to_ptr.hbm [resolvable:$true] %s1546_s30 }
   0x8   :  { %s1716_s9 = smov [#allocation2]  }
   0xa   :  { %397 = vrot.lane.b32.xlu1 %v1787_v3, %s1707_s11  ;;  %395 = vrot.lane.b32.xlu0 %v1792_v4, %s1707_s11 }
   0xb   :  { %399 = vrot.lane.b32.xlu2 %v1797_v5, %s1707_s11 }
  0x12   :  { %403 = vrot.lane.b32.xlu1 %v1808_v6, %s1707_s11  ;;  %401 = vrot.lane.b32.xlu0 %v1813_v7, %s1707_s11 }
  0x13   :  { %432 = vrot.lane.b32.xlu2 %v1771_v1, %s1708_s22 }
  0x1a   :  { %436 = vrot.lane.b32.xlu1 %v1776_v2, %s1708_s22  ;;  %434 = vrot.lane.b32.xlu0 %v1766_v0, %s1708_s22 }
  0x1b   :  { %438 = vrot.lane.b32.xlu2 %v1792_v4, %s1708_s22 }
  0x22   :  { %442 = vrot.lane.b32.xlu1 %v1797_v5, %s1708_s22  ;;  %440 = vrot.lane.b32.xlu0 %v1787_v3, %s1708_s22 }
  0x23   :  { %444 = vrot.lane.b32.xlu2 %v1813_v7, %s1708_s22 }
  0x2a   :  { %473 = vrot.lane.b32.xlu1 %v1771_v1, %s1709_s23  ;;  %446 = vrot.lane.b32.xlu0 %v1808_v6, %s1708_s22 }
  0x2b   :  { %475 = vrot.lane.b32.xlu2 %v1766_v0, %s1709_s23 }
  0x32   :  { %479 = vrot.lane.b32.xlu1 %v1792_v4, %s1709_s23  ;;  %477 = vrot.lane.b32.xlu0 %v1776_v2, %s1709_s23 }
  0x33   :  { %481 = vrot.lane.b32.xlu2 %v1787_v3, %s1709_s23 }
  0x3a   :  { %485 = vrot.lane.b32.xlu1 %v1813_v7, %s1709_s23  ;;  %483 = vrot.lane.b32.xlu0 %v1797_v5, %s1709_s23 }
  0x3b   :  { %487 = vrot.lane.b32.xlu2 %v1808_v6, %s1709_s23 }
  0x42   :  { %516 = vrot.lane.b32.xlu1 %v1766_v0, %s1710_s24  ;;  %514 = vrot.lane.b32.xlu0 %v1771_v1, %s1710_s24 }
  0x43   :  { %518 = vrot.lane.b32.xlu2 %v1776_v2, %s1710_s24 }
  0x4a   :  { %522 = vrot.lane.b32.xlu1 %v1787_v3, %s1710_s24  ;;  %520 = vrot.lane.b32.xlu0 %v1792_v4, %s1710_s24 }
  0x4b   :  { %524 = vrot.lane.b32.xlu2 %v1797_v5, %s1710_s24 }
  0x52   :  { %528 = vrot.lane.b32.xlu1 %v1808_v6, %s1710_s24  ;;  %526 = vrot.lane.b32.xlu0 %v1813_v7, %s1710_s24 }
  0x53   :  { %555 = vrot.lane.b32.xlu2 %v1771_v1, %s1711_s25 }
  0x5a   :  { %559 = vrot.lane.b32.xlu1 %v1776_v2, %s1711_s25  ;;  %557 = vrot.lane.b32.xlu0 %v1766_v0, %s1711_s25 }
  0x5b   :  { %561 = vrot.lane.b32.xlu2 %v1792_v4, %s1711_s25 }
  0x5d   :  { %v1875_v8 = vpop.permute.xlu2 %393 }
  0x62   :  { %565 = vrot.lane.b32.xlu1 %v1797_v5, %s1711_s25  ;;  %563 = vrot.lane.b32.xlu0 %v1787_v3, %s1711_s25 }
  0x63   :  { %567 = vrot.lane.b32.xlu2 %v1813_v7, %s1711_s25 }
  0x65   :  { %v1883_v9 = vpop.permute.xlu2 %399 }
  0x6a   :  { %596 = vrot.lane.b32.xlu1 %v1771_v1, %s1712_s26  ;;  %569 = vrot.lane.b32.xlu0 %v1808_v6, %s1711_s25 }
  0x6b   :  { %598 = vrot.lane.b32.xlu2 %v1766_v0, %s1712_s26 }
  0x6d   :  { %v1891_v10 = vpop.permute.xlu2 %432 }
  0x6e   :  { %4337 = vst [vmem:[#allocation5_spill] sm:$0xff] %v1891_v10 }
  0x72   :  { %602 = vrot.lane.b32.xlu1 %v1792_v4, %s1712_s26  ;;  %600 = vrot.lane.b32.xlu0 %v1776_v2, %s1712_s26 }
  0x73   :  { %604 = vrot.lane.b32.xlu2 %v1787_v3, %s1712_s26 }
  0x74   :  { %v1899_v11 = vpop.permute.xlu1 %391  ;;  %v1901_v12 = vpop.permute.xlu0 %389 }
  0x75   :  { %v1903_v13 = vpop.permute.xlu2 %438 }
  0x76   :  { %4338 = vst [vmem:[#allocation6_spill] sm:$0xff] %v1903_v13 }
  0x7a   :  { %608 = vrot.lane.b32.xlu1 %v1813_v7, %s1712_s26  ;;  %606 = vrot.lane.b32.xlu0 %v1797_v5, %s1712_s26 }
  0x7b   :  { %610 = vrot.lane.b32.xlu2 %v1808_v6, %s1712_s26 }
  0x7c   :  { %v1911_v14 = vpop.permute.xlu1 %397  ;;  %v1913_v15 = vpop.permute.xlu0 %395 }
  0x7d   :  { %v1915_v16 = vpop.permute.xlu2 %444 }
  0x82   :  { %639 = vrot.lane.b32.xlu1 %v1766_v0, %s1713_s27  ;;  %637 = vrot.lane.b32.xlu0 %v1771_v1, %s1713_s27 }
  0x83   :  { %641 = vrot.lane.b32.xlu2 %v1776_v2, %s1713_s27 }
  0x84   :  { %v1923_v17 = vpop.permute.xlu1 %403  ;;  %v1925_v18 = vpop.permute.xlu0 %401 }
  0x85   :  { %v1927_v19 = vpop.permute.xlu2 %475 }
  0x86   :  { %4339 = vst [vmem:[#allocation7_spill] sm:$0xff] %v1927_v19 }
  0x8a   :  { %645 = vrot.lane.b32.xlu1 %v1787_v3, %s1713_s27  ;;  %643 = vrot.lane.b32.xlu0 %v1792_v4, %s1713_s27 }
  0x8b   :  { %647 = vrot.lane.b32.xlu2 %v1797_v5, %s1713_s27 }
  0x8c   :  { %v1935_v20 = vpop.permute.xlu1 %436  ;;  %v1937_v21 = vpop.permute.xlu0 %434 }
  0x8d   :  { %v1939_v22 = vpop.permute.xlu2 %481 }
  0x8e   :  { %4340 = vst [vmem:[#allocation8_spill] sm:$0xff] %v1939_v22 }
  0x92   :  { %651 = vrot.lane.b32.xlu1 %v1808_v6, %s1713_s27  ;;  %649 = vrot.lane.b32.xlu0 %v1813_v7, %s1713_s27 }
  0x93   :  { %678 = vrot.lane.b32.xlu2 %v1771_v1, %s1714_s28 }
  0x94   :  { %v1947_v23 = vpop.permute.xlu1 %442  ;;  %v1949_v24 = vpop.permute.xlu0 %440 }
  0x95   :  { %v1951_v25 = vpop.permute.xlu2 %487 }
  0x96   :  { %4341 = vst [vmem:[#allocation9_spill] sm:$0xff] %v1951_v25 }
  0x9a   :  { %682 = vrot.lane.b32.xlu1 %v1776_v2, %s1714_s28  ;;  %680 = vrot.lane.b32.xlu0 %v1766_v0, %s1714_s28 }
  0x9b   :  { %684 = vrot.lane.b32.xlu2 %v1792_v4, %s1714_s28  ;;  %v405_v4 = vlaneseq }
  0x9c   :  { %v1959_v26 = vpop.permute.xlu1 %473  ;;  %v1961_v27 = vpop.permute.xlu0 %446 }
  0x9d   :  { %4342 = vst [vmem:[#allocation10_spill] sm:$0xff] %v1959_v26  ;;  %v1963_v28 = vpop.permute.xlu2 %518 }
  0x9e   :  { %4343 = vst [vmem:[#allocation11_spill] sm:$0xff] %v1961_v27 }
  0x9f   :  { %4344 = vst [vmem:[#allocation12_spill] sm:$0xff] %v1963_v28 }
  0xa2   :  { %688 = vrot.lane.b32.xlu1 %v1797_v5, %s1714_s28  ;;  %686 = vrot.lane.b32.xlu0 %v1787_v3, %s1714_s28 }
  0xa3   :  { %690 = vrot.lane.b32.xlu2 %v1813_v7, %s1714_s28  ;;  %v2051_v7 = vand.u32 127, %v405_v4 }
  0xa4   :  { %v1971_v29 = vpop.permute.xlu1 %479  ;;  %v1973_v30 = vpop.permute.xlu0 %477 }
  0xa5   :  { %4345 = vst [vmem:[#allocation13_spill] sm:$0xff] %v1971_v29  ;;  %v1975_v31 = vpop.permute.xlu2 %524  ;;  %vm694_vm0 = vcmp.lt.s32.totalorder %v2051_v7, 111  ;;  %vm407_vm2 = vcmp.lt.s32.totalorder %v2051_v7, 17  ;;  %vm448_vm3 = vcmp.lt.s32.totalorder %v2051_v7, 16  ;;  %vm489_vm4 = vcmp.lt.s32.totalorder %v2051_v7, 15 }
  0xa6   :  { %4346 = vst [vmem:[#allocation14_spill] sm:$0xff] %v1973_v30  ;;  %vm530_vm5 = vcmp.lt.s32.totalorder %v2051_v7, 1  ;;  %vm571_vm6 = vcmp.lt.s32.totalorder %v2051_v7, 127  ;;  %vm612_vm7 = vcmp.lt.s32.totalorder %v2051_v7, 113 }
  0xa7   :  { %4347 = vst [vmem:[#allocation15_spill] sm:$0xff] %v1975_v31 }
  0xa8   :  { %4380 = vst [vmem:[#allocation48_spill] sm:$0xff] %v2051_v7 }
  0xaa   :  { %692 = vrot.lane.b32.xlu0 %v1808_v6, %s1714_s28 }
  0xac   :  { %v1979_v32 = vpop.permute.xlu1 %485  ;;  %v1981_v33 = vpop.permute.xlu0 %483 }
  0xad   :  { %4348 = vst [vmem:[#allocation16_spill] sm:$0xff] %v1979_v32  ;;  %v1983_v34 = vpop.permute.xlu2 %555 }
  0xae   :  { %4349 = vst [vmem:[#allocation17_spill] sm:$0xff] %v1981_v33 }
  0xaf   :  { %4350 = vst [vmem:[#allocation18_spill] sm:$0xff] %v1983_v34 }
  0xb4   :  { %v1985_v35 = vpop.permute.xlu1 %516  ;;  %v1987_v36 = vpop.permute.xlu0 %514 }
  0xb5   :  { %4351 = vst [vmem:[#allocation19_spill] sm:$0xff] %v1985_v35  ;;  %v1989_v37 = vpop.permute.xlu2 %561 }
  0xb6   :  { %4352 = vst [vmem:[#allocation20_spill] sm:$0xff] %v1987_v36 }
  0xb7   :  { %4353 = vst [vmem:[#allocation21_spill] sm:$0xff] %v1989_v37 }
  0xbc   :  { %v1991_v38 = vpop.permute.xlu1 %522  ;;  %v1993_v39 = vpop.permute.xlu0 %520 }
  0xbd   :  { %4354 = vst [vmem:[#allocation22_spill] sm:$0xff] %v1991_v38  ;;  %v1995_v40 = vpop.permute.xlu2 %567 }
  0xbe   :  { %4355 = vst [vmem:[#allocation23_spill] sm:$0xff] %v1993_v39 }
  0xbf   :  { %4356 = vst [vmem:[#allocation24_spill] sm:$0xff] %v1995_v40 }
  0xc4   :  { %v1997_v41 = vpop.permute.xlu1 %528  ;;  %v1999_v42 = vpop.permute.xlu0 %526 }
  0xc5   :  { %4357 = vst [vmem:[#allocation25_spill] sm:$0xff] %v1997_v41  ;;  %v2001_v43 = vpop.permute.xlu2 %598 }
  0xc6   :  { %4358 = vst [vmem:[#allocation26_spill] sm:$0xff] %v1999_v42 }
  0xc7   :  { %4359 = vst [vmem:[#allocation27_spill] sm:$0xff] %v2001_v43 }
  0xcc   :  { %v2007_v46 = vpop.permute.xlu1 %559  ;;  %v2009_v47 = vpop.permute.xlu0 %557  ;;  %760 = vadd.xlane.f32.xlu2 %v759_v44  ;;  %766 = vadd.xlane.f32.xlu1 %v765_v45 }
  0xcd   :  { %4360 = vst [vmem:[#allocation28_spill] sm:$0xff] %v2007_v46  ;;  %v2011_v48 = vpop.permute.xlu2 %604 }
  0xce   :  { %4361 = vst [vmem:[#allocation29_spill] sm:$0xff] %v2009_v47 }
  0xcf   :  { %4362 = vst [vmem:[#allocation30_spill] sm:$0xff] %v2011_v48 }
  0xd4   :  { %v2017_v51 = vpop.permute.xlu1 %565  ;;  %763 = vadd.xlane.f32.xlu0 %v762_v49  ;;  %v2019_v52 = vpop.permute.xlu0 %563  ;;  %769 = vadd.xlane.f32.xlu2 %v768_v50 }
  0xd5   :  { %4363 = vst [vmem:[#allocation31_spill] sm:$0xff] %v2017_v51  ;;  %v2021_v53 = vpop.permute.xlu2 %610 }
  0xd6   :  { %4364 = vst [vmem:[#allocation32_spill] sm:$0xff] %v2019_v52 }
  0xd7   :  { %4365 = vst [vmem:[#allocation33_spill] sm:$0xff] %v2021_v53 }
  0xdc   :  { %v2023_v54 = vpop.permute.xlu1 %596  ;;  %v2025_v55 = vpop.permute.xlu0 %569 }
  0xdd   :  { %4366 = vst [vmem:[#allocation34_spill] sm:$0xff] %v2023_v54  ;;  %v2027_v56 = vpop.permute.xlu2 %641 }
  0xde   :  { %4367 = vst [vmem:[#allocation35_spill] sm:$0xff] %v2025_v55 }
  0xdf   :  { %4368 = vst [vmem:[#allocation36_spill] sm:$0xff] %v2027_v56 }
  0xe4   :  { %v2029_v57 = vpop.permute.xlu1 %602  ;;  %v2031_v58 = vpop.permute.xlu0 %600 }
  0xe5   :  { %4369 = vst [vmem:[#allocation37_spill] sm:$0xff] %v2029_v57  ;;  %v2037_v61 = vpop.permute.xlu2 %647 }
  0xe6   :  { %4370 = vst [vmem:[#allocation38_spill] sm:$0xff] %v2031_v58 }
  0xe7   :  { %4373 = vst [vmem:[#allocation41_spill] sm:$0xff] %v2037_v61 }
  0xec   :  { %v2033_v59 = vpop.permute.xlu1 %608  ;;  %v2035_v60 = vpop.permute.xlu0 %606 }
  0xed   :  { %4371 = vst [vmem:[#allocation39_spill] sm:$0xff] %v2033_v59  ;;  %v679_v0 = vpop.permute.xlu2 %678 }
  0xee   :  { %4372 = vst [vmem:[#allocation40_spill] sm:$0xff] %v2035_v60 }
  0xf4   :  { %v2039_v62 = vpop.permute.xlu1 %639  ;;  %v2041_v63 = vpop.permute.xlu0 %637 }
  0xf5   :  { %4374 = vst [vmem:[#allocation42_spill] sm:$0xff] %v2039_v62  ;;  %v685_v3 = vpop.permute.xlu2 %684 }
  0xf6   :  { %4375 = vst [vmem:[#allocation43_spill] sm:$0xff] %v2041_v63 }
  0xfc   :  { %v2043_v1 = vpop.permute.xlu1 %645  ;;  %v2045_v2 = vpop.permute.xlu0 %643 }
  0xfd   :  { %4376 = vst [vmem:[#allocation44_spill] sm:$0xff] %v2043_v1  ;;  %v691_v44 = vpop.permute.xlu2 %690 }
  0xfe   :  { %4377 = vst [vmem:[#allocation45_spill] sm:$0xff] %v2045_v2 }
 0x104   :  { %v2047_v5 = vpop.permute.xlu1 %651  ;;  %v2049_v6 = vpop.permute.xlu0 %649 }
 0x105   :  { %4378 = vst [vmem:[#allocation46_spill] sm:$0xff] %v2047_v5 }
 0x106   :  { %4379 = vst [vmem:[#allocation47_spill] sm:$0xff] %v2049_v6 }
 0x10c   :  { %v683_v45 = vpop.permute.xlu1 %682  ;;  %v681_v49 = vpop.permute.xlu0 %680 }
 0x10d   :  { %v2056_v50 = vsel %vm694_vm0, %v683_v45, %v691_v44  ;;  %v2060_v56 = vsel %vm694_vm0, %v691_v44, %v683_v45 }
 0x10e   :  { %4381 = vst [vmem:[#allocation49_spill] sm:$0xff] %v2056_v50 }
 0x10f   :  { %4382 = vst [vmem:[#allocation50_spill] sm:$0xff] %v2060_v56 }
 0x114   :  { %v689_v2 = vpop.permute.xlu1 %688  ;;  %v687_v63 = vpop.permute.xlu0 %686 }
 0x115   :  { %v2064_v6 = vsel %vm694_vm0, %v681_v49, %v689_v2  ;;  %v2068_v4 = vsel %vm694_vm0, %v689_v2, %v681_v49  ;;  %v2072_v5 = vsel %vm694_vm0, %v679_v0, %v687_v63  ;;  %v2076_v50 = vsel %vm694_vm0, %v687_v63, %v679_v0  ;;  %v2094_v63 = vld [vmem:[%s4218_s4 + $0x10] sm:$0xff]  ;;  %v2099_v0 = vld [vmem:[%s4218_s4 + $0x8] sm:$0xff] }
 0x116   :  { %4383 = vst [vmem:[#allocation51_spill] sm:$0xff] %v2064_v6 }
 0x117   :  { %4384 = vst [vmem:[#allocation52_spill] sm:$0xff] %v2068_v4 }
 0x118   :  { %4385 = vst [vmem:[#allocation53_spill] sm:$0xff] %v2072_v5  ;;  %v2089_v5 = vld [vmem:[%s4218_s4] sm:$0xff] }
 0x119   :  { %4386 = vst [vmem:[#allocation54_spill] sm:$0xff] %v2076_v50 }
 0x11c   :  { %v693_v44 = vpop.permute.xlu0 %692 }
 0x11d   :  { %v2080_v45 = vsel %vm694_vm0, %v685_v3, %v693_v44  ;;  %v2084_v56 = vsel %vm694_vm0, %v693_v44, %v685_v3 }
 0x11e   :  { %4387 = vst [vmem:[#allocation55_spill] sm:$0xff] %v2080_v45 }
 0x11f   :  { %4388 = vst [vmem:[#allocation56_spill] sm:$0xff] %v2084_v56 }
 0x13f   :  { %v761_v6 = vpop.xlane.xlu2 %760  ;;  %v767_v2 = vpop.xlane.xlu1 %766 }
 0x140   :  { %v771_v49 = vmul.f32 0.00390625, %v761_v6  ;;  %v773_v4 = vmul.f32 0.00390625, %v767_v2  ;;  %v2104_v6 = vld [vmem:[%s4218_s4 + $0x18] sm:$0xff] }
 0x142   :  { %v779_v2 = vmul.f32 %v2089_v5, %v771_v49  ;;  %v781_v45 = vmul.f32 %v2094_v63, %v773_v4 }
 0x144   :  { %v784_v61 = vsel %vm783_vm1, %v779_v2, 0.0  ;;  %v787_v60 = vsel %vm783_vm1, %v781_v45, 0.0  ;;  %v2141_v45 = vld [vmem:[%s4220_s6 + $0x18] sm:$0xff] }
 0x147   :  { %v764_v3 = vpop.xlane.xlu0 %763  ;;  %v770_v44 = vpop.xlane.xlu2 %769 }
 0x148   :  { %v772_v56 = vmul.f32 0.00390625, %v764_v3  ;;  %v774_v50 = vmul.f32 0.00390625, %v770_v44 }
 0x14a   :  { %v780_v1 = vmul.f32 %v2099_v0, %v772_v56  ;;  %v782_v62 = vmul.f32 %v2104_v6, %v774_v50  ;;  %v797_v56 = vld [vmem:[%s4219_s5] sm:$0x1] }
 0x14c   :  { %v785_v43 = vsel %vm783_vm1, %v780_v1, 0.0  ;;  %v789_v59 = vsel %vm783_vm1, %v782_v62, 0.0 }
 0x14d   :  { %v786_v58 = vadd.f32 %v785_v43, %v784_v61  ;;  %v2120_v43 = vld [vmem:[%s4220_s6 + $0x10] sm:$0xff] }
 0x14f   :  { %v788_v57 = vadd.f32 %v787_v60, %v786_v58 }
 0x151   :  { %v790_v49 = vadd.f32 %v789_v59, %v788_v57  ;;  %v2125_v57 = vld [vmem:[%s4220_s6 + $0x8] sm:$0xff] }
 0x153   :  { %v791_v3 = vrot.slane %v790_v49, 4 }
 0x155   :  { %v792_v53 = vadd.f32 %v791_v3, %v790_v49  ;;  %v2148_v3 = vld [vmem:[%s4214_s0 + $0x40] sm:$0xff] }
 0x157   :  { %v793_v4 = vrot.slane %v792_v53, 2 }
 0x159   :  { %v794_v44 = vadd.f32 %v793_v4, %v792_v53  ;;  %v2130_v53 = vld [vmem:[%s4220_s6] sm:$0xff] }
 0x15a   :  { %v2155_v4 = vld [vmem:[%s4214_s0 + $0x60] sm:$0xff] }
 0x15b   :  { %v795_v37 = vrot.slane %v794_v44, 1 }
 0x15d   :  { %v796_v50 = vadd.f32 %v795_v37, %v794_v44  ;;  %v2162_v44 = vld [vmem:[%s4214_s0 + $0x70] sm:$0xff] }
 0x15e   :  { %4389 = vst [vmem:[#allocation57_spill] sm:$0xff] %v2162_v44 }
 0x15f   :  { %v798_v2 = vadd.f32 %v797_v56, %v796_v50  ;;  %v2169_v56 = vld [vmem:[%s4214_s0 + $0x50] sm:$0xff]  ;;  %v2174_v50 = vld [vmem:[%s4214_s0 + $0x58] sm:$0xff] }
 0x160   :  { %4390 = vst [vmem:[#allocation58_spill] sm:$0xff] %v2169_v56 }
 0x161   :  { %v799_v55 = vmax.f32 %v798_v2, 0.0  ;;  %4391 = vst [vmem:[#allocation59_spill] sm:$0xff] %v2174_v50  ;;  %v2183_v2 = vld [vmem:[%s4214_s0 + $0x68] sm:$0xff] }
 0x162   :  { %4392 = vst [vmem:[#allocation60_spill] sm:$0xff] %v2183_v2  ;;  %v1356_v51 = vadd.f32 %v2183_v2, %v2155_v4 }
 0x163   :  { %v804_v58 = vperm.slane %v799_v55, 0 }
 0x165   :  { %v807_v37 = vmul.f32 %v804_v58, %v2120_v43  ;;  %v806_v59 = vmul.f32 %v804_v58, %v2125_v57  ;;  %v805_v60 = vmul.f32 %v804_v58, %v2130_v53  ;;  %v808_v55 = vmul.f32 %v804_v58, %v2141_v45  ;;  %v2190_v58 = vld [vmem:[%s4214_s0 + $0x48] sm:$0xff] }
 0x166   :  { %4393 = vst [vmem:[#allocation61_spill] sm:$0xff] %v2190_v58 }
 0x167   :  { %v815_v61 = vsel %vm783_vm1, %v807_v37, 0.0  ;;  %v812_v62 = vsel %vm783_vm1, %v806_v59, 0.0  ;;  %v809_v1 = vsel %vm783_vm1, %v805_v60, 0.0  ;;  %v818_v49 = vsel %vm783_vm1, %v808_v55, 0.0  ;;  %v2201_v37 = vld [vmem:[%s4214_s0 + $0x78] sm:$0xff] }
 0x168   :  { %816 = vadd.xlane.f32.xlu1 %v815_v61  ;;  %813 = vadd.xlane.f32.xlu0 %v812_v62  ;;  %v1359_v46 = vadd.f32 %v2201_v37, %v2162_v44 }
 0x169   :  { %810 = vadd.xlane.f32.xlu2 %v809_v1 }
 0x171   :  { %819 = vadd.xlane.f32.xlu2 %v818_v49  ;;  %v1350_v49 = vadd.f32 %v2190_v58, %v2148_v3 }
 0x17c   :  { %990 = vrot.lane.b32.xlu0 %v2148_v3, %s1707_s11 }
 0x181   :  { %994 = vrot.lane.b32.xlu1 %v2155_v4, %s1707_s11 }
 0x184   :  { %996 = vrot.lane.b32.xlu0 %v2162_v44, %s1707_s11 }
 0x189   :  { %992 = vrot.lane.b32.xlu2 %v2169_v56, %s1707_s11  ;;  %1000 = vrot.lane.b32.xlu1 %v2174_v50, %s1707_s11 }
 0x18c   :  { %1002 = vrot.lane.b32.xlu0 %v2183_v2, %s1707_s11 }
 0x191   :  { %998 = vrot.lane.b32.xlu2 %v2190_v58, %s1707_s11  ;;  %1030 = vrot.lane.b32.xlu1 %v2148_v3, %s1708_s22 }
 0x194   :  { %1032 = vrot.lane.b32.xlu0 %v2169_v56, %s1708_s22 }
 0x199   :  { %1004 = vrot.lane.b32.xlu2 %v2201_v37, %s1707_s11  ;;  %1036 = vrot.lane.b32.xlu1 %v2162_v44, %s1708_s22  ;;  %s1544_s11 = sshll.u32 %s1716_s9, 4  ;;  %s1545_s11 = int_to_ptr.vmem [resolvable:$true] %s1544_s11 }
 0x19c   :  { %1038 = vrot.lane.b32.xlu0 %v2190_v58, %s1708_s22 }
 0x1a1   :  { %1034 = vrot.lane.b32.xlu2 %v2155_v4, %s1708_s22  ;;  %1042 = vrot.lane.b32.xlu1 %v2183_v2, %s1708_s22 }
 0x1a4   :  { %1044 = vrot.lane.b32.xlu0 %v2201_v37, %s1708_s22 }
 0x1a9   :  { %1040 = vrot.lane.b32.xlu2 %v2174_v50, %s1708_s22  ;;  %1072 = vrot.lane.b32.xlu1 %v2169_v56, %s1709_s23 }
 0x1ac   :  { %1074 = vrot.lane.b32.xlu0 %v2155_v4, %s1709_s23 }
 0x1b1   :  { %1070 = vrot.lane.b32.xlu2 %v2148_v3, %s1709_s23  ;;  %1078 = vrot.lane.b32.xlu1 %v2190_v58, %s1709_s23 }
 0x1b4   :  { %1080 = vrot.lane.b32.xlu0 %v2174_v50, %s1709_s23 }
 0x1b9   :  { %1076 = vrot.lane.b32.xlu2 %v2162_v44, %s1709_s23  ;;  %1084 = vrot.lane.b32.xlu1 %v2201_v37, %s1709_s23 }
 0x1bc   :  { %1110 = vrot.lane.b32.xlu0 %v2148_v3, %s1710_s24 }
 0x1c1   :  { %1082 = vrot.lane.b32.xlu2 %v2183_v2, %s1709_s23  ;;  %1114 = vrot.lane.b32.xlu1 %v2155_v4, %s1710_s24 }
 0x1c4   :  { %1116 = vrot.lane.b32.xlu0 %v2162_v44, %s1710_s24 }
 0x1c9   :  { %1112 = vrot.lane.b32.xlu2 %v2169_v56, %s1710_s24  ;;  %1120 = vrot.lane.b32.xlu1 %v2174_v50, %s1710_s24 }
 0x1cc   :  { %1122 = vrot.lane.b32.xlu0 %v2183_v2, %s1710_s24 }
 0x1d1   :  { %1118 = vrot.lane.b32.xlu2 %v2190_v58, %s1710_s24  ;;  %1150 = vrot.lane.b32.xlu1 %v2148_v3, %s1711_s25 }
 0x1d9   :  { %1124 = vrot.lane.b32.xlu2 %v2201_v37, %s1710_s24 }
 0x1db   :  { %v2255_v61 = vpop.xlane.xlu0 %813  ;;  %v2257_v62 = vpop.xlane.xlu1 %816 }
 0x1dc   :  { %v2251_v59 = vpop.xlane.xlu2 %810 }
 0x1e4   :  { %v2253_v60 = vpop.xlane.xlu2 %819 }
 0x1ec   :  { %v993_v1 = vpop.permute.xlu2 %992 }
 0x1ee   :  { %v991_v55 = vpop.permute.xlu0 %990 }
 0x1f3   :  { %v995_v54 = vpop.permute.xlu1 %994 }
 0x1f4   :  { %v999_v48 = vpop.permute.xlu2 %998 }
 0x1f5   :  { %v2264_v34 = vsel %vm407_vm2, %v991_v55, %v999_v48  ;;  %v2268_v52 = vsel %vm407_vm2, %v999_v48, %v991_v55 }
 0x1f6   :  { %v997_v47 = vpop.permute.xlu0 %996  ;;  %1351 = vadd.xlane.f32.xlu0 %v1350_v49 }
 0x1fb   :  { %v1001_v40 = vpop.permute.xlu1 %1000  ;;  %1357 = vadd.xlane.f32.xlu1 %v1356_v51  ;;  %v1353_v51 = vadd.f32 %v2174_v50, %v2169_v56 }
 0x1fc   :  { %v2276_v28 = vsel %vm407_vm2, %v993_v1, %v1001_v40  ;;  %v2280_v42 = vsel %vm407_vm2, %v1001_v40, %v993_v1  ;;  %v1005_v48 = vpop.permute.xlu2 %1004 }
 0x1fd   :  { %v2284_v55 = vsel %vm407_vm2, %v997_v47, %v1005_v48  ;;  %v2288_v49 = vsel %vm407_vm2, %v1005_v48, %v997_v47 }
 0x1fe   :  { %v1003_v39 = vpop.permute.xlu0 %1002  ;;  %1360 = vadd.xlane.f32.xlu0 %v1359_v46 }
 0x1ff   :  { %v2294_v41 = vsel %vm407_vm2, %v995_v54, %v1003_v39  ;;  %v2298_v40 = vsel %vm407_vm2, %v1003_v39, %v995_v54 }
 0x202   :  { %1354 = vadd.xlane.f32.xlu2 %v1353_v51 }
 0x203   :  { %v1031_v1 = vpop.permute.xlu1 %1030 }
 0x204   :  { %v1035_v36 = vpop.permute.xlu2 %1034 }
 0x206   :  { %v1033_v38 = vpop.permute.xlu0 %1032 }
 0x20b   :  { %v1037_v35 = vpop.permute.xlu1 %1036 }
 0x20c   :  { %v1041_v47 = vpop.permute.xlu2 %1040 }
 0x20d   :  { %v2303_v48 = vsel %vm448_vm3, %v1033_v38, %v1041_v47  ;;  %v2307_v46 = vsel %vm448_vm3, %v1041_v47, %v1033_v38 }
 0x20e   :  { %v1039_v31 = vpop.permute.xlu0 %1038 }
 0x20f   :  { %v2311_v39 = vsel %vm448_vm3, %v1031_v1, %v1039_v31  ;;  %v2315_v54 = vsel %vm448_vm3, %v1039_v31, %v1031_v1 }
 0x212   :  { %1156 = vrot.lane.b32.xlu0 %v2162_v44, %s1711_s25 }
 0x213   :  { %v1043_v51 = vpop.permute.xlu1 %1042 }
 0x214   :  { %v2321_v19 = vsel %vm448_vm3, %v1035_v36, %v1043_v51  ;;  %v2325_v38 = vsel %vm448_vm3, %v1043_v51, %v1035_v36  ;;  %v1071_v47 = vpop.permute.xlu2 %1070  ;;  %1154 = vrot.lane.b32.xlu1 %v2155_v4, %s1711_s25 }
 0x216   :  { %v1045_v33 = vpop.permute.xlu0 %1044 }
 0x217   :  { %v2331_v31 = vsel %vm448_vm3, %v1037_v35, %v1045_v33  ;;  %v2335_v1 = vsel %vm448_vm3, %v1045_v33, %v1037_v35 }
 0x218   :  { %4394 = vst [vmem:[#allocation62_spill] sm:$0xff] %v2331_v31 }
 0x219   :  { %4395 = vst [vmem:[#allocation63_spill] sm:$0xff] %v2335_v1 }
 0x21a   :  { %1152 = vrot.lane.b32.xlu2 %v2169_v56, %s1711_s25  ;;  %1160 = vrot.lane.b32.xlu0 %v2174_v50, %s1711_s25 }
 0x21b   :  { %v1073_v36 = vpop.permute.xlu1 %1072 }
 0x21c   :  { %v1077_v51 = vpop.permute.xlu2 %1076  ;;  %1162 = vrot.lane.b32.xlu1 %v2183_v2, %s1711_s25 }
 0x21e   :  { %v1075_v30 = vpop.permute.xlu0 %1074 }
 0x222   :  { %1158 = vrot.lane.b32.xlu2 %v2190_v58, %s1711_s25  ;;  %1190 = vrot.lane.b32.xlu0 %v2148_v3, %s1712_s26 }
 0x223   :  { %v1079_v33 = vpop.permute.xlu1 %1078 }
 0x224   :  { %v2350_v35 = vsel %vm489_vm4, %v1071_v47, %v1079_v33  ;;  %v2354_v32 = vsel %vm489_vm4, %v1079_v33, %v1071_v47  ;;  %v1083_v29 = vpop.permute.xlu2 %1082  ;;  %1192 = vrot.lane.b32.xlu1 %v2169_v56, %s1712_s26 }
 0x225   :  { %v2360_v25 = vsel %vm489_vm4, %v1075_v30, %v1083_v29  ;;  %v2364_v13 = vsel %vm489_vm4, %v1083_v29, %v1075_v30 }
 0x226   :  { %4396 = vst [vmem:[#allocation64_spill] sm:$0xff] %v2360_v25  ;;  %v1081_v27 = vpop.permute.xlu0 %1080 }
 0x227   :  { %4397 = vst [vmem:[#allocation65_spill] sm:$0xff] %v2364_v13  ;;  %v2368_v31 = vsel %vm489_vm4, %v1073_v36, %v1081_v27  ;;  %v2372_v47 = vsel %vm489_vm4, %v1081_v27, %v1073_v36 }
 0x228   :  { %4398 = vst [vmem:[#allocation66_spill] sm:$0xff] %v2368_v31 }
 0x229   :  { %4399 = vst [vmem:[#allocation67_spill] sm:$0xff] %v2372_v47 }
 0x22a   :  { %1164 = vrot.lane.b32.xlu2 %v2201_v37, %s1711_s25  ;;  %1196 = vrot.lane.b32.xlu0 %v2162_v44, %s1712_s26 }
 0x22b   :  { %v1085_v33 = vpop.permute.xlu1 %1084 }
 0x22c   :  { %v2380_v29 = vsel %vm489_vm4, %v1077_v51, %v1085_v33  ;;  %v2384_v30 = vsel %vm489_vm4, %v1085_v33, %v1077_v51  ;;  %v1113_v25 = vpop.permute.xlu2 %1112  ;;  %1198 = vrot.lane.b32.xlu1 %v2190_v58, %s1712_s26 }
 0x22d   :  { %4400 = vst [vmem:[#allocation68_spill] sm:$0xff] %v2380_v29 }
 0x22e   :  { %4401 = vst [vmem:[#allocation69_spill] sm:$0xff] %v2384_v30  ;;  %v1111_v27 = vpop.permute.xlu0 %1110 }
 0x232   :  { %1194 = vrot.lane.b32.xlu2 %v2155_v4, %s1712_s26  ;;  %1202 = vrot.lane.b32.xlu0 %v2183_v2, %s1712_s26 }
 0x233   :  { %v1115_v36 = vpop.permute.xlu1 %1114 }
 0x234   :  { %v1119_v13 = vpop.permute.xlu2 %1118  ;;  %1204 = vrot.lane.b32.xlu1 %v2201_v37, %s1712_s26 }
 0x235   :  { %v2397_v51 = vsel %vm530_vm5, %v1111_v27, %v1119_v13  ;;  %v2401_v33 = vsel %vm530_vm5, %v1119_v13, %v1111_v27 }
 0x236   :  { %4402 = vst [vmem:[#allocation70_spill] sm:$0xff] %v2397_v51  ;;  %v1117_v58 = vpop.permute.xlu0 %1116 }
 0x237   :  { %4403 = vst [vmem:[#allocation71_spill] sm:$0xff] %v2401_v33 }
 0x23a   :  { %1200 = vrot.lane.b32.xlu2 %v2174_v50, %s1712_s26 }
 0x23b   :  { %v1121_v31 = vpop.permute.xlu1 %1120 }
 0x23c   :  { %v2407_v47 = vsel %vm530_vm5, %v1113_v25, %v1121_v31  ;;  %v2411_v37 = vsel %vm530_vm5, %v1121_v31, %v1113_v25  ;;  %v1125_v56 = vpop.permute.xlu2 %1124 }
 0x23d   :  { %4404 = vst [vmem:[#allocation72_spill] sm:$0xff] %v2407_v47  ;;  %v2415_v51 = vsel %vm530_vm5, %v1117_v58, %v1125_v56  ;;  %v2419_v13 = vsel %vm530_vm5, %v1125_v56, %v1117_v58 }
 0x23e   :  { %4405 = vst [vmem:[#allocation73_spill] sm:$0xff] %v2411_v37  ;;  %v1123_v27 = vpop.permute.xlu0 %1122 }
 0x23f   :  { %4406 = vst [vmem:[#allocation74_spill] sm:$0xff] %v2415_v51  ;;  %v2423_v33 = vsel %vm530_vm5, %v1115_v36, %v1123_v27  ;;  %v2427_v47 = vsel %vm530_vm5, %v1123_v27, %v1115_v36 }
 0x240   :  { %4407 = vst [vmem:[#allocation75_spill] sm:$0xff] %v2419_v13 }
 0x241   :  { %4408 = vst [vmem:[#allocation76_spill] sm:$0xff] %v2423_v33 }
 0x242   :  { %4409 = vst [vmem:[#allocation77_spill] sm:$0xff] %v2427_v47 }
 0x243   :  { %v1151_v25 = vpop.permute.xlu1 %1150 }
 0x269   :  { %v1352_v31 = vpop.xlane.xlu0 %1351 }
 0x26a   :  { %v1362_v2 = vmul.f32 0.00390625, %v1352_v31 }
 0x26c   :  { %v1370_v56 = vmul.f32 %v1362_v2, %v2089_v5  ;;  %v1715_v5 = vmov 0  }
 0x26d   :  { %1628 = vset.pattern.permute.xlu0 %v1715_v5  ;;  %1629 = vset.pattern.permute.xlu1 %v1715_v5 }
 0x26e   :  { %v1358_v37 = vpop.xlane.xlu1 %1357  ;;  %v1374_v36 = vsel %vm783_vm1, %v1370_v56, 0.0  ;;  %1630 = vset.pattern.permute.xlu2 %v1715_v5 }
 0x26f   :  { %v1364_v29 = vmul.f32 0.00390625, %v1358_v37 }
 0x271   :  { %v1361_v50 = vpop.xlane.xlu0 %1360  ;;  %v1372_v13 = vmul.f32 %v1364_v29, %v2094_v63 }
 0x272   :  { %v1365_v51 = vmul.f32 0.00390625, %v1361_v50 }
 0x273   :  { %v1377_v47 = vsel %vm783_vm1, %v1372_v13, 0.0 }
 0x274   :  { %v1373_v33 = vmul.f32 %v1365_v51, %v2104_v6 }
 0x275   :  { %v1355_v30 = vpop.xlane.xlu2 %1354 }
 0x276   :  { %v1363_v58 = vmul.f32 0.00390625, %v1355_v30  ;;  %v1379_v37 = vsel %vm783_vm1, %v1373_v33, 0.0  ;;  %v1387_v30 = vld [vmem:[%s4219_s5] sm:$0x1] }
 0x278   :  { %v1371_v1 = vmul.f32 %v1363_v58, %v2099_v0 }
 0x27a   :  { %v1375_v27 = vsel %vm783_vm1, %v1371_v1, 0.0 }
 0x27b   :  { %v1376_v26 = vadd.f32 %v1375_v27, %v1374_v36 }
 0x27d   :  { %v1378_v50 = vadd.f32 %v1377_v47, %v1376_v26  ;;  %v1153_v31 = vpop.permute.xlu2 %1152 }
 0x27f   :  { %v1380_v22 = vadd.f32 %v1379_v37, %v1378_v50 }
 0x281   :  { %v1381_v63 = vrot.slane %v1380_v22, 4 }
 0x283   :  { %v1382_v0 = vadd.f32 %v1381_v63, %v1380_v22 }
 0x285   :  { %v1383_v6 = vrot.slane %v1382_v0, 2  ;;  %v1159_v2 = vpop.permute.xlu2 %1158 }
 0x286   :  { %v2440_v1 = vsel %vm571_vm6, %v1151_v25, %v1159_v2  ;;  %v2444_v29 = vsel %vm571_vm6, %v1159_v2, %v1151_v25  ;;  %v1155_v56 = vpop.permute.xlu1 %1154 }
 0x287   :  { %4410 = vst [vmem:[#allocation78_spill] sm:$0xff] %v2440_v1  ;;  %v1384_v26 = vadd.f32 %v1383_v6, %v1382_v0  ;;  %v1157_v6 = vpop.permute.xlu0 %1156 }
 0x288   :  { %4411 = vst [vmem:[#allocation79_spill] sm:$0xff] %v2444_v29 }
 0x289   :  { %v1385_v47 = vrot.slane %v1384_v26, 1 }
 0x28b   :  { %v1386_v51 = vadd.f32 %v1385_v47, %v1384_v26  ;;  %v30_v26 = vld [vmem:[%s4215_s1] sm:$0xff] }
 0x28d   :  { %v1388_v22 = vadd.f32 %v1387_v30, %v1386_v51 }
 0x28e   :  { %v1163_v63 = vpop.permute.xlu1 %1162 }
 0x28f   :  { %v1389_v33 = vmax.f32 %v1388_v22, 0.0  ;;  %v2458_v0 = vsel %vm571_vm6, %v1155_v56, %v1163_v63  ;;  %v1161_v47 = vpop.permute.xlu0 %1160 }
 0x290   :  { %4412 = vst [vmem:[#allocation80_spill] sm:$0xff] %v2458_v0  ;;  %v2478_v30 = vsel %vm571_vm6, %v1153_v31, %v1161_v47  ;;  %v2482_v51 = vsel %vm571_vm6, %v1161_v47, %v1153_v31  ;;  %v1569_v47 = vld [vmem:[%s4215_s1 + $0x68] sm:$0xff] }
 0x291   :  { %v1394_v13 = vperm.slane %v1389_v33, 0  ;;  %4416 = vst [vmem:[#allocation84_spill] sm:$0xff] %v2478_v30  ;;  %v32_v33 = vld [vmem:[%s4215_s1 + $0x10] sm:$0xff] }
 0x292   :  { %4417 = vst [vmem:[#allocation85_spill] sm:$0xff] %v2482_v51 }
 0x293   :  { %v1397_v58 = vmul.f32 %v1394_v13, %v2120_v43  ;;  %v1396_v36 = vmul.f32 %v1394_v13, %v2125_v57  ;;  %v1395_v27 = vmul.f32 %v1394_v13, %v2130_v53  ;;  %v1398_v5 = vmul.f32 %v1394_v13, %v2141_v45  ;;  %v1165_v53 = vpop.permute.xlu2 %1164  ;;  %v31_v13 = vld [vmem:[%s4215_s1 + $0x8] sm:$0xff] }
 0x294   :  { %v2462_v43 = vsel %vm571_vm6, %v1163_v63, %v1155_v56  ;;  %v2467_v2 = vsel %vm571_vm6, %v1157_v6, %v1165_v53  ;;  %v2471_v45 = vsel %vm571_vm6, %v1165_v53, %v1157_v6  ;;  %v1564_v63 = vld [vmem:[%s4215_s1 + $0x48] sm:$0xff]  ;;  %v1565_v53 = vld [vmem:[%s4215_s1 + $0x50] sm:$0xff]  ;;  %v1568_v6 = vld [vmem:[%s4215_s1 + $0x60] sm:$0xff] }
 0x295   :  { %v1405_v25 = vsel %vm783_vm1, %v1397_v58, 0.0  ;;  %v1402_v37 = vsel %vm783_vm1, %v1396_v36, 0.0  ;;  %v1399_v50 = vsel %vm783_vm1, %v1395_v27, 0.0  ;;  %4413 = vst [vmem:[#allocation81_spill] sm:$0xff] %v2462_v43  ;;  %v1408_v57 = vsel %vm783_vm1, %v1398_v5, 0.0  ;;  %v1558_v27 = vld [vmem:[%s4215_s1 + $0x20] sm:$0xff] }
 0x296   :  { %1406 = vadd.xlane.f32.xlu1 %v1405_v25  ;;  %1403 = vadd.xlane.f32.xlu0 %v1402_v37  ;;  %4414 = vst [vmem:[#allocation82_spill] sm:$0xff] %v2467_v2  ;;  %v2484_v22 = vpop.permute.xlu1 %1192  ;;  %v33_v25 = vld [vmem:[%s4215_s1 + $0x18] sm:$0xff]  ;;  %v1560_v37 = vld [vmem:[%s4215_s1 + $0x30] sm:$0xff] }
 0x297   :  { %1400 = vadd.xlane.f32.xlu2 %v1399_v50  ;;  %4415 = vst [vmem:[#allocation83_spill] sm:$0xff] %v2471_v45  ;;  %v1191_v56 = vpop.permute.xlu0 %1190  ;;  %v1559_v50 = vld [vmem:[%s4215_s1 + $0x28] sm:$0xff]  ;;  %v1561_v5 = vld [vmem:[%s4215_s1 + $0x38] sm:$0xff] }
 0x298   :  { %4418 = vst [vmem:[#allocation86_spill] sm:$0xff] %v2484_v22 }
 0x29e   :  { %v1199_v58 = vpop.permute.xlu1 %1198 }
 0x29f   :  { %1409 = vadd.xlane.f32.xlu2 %v1408_v57  ;;  %v2495_v31 = vsel %vm612_vm7, %v1191_v56, %v1199_v58  ;;  %v2499_v36 = vsel %vm612_vm7, %v1199_v58, %v1191_v56  ;;  %v1563_v57 = vld [vmem:[%s4215_s1 + $0x40] sm:$0xff]  ;;  %v1575_v58 = vld [vmem:[%s4215_s1 + $0xb0] sm:$0xff] }
 0x2a0   :  { %4419 = vst [vmem:[#allocation87_spill] sm:$0xff] %v2495_v31  ;;  %v1573_v56 = vld [vmem:[%s4215_s1 + $0xa0] sm:$0xff]  ;;  %v2679_v31 = vld [vmem:[%s4215_s1 + $0x98] sm:$0xff] }
 0x2a1   :  { %4420 = vst [vmem:[#allocation88_spill] sm:$0xff] %v2499_v36 }
 0x2a6   :  { %v2691_v30 = vpop.permute.xlu1 %1204 }
 0x2a7   :  { %4429 = vst [vmem:[#allocation97_spill] sm:$0xff] %v2691_v30 }
 0x2aa   :  { %37 = vperm.xlu0 %1628, %v30_v26   ;;  %v1566_v26 = vld [vmem:[%s4215_s1 + $0x58] sm:$0xff] }
 0x2af   :  { %47 = vperm.xlu1 %1629, %v32_v33   ;;  %v1571_v33 = vld [vmem:[%s4215_s1 + $0x78] sm:$0xff] }
 0x2b2   :  { %42 = vperm.xlu0 %1628, %v31_v13   ;;  %v1570_v13 = vld [vmem:[%s4215_s1 + $0x70] sm:$0xff] }
 0x2b7   :  { %77 = vperm.xlu2 %1630, %v1558_v27   ;;  %52 = vperm.xlu1 %1629, %v33_v25   ;;  %v1574_v27 = vld [vmem:[%s4215_s1 + $0xa8] sm:$0xff]  ;;  %v1576_v25 = vld [vmem:[%s4215_s1 + $0xb8] sm:$0xff] }
 0x2ba   :  { %87 = vperm.xlu0 %1628, %v1560_v37   ;;  %v2555_v37 = vld [vmem:[%s4221_s7] sm:$0xff] }
 0x2bf   :  { %82 = vperm.xlu2 %1630, %v1559_v50   ;;  %92 = vperm.xlu1 %1629, %v1561_v5   ;;  %v1579_v50 = vld [vmem:[%s4215_s1 + $0xc8] sm:$0xff]  ;;  %v825_v5 = vadd.f32 %v2555_v37, %v2251_v59  ;;  %v1583_v59 = vld [vmem:[%s4215_s1 + $0xe0] sm:$0xff] }
 0x2c2   :  { %122 = vperm.xlu0 %1628, %v1564_v63   ;;  %v1597_v63 = vmul.f32 -1.442695, %v825_v5 }
 0x2c4   :  { %1631 = vpow2.f32 %v1597_v63  ;;  %v1585_v63 = vld [vmem:[%s4215_s1 + $0xf0] sm:$0xff] }
 0x2c7   :  { %117 = vperm.xlu2 %1630, %v1563_v57   ;;  %127 = vperm.xlu1 %1629, %v1565_v53   ;;  %v1578_v57 = vld [vmem:[%s4215_s1 + $0xc0] sm:$0xff]  ;;  %v1580_v53 = vld [vmem:[%s4215_s1 + $0xd0] sm:$0xff] }
 0x2ca   :  { %157 = vperm.xlu0 %1628, %v1568_v6   ;;  %v2571_v6 = vld [vmem:[%s4221_s7 + $0x18] sm:$0xff] }
 0x2cb   :  { %4421 = vst [vmem:[#allocation89_spill] sm:$0xff] %v2571_v6 }
 0x2cf   :  { %132 = vperm.xlu2 %1630, %v1566_v26   ;;  %162 = vperm.xlu1 %1629, %v1569_v47   ;;  %v2579_v26 = vld [vmem:[%s4221_s7 + $0x10] sm:$0xff]  ;;  %v828_v47 = vadd.f32 %v2571_v6, %v2253_v60  ;;  %v1584_v60 = vld [vmem:[%s4215_s1 + $0xe8] sm:$0xff] }
 0x2d0   :  { %4422 = vst [vmem:[#allocation90_spill] sm:$0xff] %v2579_v26 }
 0x2d2   :  { %172 = vperm.xlu0 %1628, %v1571_v33   ;;  %v2586_v33 = vld [vmem:[%s4221_s7 + $0x8] sm:$0xff] }
 0x2d7   :  { %167 = vperm.xlu2 %1630, %v1570_v13   ;;  %197 = vperm.xlu1 %1629, %v1573_v56   ;;  %v827_v13 = vadd.f32 %v2579_v26, %v2257_v62  ;;  %v826_v56 = vadd.f32 %v2586_v33, %v2255_v61  ;;  %v1586_v62 = vld [vmem:[%s4215_s1 + $0xf8] sm:$0xff] }
 0x2d9   :  { %v1598_v5 = vmul.f32 -1.442695, %v826_v56 }
 0x2da   :  { %207 = vperm.xlu0 %1628, %v1575_v58   ;;  %v1600_v58 = vmul.f32 -1.442695, %v828_v47  ;;  %v2613_v47 = vpop.permute.xlu2 %1194 }
 0x2db   :  { %4423 = vst [vmem:[#allocation91_spill] sm:$0xff] %v2613_v47 }
 0x2dc   :  { %1633 = vpow2.f32 %v1600_v58 }
 0x2df   :  { %202 = vperm.xlu2 %1630, %v1574_v27   ;;  %212 = vperm.xlu1 %1629, %v1576_v25   ;;  %v1581_v27 = vld [vmem:[%s4215_s1 + $0xd8] sm:$0xff]  ;;  %v1632_v25 = vpop.eup %1631 }
 0x2e0   :  { %v2601_v61 = vadd.f32 1.0, %v1632_v25  ;;  %v1591_v25 = vld [vmem:[%s4215_s1 + $0x118] sm:$0xff] }
 0x2e2   :  { %242 = vperm.xlu0 %1628, %v1579_v50   ;;  %v1599_v50 = vmul.f32 -1.442695, %v827_v13  ;;  %v856_v22 = vand.u32 2147483648, %v2601_v61  ;;  %vm850_vm9 = vweird.f32 %v2601_v61 }
 0x2e4   :  { %1635 = vpow2.f32 %v1599_v50 }
 0x2e5   :  { %1637 = vpow2.f32 %v1598_v5 }
 0x2e6   :  { %1639 = vrcp.f32 %v2601_v61 }
 0x2e7   :  { %237 = vperm.xlu2 %1630, %v1578_v57   ;;  %247 = vperm.xlu1 %1629, %v1580_v53   ;;  %v1588_v57 = vld [vmem:[%s4215_s1 + $0x100] sm:$0xff]  ;;  %v1634_v53 = vpop.eup %1633 }
 0x2e8   :  { %v2615_v56 = vadd.f32 1.0, %v1634_v53  ;;  %v2638_v53 = vpop.permute.xlu0 %1196 }
 0x2e9   :  { %4425 = vst [vmem:[#allocation93_spill] sm:$0xff] %v2638_v53 }
 0x2ea   :  { %277 = vperm.xlu0 %1628, %v1583_v59   ;;  %v1590_v59 = vld [vmem:[%s4215_s1 + $0x110] sm:$0xff]  ;;  %v1636_v13 = vpop.eup %1635  ;;  %1641 = vrcp.f32 %v2615_v56  ;;  %vm895_vm13 = vweird.f32 %v2615_v56 }
 0x2eb   :  { %v1638_v58 = vpop.eup %1637  ;;  %v2623_v50 = vadd.f32 1.0, %v1636_v13 }
 0x2ed   :  { %1643 = vrcp.f32 %v2623_v50 }
 0x2ef   :  { %252 = vperm.xlu2 %1630, %v1581_v27   ;;  %282 = vperm.xlu1 %1629, %v1584_v60   ;;  %v1640_v27 = vpop.eup %1639  ;;  %v1589_v60 = vld [vmem:[%s4215_s1 + $0x108] sm:$0xff] }
 0x2f0   :  { %v846_v5 = vmul.f32 %v1640_v27, %v2601_v61  ;;  %v2641_v13 = vpop.eup %1641  ;;  %vm851_vm8 = vweird.f32 %v1640_v27  ;;  %v2674_v36 = vpop.permute.xlu0 %1202 }
 0x2f1   :  { %v891_v45 = vmul.f32 %v2641_v13, %v2615_v56  ;;  %4427 = vst [vmem:[#allocation95_spill] sm:$0xff] %v2674_v36  ;;  %vm852_vm10 = vmor %vm850_vm9, %vm851_vm8  ;;  %v857_v36 = vor.u32 1.1754944e-38, %v856_v22  ;;  %vm896_vm12 = vweird.f32 %v2641_v13  ;;  %v2705_v22 = vld [vmem:[%s4217_s3 + $0x8] sm:$0xff]  ;;  %vm880_vm9 = vweird.f32 %v2623_v50 }
 0x2f2   :  { %292 = vperm.xlu0 %1628, %v1586_v62   ;;  %v2626_v62 = vadd.f32 1.0, %v1638_v58  ;;  %v2646_v58 = vld [vmem:[%s4215_s1 + $0x80] sm:$0xff]  ;;  %4431 = vst [vmem:[#allocation99_spill] sm:$0xff] %v2705_v22  ;;  %vm2717_vm14 = vmor %vm895_vm13, %vm896_vm12 }
 0x2f3   :  { %v2655_v2 = vpop.eup %1643  ;;  %v892_v47 = vsub.f32 1.0, %v891_v45  ;;  %v854_v45 = vand.u32 2147483647, %v2601_v61 }
 0x2f4   :  { %1645 = vrcp.f32 %v2626_v62  ;;  %v876_v53 = vmul.f32 %v2655_v2, %v2623_v50  ;;  %vm881_vm15 = vweird.f32 %v2655_v2 }
 0x2f5   :  { %v893_v29 = vmul.f32 %v2641_v13, %v892_v47  ;;  %vm855_vm11 = vcmp.eq.f32.partialorder %v854_v45, 8.507059e+37 }
 0x2f6   :  { %v877_v1 = vsub.f32 1.0, %v876_v53 }
 0x2f7   :  { %287 = vperm.xlu2 %1630, %v1585_v63   ;;  %317 = vperm.xlu1 %1629, %v1588_v57   ;;  %v2632_v63 = vld [vmem:[%s4215_s1 + $0x88] sm:$0xff]  ;;  %v2636_v57 = vpop.permute.xlu2 %1200  ;;  %v894_v61 = vadd.f32 %v2641_v13, %v893_v29  ;;  %v899_v29 = vand.u32 2147483647, %v2615_v56 }
 0x2f8   :  { %4424 = vst [vmem:[#allocation92_spill] sm:$0xff] %v2636_v57  ;;  %v878_v47 = vmul.f32 %v2655_v2, %v877_v1  ;;  %v1562_v1 = vld [vmem:[%s4216_s2 + $0x2] sm:$0x3] }
 0x2f9   :  { %vm900_vm8 = vcmp.eq.f32.partialorder %v899_v29, 8.507059e+37 }
 0x2fa   :  { %327 = vperm.xlu0 %1628, %v1590_v59   ;;  %v847_v59 = vsub.f32 1.0, %v846_v5  ;;  %v2662_v5 = vld [vmem:[%s4217_s3 + $0x10] sm:$0xff]  ;;  %v2664_v43 = vpop.eup %1645 }
 0x2fb   :  { %4426 = vst [vmem:[#allocation94_spill] sm:$0xff] %v2662_v5  ;;  %v861_v57 = vmul.f32 %v2664_v43, %v2626_v62  ;;  %vm866_vm1 = vweird.f32 %v2664_v43 }
 0x2fd   :  { %v862_v51 = vsub.f32 1.0, %v861_v57  ;;  %v879_v57 = vadd.f32 %v2655_v2, %v878_v47  ;;  %v871_v47 = vand.u32 2147483648, %v2626_v62 }
 0x2ff   :  { %322 = vperm.xlu2 %1630, %v1589_v60   ;;  %332 = vperm.xlu1 %1629, %v1591_v25   ;;  %v2651_v60 = vld [vmem:[%s4215_s1 + $0x90] sm:$0xff]  ;;  %v848_v25 = vmul.f32 %v1640_v27, %v847_v59  ;;  %v863_v53 = vmul.f32 %v2664_v43, %v862_v51  ;;  %v34_v51 = vld [vmem:[%s4216_s2] sm:$0x3] }
 0x300   :  { %v57_v30 = vperm.slane %v34_v51, 1 }
 0x301   :  { %v849_v59 = vadd.f32 %v1640_v27, %v848_v25  ;;  %v2684_v25 = vld [vmem:[%s4217_s3] sm:$0xff] }
 0x302   :  { %368 = vperm.xlu0 %1628, %v2632_v63   ;;  %4428 = vst [vmem:[#allocation96_spill] sm:$0xff] %v2684_v25 }
 0x307   :  { %363 = vperm.xlu2 %1630, %v2646_v58   ;;  %373 = vperm.xlu1 %1629, %v2651_v60  }
 0x30a   :  { %v2666_v0 = vpop.xlane.xlu2 %1400  ;;  %735 = vperm.xlu0 %1628, %v2662_v5   ;;  %v853_v5 = vsel %vm852_vm10, %v1640_v27, %v849_v59  ;;  %v901_v27 = vand.u32 2147483648, %v2615_v56  ;;  %v2700_v59 = vpop.xlane.xlu0 %1403  ;;  %v2731_v56 = vperm.slane %v1562_v1, 1  ;;  %vm2744_vm10 = vmor %vm880_vm9, %vm881_vm15 }
 0x30b   :  { %v858_v6 = vsel %vm855_vm11, %v857_v36, %v853_v5  ;;  %v2710_v36 = vld [vmem:[%s4217_s3 + $0x18] sm:$0xff]  ;;  %v2729_v5 = vperm.slane %v1562_v1, 0  ;;  %v884_v1 = vand.u32 2147483647, %v2623_v50  ;;  %vm865_vm11 = vweird.f32 %v2626_v62 }
 0x30c   :  { %4432 = vst [vmem:[#allocation100_spill] sm:$0xff] %v2710_v36  ;;  %v902_v45 = vor.u32 1.1754944e-38, %v901_v27  ;;  %vm2753_vm12 = vmor %vm865_vm11, %vm866_vm1 }
 0x30d   :  { %vm885_vm13 = vcmp.eq.f32.partialorder %v884_v1, 8.507059e+37 }
 0x30f   :  { %378 = vperm.xlu2 %1630, %v2679_v31   ;;  %725 = vperm.xlu1 %1629, %v2684_v25   ;;  %v2740_v25 = vpop.xlane.xlu1 %1406 }
 0x310   :  { %4435 = vst [vmem:[#allocation101_spill] sm:$0xff] %v2740_v25  ;;  %v872_v25 = vor.u32 1.1754944e-38, %v871_v47 }
 0x312   :  { %v2693_v44 = vpop.xlane.xlu2 %1409  ;;  %907 = vperm.xlu0 %1628, %v858_v6   ;;  %v898_v6 = vsel %vm2717_vm14, %v2641_v13, %v894_v61  ;;  %v864_v13 = vadd.f32 %v2664_v43, %v863_v53  ;;  %v886_v61 = vand.u32 2147483648, %v2623_v50  ;;  %v869_v53 = vand.u32 2147483647, %v2626_v62 }
 0x313   :  { %4430 = vst [vmem:[#allocation98_spill] sm:$0xff] %v2693_v44  ;;  %v883_v50 = vsel %vm2744_vm10, %v2655_v2, %v879_v57 }
 0x314   :  { %v868_v62 = vsel %vm2753_vm12, %v2664_v43, %v864_v13  ;;  %vm870_vm14 = vcmp.eq.f32.partialorder %v869_v53, 8.507059e+37 }
 0x315   :  { %v873_v27 = vsel %vm870_vm14, %v872_v25, %v868_v62 }
 0x317   :  { %730 = vperm.xlu2 %1630, %v2705_v22   ;;  %740 = vperm.xlu1 %1629, %v2710_v36   ;;  %v903_v36 = vsel %vm900_vm8, %v902_v45, %v898_v6  ;;  %v56_v22 = vperm.slane %v34_v51, 0  ;;  %v887_v51 = vor.u32 1.1754944e-38, %v886_v61  ;;  %v1567_v6 = vld [vmem:[%s4216_s2 + $0x4] sm:$0x3] }
 0x319   :  { %v888_v57 = vsel %vm885_vm13, %v887_v51, %v883_v50 }
 0x31a   :  { %v78_v29 = vpop.permute.xlu2 %77  ;;  %922 = vperm.xlu0 %1628, %v903_v36  }
 0x31b   :  { %v2758_v45 = vmul.f32 %v2729_v5, %v78_v29  ;;  %v2761_v44 = vmul.f32 %v2731_v56, %v78_v29 }
 0x31c   :  { %v38_v36 = vpop.permute.xlu0 %37 }
 0x31d   :  { %v2771_v26 = vmul.f32 %v2315_v54, %v2758_v45  ;;  %v2775_v10 = vmul.f32 %v2311_v39, %v2761_v44  ;;  %v2777_v29 = vmul.f32 %v56_v22, %v38_v36  ;;  %v2779_v2 = vmul.f32 %v57_v30, %v38_v36 }
 0x31e   :  { %v2827_v36 = vperm.slane %v1567_v6, 1 }
 0x31f   :  { %4440 = vst [vmem:[#allocation102_spill] sm:$0xff] %v2771_v26  ;;  %917 = vperm.xlu2 %1630, %v888_v57   ;;  %912 = vperm.xlu1 %1629, %v873_v27   ;;  %v2783_v43 = vmul.f32 %v2268_v52, %v2777_v29  ;;  %v2787_v54 = vmul.f32 %v2264_v34, %v2779_v2 }
 0x320   :  { %4441 = vst [vmem:[#allocation103_spill] sm:$0xff] %v2775_v10  ;;  %v4482_v10 = vld [vmem:[#allocation6_spill] sm:$0xff] }
 0x321   :  { %4442 = vst [vmem:[#allocation104_spill] sm:$0xff] %v2783_v43  ;;  %v48_v39 = vpop.permute.xlu1 %47 }
 0x322   :  { %4443 = vst [vmem:[#allocation105_spill] sm:$0xff] %v2787_v54  ;;  %v83_v13 = vpop.permute.xlu2 %82  ;;  %v2789_v61 = vmul.f32 %v56_v22, %v48_v39  ;;  %v2791_v47 = vmul.f32 %v57_v30, %v48_v39  ;;  %969 = vperm.xlu0 %1628, %v2632_v63  }
 0x323   :  { %v2795_v25 = vmul.f32 %v2729_v5, %v83_v13  ;;  %v2798_v1 = vmul.f32 %v2731_v56, %v83_v13  ;;  %v2873_v13 = vsel %vm407_vm2, %v1901_v12, %v1911_v14 }
 0x324   :  { %v2802_v52 = vmul.f32 %v2298_v40, %v2789_v61  ;;  %v2806_v34 = vmul.f32 %v2294_v41, %v2791_v47  ;;  %v43_v53 = vpop.permute.xlu0 %42  ;;  %v2825_v41 = vperm.slane %v1567_v6, 0 }
 0x325   :  { %v2813_v63 = vmul.f32 %v2307_v46, %v2795_v25  ;;  %v2817_v50 = vmul.f32 %v2303_v48, %v2798_v1  ;;  %v2819_v62 = vmul.f32 %v56_v22, %v43_v53  ;;  %v2821_v40 = vmul.f32 %v57_v30, %v43_v53 }
 0x326   :  { %4444 = vst [vmem:[#allocation106_spill] sm:$0xff] %v2802_v52  ;;  %v1416_v53 = vadd.f32 %v2700_v59, %v2586_v33 }
 0x327   :  { %4445 = vst [vmem:[#allocation107_spill] sm:$0xff] %v2806_v34  ;;  %974 = vperm.xlu2 %1630, %v2651_v60   ;;  %964 = vperm.xlu1 %1629, %v2646_v58   ;;  %v2831_v46 = vmul.f32 %v2280_v42, %v2819_v62  ;;  %v2835_v48 = vmul.f32 %v2276_v28, %v2821_v40  ;;  %v4509_v34 = vld [vmem:[#allocation19_spill] sm:$0xff] }
 0x328   :  { %4446 = vst [vmem:[#allocation108_spill] sm:$0xff] %v2813_v63  ;;  %v2853_v28 = vsel %vm407_vm2, %v1899_v11, %v1883_v9  ;;  %v2859_v42 = vsel %vm407_vm2, %v1883_v9, %v1899_v11  ;;  %v4498_v63 = vld [vmem:[#allocation14_spill] sm:$0xff] }
 0x329   :  { %4447 = vst [vmem:[#allocation109_spill] sm:$0xff] %v2817_v50  ;;  %v53_v51 = vpop.permute.xlu1 %52 }
 0x32a   :  { %4448 = vst [vmem:[#allocation110_spill] sm:$0xff] %v2831_v46  ;;  %v118_v57 = vpop.permute.xlu2 %117  ;;  %v2837_v27 = vmul.f32 %v56_v22, %v53_v51  ;;  %v2839_v39 = vmul.f32 %v57_v30, %v53_v51  ;;  %1230 = vrot.lane.b32.xlu0 %v2148_v3, %s1713_s27 }
 0x32b   :  { %4449 = vst [vmem:[#allocation111_spill] sm:$0xff] %v2835_v48  ;;  %v2844_v58 = vmul.f32 %v2825_v41, %v118_v57  ;;  %v2847_v60 = vmul.f32 %v2827_v36, %v118_v57 }
 0x32c   :  { %v2863_v3 = vmul.f32 %v2288_v49, %v2837_v27  ;;  %v2867_v30 = vmul.f32 %v2284_v55, %v2839_v39  ;;  %v88_v22 = vpop.permute.xlu0 %87  ;;  %v2889_v55 = vsel %vm407_vm2, %v1911_v14, %v1901_v12  ;;  %v2895_v49 = vsel %vm407_vm2, %v1913_v15, %v1923_v17 }
 0x32d   :  { %v2879_v9 = vmul.f32 %v2354_v32, %v2844_v58  ;;  %v2883_v11 = vmul.f32 %v2350_v35, %v2847_v60  ;;  %v2898_v33 = vmul.f32 %v2729_v5, %v88_v22  ;;  %v2901_v32 = vmul.f32 %v2731_v56, %v88_v22 }
 0x32e   :  { %4450 = vst [vmem:[#allocation112_spill] sm:$0xff] %v2863_v3  ;;  %v2907_v35 = vsel %vm407_vm2, %v1923_v17, %v1913_v15  ;;  %v2913_v12 = vsel %vm407_vm2, %v1875_v8, %v1925_v18  ;;  %v2919_v14 = vsel %vm407_vm2, %v1925_v18, %v1875_v8  ;;  %v2928_v15 = vsel %vm448_vm3, %v1935_v20, %v1915_v16 }
 0x32f   :  { %4451 = vst [vmem:[#allocation113_spill] sm:$0xff] %v2867_v30  ;;  %1234 = vrot.lane.b32.xlu2 %v2155_v4, %s1713_s27  ;;  %979 = vperm.xlu1 %1629, %v2679_v31   ;;  %v1415_v17 = vadd.f32 %v2666_v0, %v2555_v37  ;;  %v2934_v59 = vmul.f32 %v2325_v38, %v2898_v33  ;;  %v4460_v31 = vld [vmem:[#allocation5_spill] sm:$0xff]  ;;  %v4467_v30 = vld [vmem:[#allocation98_spill] sm:$0xff]  ;;  %vm653_vm2 = vcmp.lt.s32.totalorder %v2051_v7, 112 }
 0x330   :  { %4452 = vst [vmem:[#allocation114_spill] sm:$0xff] %v2879_v9  ;;  %v2938_v8 = vmul.f32 %v2321_v19, %v2901_v32  ;;  %v2944_v18 = vsel %vm448_vm3, %v1915_v16, %v1935_v20  ;;  %v2950_v4 = vsel %vm448_vm3, %v1937_v21, %v1947_v23  ;;  %v2956_v38 = vsel %vm448_vm3, %v1947_v23, %v1937_v21  ;;  %v4461_v20 = vld [vmem:[#allocation90_spill] sm:$0xff]  ;;  %v4462_v37 = vld [vmem:[#allocation101_spill] sm:$0xff] }
 0x331   :  { %4453 = vst [vmem:[#allocation115_spill] sm:$0xff] %v2883_v11  ;;  %v1614_v19 = vmul.f32 -1.442695, %v1416_v53  ;;  %v93_v0 = vpop.permute.xlu1 %92  ;;  %v2962_v16 = vsel %vm448_vm3, %v4460_v31, %v1949_v24  ;;  %v1417_v6 = vadd.f32 %v4462_v37, %v4461_v20  ;;  %v4465_v21 = vld [vmem:[#allocation57_spill] sm:$0xff]  ;;  %v2978_v23 = vsel %vm448_vm3, %v1949_v24, %v4460_v31  ;;  %v4473_v11 = vld [vmem:[#allocation63_spill] sm:$0xff]  ;;  %v4475_v31 = vld [vmem:[#allocation62_spill] sm:$0xff] }
 0x332   :  { %4454 = vst [vmem:[#allocation116_spill] sm:$0xff] %v2898_v33  ;;  %v133_v51 = vpop.permute.xlu2 %132  ;;  %v2967_v57 = vmul.f32 %v2729_v5, %v93_v0  ;;  %v2970_v22 = vmul.f32 %v2731_v56, %v93_v0  ;;  %1236 = vrot.lane.b32.xlu0 %v4465_v21, %s1713_s27  ;;  %v4466_v53 = vld [vmem:[#allocation89_spill] sm:$0xff]  ;;  %v4470_v56 = vld [vmem:[#allocation8_spill] sm:$0xff]  ;;  %v4471_v0 = vld [vmem:[#allocation10_spill] sm:$0xff]  ;;  %v1613_v21 = vmul.f32 -1.442695, %v1415_v17 }
 0x333   :  { %4455 = vst [vmem:[#allocation117_spill] sm:$0xff] %v2901_v32  ;;  %v1418_v3 = vadd.f32 %v4467_v30, %v4466_v53  ;;  %v2983_v20 = vmul.f32 %v2825_v41, %v133_v51  ;;  %v2986_v5 = vmul.f32 %v2827_v36, %v133_v51  ;;  %v2992_v37 = vsel %vm489_vm4, %v4471_v0, %v4470_v56  ;;  %v1572_v51 = vld [vmem:[%s4216_s2 + $0x6] sm:$0x3] }
 0x334   :  { %4456 = vst [vmem:[#allocation118_spill] sm:$0xff] %v2928_v15  ;;  %v2996_v24 = vmul.f32 %v4473_v11, %v2967_v57  ;;  %v3000_v30 = vmul.f32 %v4475_v31, %v2970_v22  ;;  %v123_v53 = vpop.permute.xlu0 %122  ;;  %v3009_v9 = vsel %vm489_vm4, %v4470_v56, %v4471_v0  ;;  %1647 = vpow2.f32 %v1614_v19  ;;  %v4477_v17 = vld [vmem:[#allocation69_spill] sm:$0xff] }
 0x335   :  { %4457 = vst [vmem:[#allocation119_spill] sm:$0xff] %v2934_v59  ;;  %v3013_v11 = vmul.f32 %v4477_v17, %v2983_v20  ;;  %v1615_v54 = vmul.f32 -1.442695, %v1417_v6  ;;  %v3026_v43 = vmul.f32 %v2825_v41, %v123_v53  ;;  %v3029_v19 = vmul.f32 %v2827_v36, %v123_v53  ;;  %v4488_v17 = vld [vmem:[#allocation58_spill] sm:$0xff]  ;;  %v4490_v53 = vld [vmem:[#allocation13_spill] sm:$0xff]  ;;  %v4508_v59 = vld [vmem:[#allocation15_spill] sm:$0xff] }
 0x336   :  { %4458 = vst [vmem:[#allocation120_spill] sm:$0xff] %v2938_v8  ;;  %v1616_v0 = vmul.f32 -1.442695, %v1418_v3  ;;  %v3041_v6 = vperm.slane %v1572_v51, 0  ;;  %1649 = vpow2.f32 %v1613_v21  ;;  %v3101_v52 = vsel %vm530_vm5, %v4509_v34, %v4508_v59 }
 0x337   :  { %4459 = vst [vmem:[#allocation121_spill] sm:$0xff] %v2944_v18  ;;  %1232 = vrot.lane.b32.xlu1 %v4488_v17, %s1713_s27  ;;  %v4497_v17 = vld [vmem:[#allocation16_spill] sm:$0xff]  ;;  %1651 = vpow2.f32 %v1615_v54 }
 0x338   :  { %4463 = vst [vmem:[#allocation5_spill] sm:$0xff] %v2967_v57  ;;  %v3069_v48 = vsel %vm489_vm4, %v4498_v63, %v4497_v17  ;;  %v3075_v21 = vsel %vm489_vm4, %v4497_v17, %v4498_v63  ;;  %v4507_v17 = vld [vmem:[#allocation59_spill] sm:$0xff]  ;;  %1653 = vpow2.f32 %v1616_v0  ;;  %v4517_v0 = vld [vmem:[#allocation65_spill] sm:$0xff] }
 0x339   :  { %4464 = vst [vmem:[#allocation90_spill] sm:$0xff] %v2970_v22 }
 0x33a   :  { %4468 = vst [vmem:[#allocation101_spill] sm:$0xff] %v2983_v20  ;;  %1240 = vrot.lane.b32.xlu0 %v4507_v17, %s1713_s27  ;;  %v1648_v8 = vpop.eup %1647 }
 0x33b   :  { %4469 = vst [vmem:[#allocation57_spill] sm:$0xff] %v2986_v5 }
 0x33c   :  { %4472 = vst [vmem:[#allocation89_spill] sm:$0xff] %v2992_v37 }
 0x33d   :  { %4474 = vst [vmem:[#allocation98_spill] sm:$0xff] %v2996_v24  ;;  %v4479_v24 = vld [vmem:[#allocation68_spill] sm:$0xff] }
 0x33e   :  { %4476 = vst [vmem:[#allocation8_spill] sm:$0xff] %v3000_v30  ;;  %v3017_v31 = vmul.f32 %v4479_v24, %v2986_v5  ;;  %v4481_v30 = vld [vmem:[#allocation11_spill] sm:$0xff]  ;;  %v4487_v24 = vld [vmem:[#allocation60_spill] sm:$0xff] }
 0x33f   :  { %4478 = vst [vmem:[#allocation10_spill] sm:$0xff] %v3013_v11  ;;  %v3023_v26 = vsel %vm448_vm3, %v4482_v10, %v4481_v30  ;;  %v3035_v56 = vsel %vm448_vm3, %v4481_v30, %v4482_v10  ;;  %1242 = vrot.lane.b32.xlu2 %v4487_v24, %s1713_s27  ;;  %v4489_v11 = vld [vmem:[#allocation9_spill] sm:$0xff]  ;;  %v4492_v10 = vld [vmem:[#allocation67_spill] sm:$0xff]  ;;  %v4494_v30 = vld [vmem:[#allocation66_spill] sm:$0xff] }
 0x340   :  { %4480 = vst [vmem:[#allocation63_spill] sm:$0xff] %v3017_v31  ;;  %v3043_v31 = vperm.slane %v1572_v51, 1  ;;  %v3049_v50 = vsel %vm489_vm4, %v4490_v53, %v4489_v11  ;;  %v3053_v3 = vmul.f32 %v4492_v10, %v3026_v43  ;;  %v3057_v24 = vmul.f32 %v4494_v30, %v3029_v19  ;;  %v4501_v10 = vld [vmem:[#allocation17_spill] sm:$0xff]  ;;  %v4502_v30 = vld [vmem:[#allocation7_spill] sm:$0xff] }
 0x341   :  { %4483 = vst [vmem:[#allocation62_spill] sm:$0xff] %v3023_v26  ;;  %v3063_v51 = vsel %vm489_vm4, %v4489_v11, %v4490_v53  ;;  %v128_v11 = vpop.permute.xlu1 %127  ;;  %v3087_v53 = vsel %vm489_vm4, %v4501_v10, %v4502_v30 }
 0x342   :  { %4484 = vst [vmem:[#allocation69_spill] sm:$0xff] %v3026_v43  ;;  %v3090_v46 = vmul.f32 %v2825_v41, %v128_v11  ;;  %v3093_v63 = vmul.f32 %v2827_v36, %v128_v11  ;;  %v3113_v36 = vsel %vm530_vm5, %v4508_v59, %v4509_v34  ;;  %v1577_v34 = vld [vmem:[%s4216_s2 + $0xa] sm:$0x3]  ;;  %v4609_v43 = vld [vmem:[#allocation45_spill] sm:$0xff] }
 0x343   :  { %4485 = vst [vmem:[#allocation68_spill] sm:$0xff] %v3029_v19 }
 0x344   :  { %4486 = vst [vmem:[#allocation11_spill] sm:$0xff] %v3035_v56  ;;  %v3123_v17 = vmul.f32 %v4517_v0, %v3090_v46  ;;  %v4635_v56 = vld [vmem:[#allocation81_spill] sm:$0xff] }
 0x345   :  { %4491 = vst [vmem:[#allocation6_spill] sm:$0xff] %v3049_v50  ;;  %v4611_v50 = vld [vmem:[#allocation78_spill] sm:$0xff] }
 0x346   :  { %4493 = vst [vmem:[#allocation60_spill] sm:$0xff] %v3053_v3  ;;  %v168_v3 = vpop.permute.xlu2 %167 }
 0x347   :  { %4495 = vst [vmem:[#allocation58_spill] sm:$0xff] %v3057_v24  ;;  %v3081_v24 = vsel %vm489_vm4, %v4502_v30, %v4501_v10  ;;  %v3104_v54 = vmul.f32 %v3041_v6, %v168_v3  ;;  %v3107_v41 = vmul.f32 %v3043_v31, %v168_v3  ;;  %v4514_v10 = vld [vmem:[#allocation22_spill] sm:$0xff]  ;;  %v4515_v30 = vld [vmem:[#allocation20_spill] sm:$0xff] }
 0x348   :  { %4496 = vst [vmem:[#allocation9_spill] sm:$0xff] %v3063_v51  ;;  %v3119_v11 = vsel %vm530_vm5, %v4515_v30, %v4514_v10  ;;  %v3136_v59 = vsel %vm530_vm5, %v4514_v10, %v4515_v30  ;;  %v3158_v30 = vadd.f32 1.0, %v1648_v8  ;;  %v3181_v8 = vld [vmem:[%s4214_s0 + $0x50] sm:$0xff] }
 0x349   :  { %4499 = vst [vmem:[#allocation13_spill] sm:$0xff] %v3069_v48  ;;  %v158_v48 = vpop.permute.xlu0 %157  ;;  %1272 = vrot.lane.b32.xlu2 %v3181_v8, %s1714_s28 }
 0x34a   :  { %4500 = vst [vmem:[#allocation67_spill] sm:$0xff] %v3075_v21  ;;  %v1650_v21 = vpop.eup %1649  ;;  %1655 = vrcp.f32 %v3158_v30  ;;  %vm1455_vm3 = vweird.f32 %v3158_v30 }
 0x34b   :  { %4503 = vst [vmem:[#allocation66_spill] sm:$0xff] %v3081_v24  ;;  %v4547_v24 = vld [vmem:[#allocation29_spill] sm:$0xff] }
 0x34c   :  { %4504 = vst [vmem:[#allocation16_spill] sm:$0xff] %v3087_v53  ;;  %v4562_v53 = vld [vmem:[#allocation73_spill] sm:$0xff] }
 0x34d   :  { %4505 = vst [vmem:[#allocation14_spill] sm:$0xff] %v3090_v46  ;;  %v4538_v46 = vld [vmem:[#allocation24_spill] sm:$0xff] }
 0x34e   :  { %4506 = vst [vmem:[#allocation17_spill] sm:$0xff] %v3093_v63 }
 0x34f   :  { %4510 = vst [vmem:[#allocation7_spill] sm:$0xff] %v3101_v52  ;;  %v4519_v52 = vld [vmem:[#allocation64_spill] sm:$0xff] }
 0x350   :  { %4511 = vst [vmem:[#allocation59_spill] sm:$0xff] %v3104_v54  ;;  %v3127_v3 = vmul.f32 %v4519_v52, %v3093_v63  ;;  %v4525_v52 = vld [vmem:[#allocation77_spill] sm:$0xff] }
 0x351   :  { %4512 = vst [vmem:[#allocation15_spill] sm:$0xff] %v3107_v41 }
 0x352   :  { %4513 = vst [vmem:[#allocation19_spill] sm:$0xff] %v3113_v36  ;;  %v4522_v36 = vld [vmem:[#allocation25_spill] sm:$0xff] }
 0x353   :  { %4516 = vst [vmem:[#allocation22_spill] sm:$0xff] %v3119_v11  ;;  %v4523_v11 = vld [vmem:[#allocation23_spill] sm:$0xff] }
 0x354   :  { %4518 = vst [vmem:[#allocation20_spill] sm:$0xff] %v3123_v17  ;;  %v3142_v0 = vsel %vm530_vm5, %v4523_v11, %v4522_v36  ;;  %v4527_v17 = vld [vmem:[#allocation76_spill] sm:$0xff]  ;;  %v3156_v10 = vsel %vm530_vm5, %v4522_v36, %v4523_v11  ;;  %v3187_v11 = vperm.slane %v1577_v34, 0 }
 0x355   :  { %4520 = vst [vmem:[#allocation65_spill] sm:$0xff] %v3127_v3  ;;  %v3146_v3 = vmul.f32 %v4525_v52, %v3104_v54  ;;  %v3150_v63 = vmul.f32 %v4527_v17, %v3107_v41  ;;  %v4532_v52 = vld [vmem:[#allocation26_spill] sm:$0xff]  ;;  %v4546_v54 = vld [vmem:[#allocation31_spill] sm:$0xff] }
 0x356   :  { %4521 = vst [vmem:[#allocation64_spill] sm:$0xff] %v3136_v59  ;;  %v3161_v59 = vmul.f32 %v3041_v6, %v158_v48 }
 0x357   :  { %4524 = vst [vmem:[#allocation25_spill] sm:$0xff] %v3142_v0  ;;  %v3164_v0 = vmul.f32 %v3043_v31, %v158_v48  ;;  %v4537_v48 = vld [vmem:[#allocation61_spill] sm:$0xff] }
 0x358   :  { %4526 = vst [vmem:[#allocation23_spill] sm:$0xff] %v3146_v3  ;;  %v4533_v3 = vld [vmem:[#allocation12_spill] sm:$0xff]  ;;  %1238 = vrot.lane.b32.xlu1 %v4537_v48, %s1713_s27 }
 0x359   :  { %4528 = vst [vmem:[#allocation77_spill] sm:$0xff] %v3150_v63  ;;  %v3170_v17 = vsel %vm530_vm5, %v4533_v3, %v4532_v52  ;;  %v3176_v36 = vsel %vm530_vm5, %v4532_v52, %v4533_v3  ;;  %v3189_v63 = vperm.slane %v1577_v34, 1  ;;  %v4544_v34 = vld [vmem:[#allocation70_spill] sm:$0xff] }
 0x35a   :  { %4529 = vst [vmem:[#allocation76_spill] sm:$0xff] %v3156_v10  ;;  %v1652_v10 = vpop.eup %1651  ;;  %v3209_v41 = vmul.f32 %v4544_v34, %v3164_v0  ;;  %v4550_v34 = vld [vmem:[#allocation32_spill] sm:$0xff] }
 0x35b   :  { %4530 = vst [vmem:[#allocation122_spill] sm:$0xff] %v3161_v59 }
 0x35c   :  { %4531 = vst [vmem:[#allocation123_spill] sm:$0xff] %v3164_v0  ;;  %v4559_v0 = vld [vmem:[#allocation30_spill] sm:$0xff] }
 0x35d   :  { %4534 = vst [vmem:[#allocation26_spill] sm:$0xff] %v3170_v17  ;;  %v4539_v17 = vld [vmem:[#allocation28_spill] sm:$0xff] }
 0x35e   :  { %4535 = vst [vmem:[#allocation12_spill] sm:$0xff] %v3176_v36  ;;  %v3195_v3 = vsel %vm571_vm6, %v4539_v17, %v4538_v46  ;;  %v3201_v52 = vsel %vm571_vm6, %v4538_v46, %v4539_v17  ;;  %v1654_v36 = vpop.eup %1653  ;;  %v3221_v46 = vsel %vm571_vm6, %v4546_v54, %v4547_v24  ;;  %v3224_v17 = vadd.f32 1.0, %v1650_v21  ;;  %v3242_v21 = vld [vmem:[%s4214_s0 + $0x40] sm:$0xff] }
 0x35f   :  { %4536 = vst [vmem:[#allocation124_spill] sm:$0xff] %v3181_v8  ;;  %v4542_v8 = vld [vmem:[#allocation71_spill] sm:$0xff]  ;;  %1270 = vrot.lane.b32.xlu0 %v3242_v21, %s1714_s28 }
 0x360   :  { %4540 = vst [vmem:[#allocation61_spill] sm:$0xff] %v3195_v3  ;;  %v3205_v48 = vmul.f32 %v4542_v8, %v3161_v59  ;;  %v3215_v3 = vsel %vm571_vm6, %v4547_v24, %v4546_v54  ;;  %v163_v8 = vpop.permute.xlu1 %162  ;;  %v4560_v59 = vld [vmem:[#allocation34_spill] sm:$0xff]  ;;  %1657 = vrcp.f32 %v3224_v17  ;;  %v1444_v18 = vand.u32 2147483647, %v3224_v17 }
 0x361   :  { %4541 = vst [vmem:[#allocation24_spill] sm:$0xff] %v3201_v52  ;;  %v203_v52 = vpop.permute.xlu2 %202  ;;  %v3237_v24 = vmul.f32 %v3043_v31, %v163_v8  ;;  %v3264_v19 = vsel %vm612_vm7, %v4560_v59, %v4559_v0  ;;  %vm1440_vm4 = vweird.f32 %v3224_v17 }
 0x362   :  { %4543 = vst [vmem:[#allocation28_spill] sm:$0xff] %v3205_v48  ;;  %vm3596_vm15 = vcmp.eq.f32.partialorder %v1444_v18, 8.507059e+37  ;;  %v3623_v18 = vmul.f32 %v2962_v16, %v2761_v44 }
 0x363   :  { %4545 = vst [vmem:[#allocation71_spill] sm:$0xff] %v3209_v41  ;;  %v4551_v41 = vld [vmem:[#allocation18_spill] sm:$0xff] }
 0x364   :  { %4548 = vst [vmem:[#allocation70_spill] sm:$0xff] %v3215_v3  ;;  %v3230_v48 = vsel %vm571_vm6, %v4551_v41, %v4550_v34  ;;  %v3234_v3 = vmul.f32 %v3041_v6, %v163_v8  ;;  %v3250_v54 = vsel %vm571_vm6, %v4550_v34, %v4551_v41  ;;  %v3258_v8 = vmul.f32 %v3189_v63, %v203_v52 }
 0x365   :  { %4549 = vst [vmem:[#allocation31_spill] sm:$0xff] %v3221_v46  ;;  %v3255_v46 = vmul.f32 %v3187_v11, %v203_v52  ;;  %v1582_v52 = vld [vmem:[%s4216_s2 + $0xc] sm:$0x3] }
 0x366   :  { %4552 = vst [vmem:[#allocation29_spill] sm:$0xff] %v3230_v48  ;;  %v3252_v48 = vadd.f32 1.0, %v1652_v10  ;;  %v3270_v41 = vmul.f32 %v4562_v53, %v3234_v3  ;;  %v4564_v10 = vld [vmem:[#allocation72_spill] sm:$0xff] }
 0x367   :  { %4553 = vst [vmem:[#allocation32_spill] sm:$0xff] %v3234_v3  ;;  %v3274_v34 = vmul.f32 %v4564_v10, %v3237_v24  ;;  %v4567_v53 = vld [vmem:[#allocation84_spill] sm:$0xff]  ;;  %v4569_v10 = vld [vmem:[#allocation85_spill] sm:$0xff] }
 0x368   :  { %4554 = vst [vmem:[#allocation18_spill] sm:$0xff] %v3237_v24  ;;  %v4572_v24 = vld [vmem:[#allocation21_spill] sm:$0xff]  ;;  %1659 = vrcp.f32 %v3252_v48  ;;  %v1474_v15 = vand.u32 2147483647, %v3252_v48  ;;  %vm1470_vm5 = vweird.f32 %v3252_v48 }
 0x369   :  { %4555 = vst [vmem:[#allocation125_spill] sm:$0xff] %v3242_v21  ;;  %v3266_v21 = vadd.f32 1.0, %v1654_v36  ;;  %v3288_v36 = vmul.f32 %v4567_v53, %v3255_v46 }
 0x36a   :  { %4556 = vst [vmem:[#allocation126_spill] sm:$0xff] %v3250_v54  ;;  %v173_v54 = vpop.permute.xlu0 %172  ;;  %vm3629_vm10 = vcmp.eq.f32.partialorder %v1474_v15, 8.507059e+37  ;;  %v1592_v15 = vld [vmem:[%s4216_s2 + $0x10] sm:$0x3] }
 0x36b   :  { %4557 = vst [vmem:[#allocation127_spill] sm:$0xff] %v3255_v46  ;;  %v3310_v53 = vmul.f32 %v3043_v31, %v173_v54  ;;  %v3329_v31 = vld [vmem:[%s4214_s0 + $0x78] sm:$0xff]  ;;  %1661 = vrcp.f32 %v3266_v21  ;;  %vm1485_vm13 = vweird.f32 %v3266_v21 }
 0x36c   :  { %4558 = vst [vmem:[#allocation128_spill] sm:$0xff] %v3258_v8  ;;  %1244 = vrot.lane.b32.xlu1 %v3329_v31, %s1713_s27 }
 0x36d   :  { %4561 = vst [vmem:[#allocation30_spill] sm:$0xff] %v3264_v19  ;;  %v3283_v19 = vsel %vm612_vm7, %v4559_v0, %v4560_v59  ;;  %v3307_v0 = vmul.f32 %v3041_v6, %v173_v54  ;;  %v3333_v6 = vperm.slane %v1582_v52, 0  ;;  %v3337_v54 = vpop.eup %1655 }
 0x36e   :  { %4563 = vst [vmem:[#allocation34_spill] sm:$0xff] %v3270_v41  ;;  %v4571_v41 = vld [vmem:[#allocation35_spill] sm:$0xff] }
 0x36f   :  { %4565 = vst [vmem:[#allocation73_spill] sm:$0xff] %v3274_v34  ;;  %v3292_v34 = vmul.f32 %v4569_v10, %v3258_v8  ;;  %v3298_v3 = vsel %vm571_vm6, %v4572_v24, %v4571_v41  ;;  %v3304_v59 = vsel %vm571_vm6, %v4571_v41, %v4572_v24  ;;  %v4577_v10 = vld [vmem:[#allocation33_spill] sm:$0xff]  ;;  %v3335_v24 = vperm.slane %v1582_v52, 1  ;;  %v4587_v52 = vld [vmem:[#allocation39_spill] sm:$0xff]  ;;  %v4588_v8 = vld [vmem:[#allocation38_spill] sm:$0xff] }
 0x370   :  { %4566 = vst [vmem:[#allocation72_spill] sm:$0xff] %v3283_v19  ;;  %v3358_v46 = vsel %vm612_vm7, %v4588_v8, %v4587_v52  ;;  %vm1456_vm6 = vweird.f32 %v3337_v54 }
 0x371   :  { %4568 = vst [vmem:[#allocation84_spill] sm:$0xff] %v3288_v36  ;;  %vm3615_vm1 = vmor %vm1455_vm3, %vm1456_vm6 }
 0x372   :  { %4570 = vst [vmem:[#allocation85_spill] sm:$0xff] %v3292_v34  ;;  %v4578_v34 = vld [vmem:[#allocation37_spill] sm:$0xff]  ;;  %v208_v20 = vpop.permute.xlu0 %207 }
 0x373   :  { %4573 = vst [vmem:[#allocation35_spill] sm:$0xff] %v3298_v3  ;;  %v3316_v36 = vsel %vm612_vm7, %v4578_v34, %v4577_v10  ;;  %v3322_v3 = vld [vmem:[%s4214_s0 + $0x48] sm:$0xff]  ;;  %v3343_v41 = vsel %vm612_vm7, %v4577_v10, %v4578_v34  ;;  %v3364_v34 = vsel %vm612_vm7, %v4587_v52, %v4588_v8  ;;  %v4591_v10 = vld [vmem:[#allocation40_spill] sm:$0xff]  ;;  %v238_v52 = vpop.permute.xlu2 %237 }
 0x374   :  { %4574 = vst [vmem:[#allocation21_spill] sm:$0xff] %v3304_v59  ;;  %1278 = vrot.lane.b32.xlu2 %v3322_v3, %s1714_s28  ;;  %v4585_v59 = vld [vmem:[#allocation74_spill] sm:$0xff] }
 0x375   :  { %4575 = vst [vmem:[#allocation129_spill] sm:$0xff] %v3307_v0  ;;  %v3352_v19 = vmul.f32 %v4585_v59, %v3310_v53 }
 0x376   :  { %4576 = vst [vmem:[#allocation130_spill] sm:$0xff] %v3310_v53 }
 0x377   :  { %4579 = vst [vmem:[#allocation33_spill] sm:$0xff] %v3316_v36 }
 0x378   :  { %4580 = vst [vmem:[#allocation37_spill] sm:$0xff] %v3322_v3  ;;  %v4583_v3 = vld [vmem:[#allocation75_spill] sm:$0xff] }
 0x379   :  { %4581 = vst [vmem:[#allocation131_spill] sm:$0xff] %v3329_v31  ;;  %v3348_v36 = vmul.f32 %v4583_v3, %v3307_v0  ;;  %v4608_v0 = vld [vmem:[#allocation46_spill] sm:$0xff] }
 0x37a   :  { %4582 = vst [vmem:[#allocation132_spill] sm:$0xff] %v3343_v41  ;;  %v4592_v41 = vld [vmem:[#allocation27_spill] sm:$0xff]  ;;  %v243_v32 = vpop.permute.xlu0 %242 }
 0x37b   :  { %4584 = vst [vmem:[#allocation75_spill] sm:$0xff] %v3348_v36  ;;  %v3370_v3 = vsel %vm612_vm7, %v4592_v41, %v4591_v10  ;;  %v3376_v59 = vsel %vm612_vm7, %v4591_v10, %v4592_v41  ;;  %v4595_v36 = vld [vmem:[#allocation41_spill] sm:$0xff]  ;;  %v3399_v10 = vld [vmem:[%s4214_s0 + $0x70] sm:$0xff] }
 0x37c   :  { %4586 = vst [vmem:[#allocation74_spill] sm:$0xff] %v3352_v19  ;;  %v198_v19 = vpop.permute.xlu1 %197  ;;  %1276 = vrot.lane.b32.xlu0 %v3399_v10, %s1714_s28  ;;  %1284 = vrot.lane.b32.xlu2 %v3329_v31, %s1714_s28  ;;  %v4633_v31 = vld [vmem:[#allocation80_spill] sm:$0xff] }
 0x37d   :  { %4589 = vst [vmem:[#allocation39_spill] sm:$0xff] %v3358_v46  ;;  %v4596_v46 = vld [vmem:[#allocation42_spill] sm:$0xff]  ;;  %v3394_v41 = vmul.f32 %v3189_v63, %v198_v19 }
 0x37e   :  { %4590 = vst [vmem:[#allocation38_spill] sm:$0xff] %v3364_v34  ;;  %v3382_v53 = vsel %vm653_vm2, %v4596_v46, %v4595_v36  ;;  %v3388_v8 = vsel %vm653_vm2, %v4595_v36, %v4596_v46  ;;  %v3391_v34 = vmul.f32 %v3187_v11, %v198_v19  ;;  %v4603_v46 = vld [vmem:[#allocation43_spill] sm:$0xff]  ;;  %v3415_v19 = vmul.f32 %v3335_v24, %v238_v52 }
 0x37f   :  { %4593 = vst [vmem:[#allocation40_spill] sm:$0xff] %v3370_v3  ;;  %v1451_v3 = vmul.f32 %v3337_v54, %v3158_v30 }
 0x380   :  { %4594 = vst [vmem:[#allocation27_spill] sm:$0xff] %v3376_v59  ;;  %v4602_v59 = vld [vmem:[#allocation44_spill] sm:$0xff]  ;;  %v3433_v5 = vmul.f32 %v4611_v50, %v3391_v34  ;;  %v4619_v50 = vld [vmem:[#allocation87_spill] sm:$0xff] }
 0x381   :  { %4597 = vst [vmem:[#allocation41_spill] sm:$0xff] %v3382_v53  ;;  %v3403_v53 = vpop.eup %1657  ;;  %v3409_v36 = vsel %vm653_vm2, %v4603_v46, %v4602_v59 }
 0x382   :  { %4598 = vst [vmem:[#allocation42_spill] sm:$0xff] %v3388_v8  ;;  %v3412_v8 = vmul.f32 %v3333_v6, %v238_v52  ;;  %v4613_v52 = vld [vmem:[#allocation79_spill] sm:$0xff]  ;;  %v3439_v26 = vpop.eup %1659  ;;  %vm1441_vm8 = vweird.f32 %v3403_v53  ;;  %v3643_v16 = vpop.permute.xlu0 %277 }
 0x383   :  { %4599 = vst [vmem:[#allocation133_spill] sm:$0xff] %v3391_v34  ;;  %v3437_v51 = vmul.f32 %v4613_v52, %v3394_v41  ;;  %v4621_v52 = vld [vmem:[#allocation88_spill] sm:$0xff]  ;;  %vm1471_vm9 = vweird.f32 %v3439_v26  ;;  %vm3651_vm11 = vmor %vm1440_vm4, %vm1441_vm8 }
 0x384   :  { %4600 = vst [vmem:[#allocation134_spill] sm:$0xff] %v3394_v41  ;;  %v3461_v41 = vpop.eup %1661  ;;  %vm3683_vm14 = vmor %vm1470_vm5, %vm1471_vm9 }
 0x385   :  { %4601 = vst [vmem:[#allocation135_spill] sm:$0xff] %v3399_v10  ;;  %v3423_v10 = vsel %vm653_vm2, %v4602_v59, %v4603_v46  ;;  %v3445_v59 = vsel %vm653_vm2, %v4608_v0, %v4609_v43  ;;  %v4616_v46 = vld [vmem:[#allocation47_spill] sm:$0xff]  ;;  %vm1486_vm12 = vweird.f32 %v3461_v41 }
 0x386   :  { %4604 = vst [vmem:[#allocation44_spill] sm:$0xff] %v3409_v36  ;;  %v3429_v36 = vsel %vm653_vm2, %v4609_v43, %v4608_v0  ;;  %v3470_v0 = vmul.f32 %v3187_v11, %v208_v20  ;;  %vm3705_vm3 = vmor %vm1485_vm13, %vm1486_vm12 }
 0x387   :  { %4605 = vst [vmem:[#allocation43_spill] sm:$0xff] %v3412_v8 }
 0x388   :  { %4606 = vst [vmem:[#allocation136_spill] sm:$0xff] %v3415_v19  ;;  %v3508_v22 = vmul.f32 %v4633_v31, %v3470_v0  ;;  %v253_v31 = vpop.permute.xlu2 %252 }
 0x389   :  { %4607 = vst [vmem:[#allocation137_spill] sm:$0xff] %v3423_v10  ;;  %v4617_v10 = vld [vmem:[#allocation36_spill] sm:$0xff]  ;;  %v3538_v7 = vmul.f32 %v3333_v6, %v253_v31 }
 0x38a   :  { %4610 = vst [vmem:[#allocation46_spill] sm:$0xff] %v3429_v36  ;;  %v3451_v36 = vsel %vm653_vm2, %v4617_v10, %v4616_v46  ;;  %v3467_v43 = vsel %vm653_vm2, %v4616_v46, %v4617_v10  ;;  %v4628_v46 = vld [vmem:[#allocation97_spill] sm:$0xff] }
 0x38b   :  { %4612 = vst [vmem:[#allocation45_spill] sm:$0xff] %v3433_v5  ;;  %v3455_v5 = vmul.f32 %v4619_v50, %v3412_v8  ;;  %v1436_v50 = vmul.f32 %v3403_v53, %v3224_v17  ;;  %v4632_v8 = vld [vmem:[#allocation91_spill] sm:$0xff] }
 0x38c   :  { %4614 = vst [vmem:[#allocation78_spill] sm:$0xff] %v3437_v51  ;;  %v3459_v51 = vmul.f32 %v4621_v52, %v3415_v19  ;;  %v4627_v52 = vld [vmem:[#allocation86_spill] sm:$0xff]  ;;  %v1452_v19 = vsub.f32 1.0, %v1451_v3 }
 0x38d   :  { %4615 = vst [vmem:[#allocation79_spill] sm:$0xff] %v3445_v59 }
 0x38e   :  { %4618 = vst [vmem:[#allocation47_spill] sm:$0xff] %v3451_v36  ;;  %v3473_v36 = vmul.f32 %v3189_v63, %v208_v20  ;;  %v3494_v20 = vld [vmem:[%s4214_s0 + $0x60] sm:$0xff] }
 0x38f   :  { %4620 = vst [vmem:[#allocation36_spill] sm:$0xff] %v3455_v5  ;;  %v4626_v5 = vld [vmem:[#allocation92_spill] sm:$0xff]  ;;  %1274 = vrot.lane.b32.xlu1 %v3494_v20, %s1714_s28 }
 0x390   :  { %4622 = vst [vmem:[#allocation87_spill] sm:$0xff] %v3459_v51  ;;  %v1207_v51 = vsel %vm612_vm7, %v4627_v52, %v4626_v5  ;;  %v1211_v10 = vsel %vm612_vm7, %v4626_v5, %v4627_v52  ;;  %v4631_v52 = vld [vmem:[#allocation95_spill] sm:$0xff]  ;;  %v3512_v57 = vmul.f32 %v4635_v56, %v3473_v36 }
 0x391   :  { %4623 = vst [vmem:[#allocation88_spill] sm:$0xff] %v3467_v43  ;;  %v4629_v43 = vld [vmem:[#allocation93_spill] sm:$0xff]  ;;  %v1208_v34 = vsel %vm612_vm7, %v4632_v8, %v4631_v52  ;;  %v1212_v3 = vsel %vm612_vm7, %v4631_v52, %v4632_v8  ;;  %v3532_v8 = vld [vmem:[%s4214_s0 + $0x68] sm:$0xff]  ;;  %v1437_v52 = vsub.f32 1.0, %v1436_v50  ;;  %v1461_v50 = vand.u32 2147483648, %v3158_v30 }
 0x392   :  { %4624 = vst [vmem:[#allocation138_spill] sm:$0xff] %v3470_v0  ;;  %v1209_v59 = vsel %vm612_vm7, %v4629_v43, %v4628_v46  ;;  %v1213_v5 = vsel %vm612_vm7, %v4628_v46, %v4629_v43  ;;  %v1481_v43 = vmul.f32 %v3461_v41, %v3266_v21  ;;  %v1466_v46 = vmul.f32 %v3439_v26, %v3252_v48  ;;  %v4640_v0 = vld [vmem:[#allocation83_spill] sm:$0xff] }
 0x393   :  { %4625 = vst [vmem:[#allocation139_spill] sm:$0xff] %v3473_v36  ;;  %1282 = vrot.lane.b32.xlu0 %v3532_v8, %s1714_s28 }
 0x394   :  { %4630 = vst [vmem:[#allocation92_spill] sm:$0xff] %v3494_v20  ;;  %v213_v20 = vpop.permute.xlu1 %212  ;;  %v1482_v33 = vsub.f32 1.0, %v1481_v43  ;;  %v1467_v37 = vsub.f32 1.0, %v1466_v46  ;;  %v1446_v43 = vand.u32 2147483648, %v3224_v17  ;;  %v1491_v17 = vand.u32 2147483648, %v3266_v21 }
 0x395   :  { %4634 = vst [vmem:[#allocation86_spill] sm:$0xff] %v3508_v22  ;;  %v3524_v22 = vmul.f32 %v3187_v11, %v213_v20  ;;  %v3527_v56 = vmul.f32 %v3189_v63, %v213_v20  ;;  %v3541_v11 = vmul.f32 %v3335_v24, %v253_v31  ;;  %v1453_v63 = vmul.f32 %v3337_v54, %v1452_v19 }
 0x396   :  { %4636 = vst [vmem:[#allocation97_spill] sm:$0xff] %v3512_v57  ;;  %v1459_v20 = vand.u32 2147483647, %v3158_v30  ;;  %v4638_v57 = vld [vmem:[#allocation82_spill] sm:$0xff]  ;;  %v3556_v31 = vmul.f32 %v1209_v59, %v3538_v7  ;;  %v3574_v59 = vld [vmem:[%s4214_s0 + $0x58] sm:$0xff] }
 0x397   :  { %4637 = vst [vmem:[#allocation93_spill] sm:$0xff] %v3532_v8  ;;  %v3547_v36 = vmul.f32 %v4638_v57, %v3524_v22  ;;  %v3551_v8 = vmul.f32 %v4640_v0, %v3527_v56  ;;  %v3559_v19 = vmul.f32 %v1213_v5, %v3541_v11  ;;  %v3562_v57 = vmul.f32 %v3333_v6, %v243_v32  ;;  %v4690_v30 = vld [vmem:[#allocation14_spill] sm:$0xff] }
 0x398   :  { %4642 = vst [vmem:[#allocation80_spill] sm:$0xff] %v3556_v31  ;;  %v1438_v0 = vmul.f32 %v3403_v53, %v1437_v52  ;;  %1280 = vrot.lane.b32.xlu1 %v3574_v59, %s1714_s28  ;;  %v1454_v5 = vadd.f32 %v3337_v54, %v1453_v63  ;;  %vm3580_vm7 = vcmp.eq.f32.partialorder %v1459_v20, 8.507059e+37  ;;  %v1462_v52 = vor.u32 1.1754944e-38, %v1461_v50  ;;  %v4676_v20 = vld [vmem:[#allocation101_spill] sm:$0xff]  ;;  %s1717_s28 = smov 256  }
 0x399   :  { %4639 = vst [vmem:[#allocation95_spill] sm:$0xff] %v3547_v36  ;;  %v3565_v36 = vmul.f32 %v3335_v24, %v243_v32  ;;  %v3586_v46 = vmul.f32 %v1207_v51, %v3562_v57  ;;  %v3594_v63 = vmul.f32 %v2978_v23, %v2758_v45  ;;  %v1468_v51 = vmul.f32 %v3439_v26, %v1467_v37 }
 0x39a   :  { %4641 = vst [vmem:[#allocation91_spill] sm:$0xff] %v3551_v8  ;;  %v4644_v8 = vld [vmem:[#allocation94_spill] sm:$0xff]  ;;  %v1458_v23 = vsel %vm3615_vm1, %v3337_v54, %v1454_v5  ;;  %v1447_v37 = vor.u32 1.1754944e-38, %v1446_v43  ;;  %v4672_v5 = vld [vmem:[#allocation5_spill] sm:$0xff] }
 0x39b   :  { %4643 = vst [vmem:[#allocation81_spill] sm:$0xff] %v3559_v19  ;;  %1326 = vperm.xlu2 %1630, %v4644_v8   ;;  %v3589_v8 = vmul.f32 %v1211_v10, %v3565_v36  ;;  %v1476_v19 = vand.u32 2147483648, %v3252_v48  ;;  %v1492_v48 = vor.u32 1.1754944e-38, %v1491_v17  ;;  %v4674_v43 = vld [vmem:[#allocation90_spill] sm:$0xff] }
 0x39c   :  { %4645 = vst [vmem:[#allocation82_spill] sm:$0xff] %v3574_v59  ;;  %v248_v31 = vpop.permute.xlu1 %247  ;;  %v1483_v59 = vmul.f32 %v3461_v41, %v1482_v33  ;;  %v1439_v33 = vadd.f32 %v3403_v53, %v1438_v0  ;;  %v3675_v0 = vmul.f32 %v2913_v12, %v2791_v47  ;;  %v3693_v47 = vmul.f32 %v2859_v42, %v2819_v62 }
 0x39d   :  { %4648 = vst [vmem:[#allocation83_spill] sm:$0xff] %v3586_v46  ;;  %v3602_v46 = vpop.permute.xlu2 %287  ;;  %v3605_v10 = vmul.f32 %v3333_v6, %v248_v31  ;;  %v3608_v50 = vmul.f32 %v3335_v24, %v248_v31  ;;  %v3635_v6 = vmul.f32 %v2889_v55, %v2777_v29  ;;  %v1477_v54 = vor.u32 1.1754944e-38, %v1476_v19 }
 0x39e   :  { %4649 = vst [vmem:[#allocation94_spill] sm:$0xff] %v3589_v8  ;;  %v4652_v8 = vld [vmem:[#allocation99_spill] sm:$0xff]  ;;  %v3647_v31 = vmul.f32 %v2873_v13, %v2779_v2  ;;  %v1484_v29 = vadd.f32 %v3461_v41, %v1483_v59  ;;  %v1469_v55 = vadd.f32 %v3439_v26, %v1468_v51  ;;  %v1443_v2 = vsel %vm3651_vm11, %v3403_v53, %v1439_v33  ;;  %v4661_v59 = vld [vmem:[#allocation96_spill] sm:$0xff]  ;;  %v4668_v53 = vld [vmem:[#allocation121_spill] sm:$0xff] }
 0x39f   :  { %1321 = vperm.xlu0 %1628, %v4652_v8   ;;  %v3638_v24 = vmul.f32 %v1208_v34, %v3605_v10  ;;  %v3641_v44 = vmul.f32 %v1212_v3, %v3608_v50  ;;  %v1463_v34 = vsel %vm3580_vm7, %v1462_v52, %v1458_v23  ;;  %v1489_v13 = vand.u32 2147483647, %v3266_v21  ;;  %v4667_v21 = vld [vmem:[#allocation116_spill] sm:$0xff]  ;;  %v4675_v8 = vld [vmem:[#allocation62_spill] sm:$0xff]  ;;  %v4677_v51 = vld [vmem:[#allocation9_spill] sm:$0xff] }
 0x3a0   :  { %v3667_v3 = vmul.f32 %v2956_v38, %v2795_v25  ;;  %v3671_v19 = vmul.f32 %v2919_v14, %v2789_v61  ;;  %1316 = vperm.xlu1 %1629, %v4661_v59   ;;  %v3689_v61 = vmul.f32 %v2950_v4, %v2798_v1  ;;  %v3697_v12 = vmul.f32 %v2853_v28, %v2821_v40  ;;  %v4678_v33 = vld [vmem:[#allocation57_spill] sm:$0xff]  ;;  %v4679_v23 = vld [vmem:[#allocation6_spill] sm:$0xff]  ;;  %v4682_v59 = vld [vmem:[#allocation68_spill] sm:$0xff] }
 0x3a1   :  { %4657 = vst [vmem:[#allocation99_spill] sm:$0xff] %v3638_v24  ;;  %v3701_v14 = vmul.f32 %v2907_v35, %v2837_v27  ;;  %v3711_v1 = vmul.f32 %v2895_v49, %v2839_v39  ;;  %v1448_v40 = vsel %vm3596_vm15, %v1447_v37, %v1443_v2  ;;  %v1488_v27 = vsel %vm3705_vm3, %v3461_v41, %v1484_v29  ;;  %v4666_v39 = vld [vmem:[#allocation89_spill] sm:$0xff]  ;;  %v1587_v35 = vld [vmem:[%s4216_s2 + $0xe] sm:$0x3]  ;;  %v293_v29 = vpop.permute.xlu0 %292 }
 0x3a2   :  { %4658 = vst [vmem:[#allocation140_spill] sm:$0xff] %v3641_v44  ;;  %v1473_v28 = vsel %vm3683_vm14, %v3439_v26, %v1469_v55  ;;  %v3725_v42 = vmul.f32 %v3009_v9, %v2844_v58  ;;  %v3729_v49 = vmul.f32 %v4666_v39, %v2847_v60  ;;  %vm1490_vm4 = vcmp.eq.f32.partialorder %v1489_v13, 8.507059e+37  ;;  %v4669_v41 = vld [vmem:[#allocation117_spill] sm:$0xff]  ;;  %v4670_v58 = vld [vmem:[#allocation118_spill] sm:$0xff]  ;;  %v4673_v60 = vld [vmem:[#allocation11_spill] sm:$0xff] }
 0x3a3   :  { %1502 = vperm.xlu2 %1630, %v1463_v34   ;;  %v3738_v26 = vmul.f32 %v4668_v53, %v4667_v21  ;;  %v3742_v9 = vmul.f32 %v4670_v58, %v4669_v41  ;;  %v3746_v32 = vmul.f32 %v4673_v60, %v4672_v5  ;;  %v3750_v52 = vmul.f32 %v4675_v8, %v4674_v43  ;;  %v4680_v2 = vld [vmem:[#allocation69_spill] sm:$0xff]  ;;  %v4681_v13 = vld [vmem:[#allocation16_spill] sm:$0xff]  ;;  %v4683_v25 = vld [vmem:[#allocation66_spill] sm:$0xff] }
 0x3a4   :  { %v3713_v62 = vpop.permute.xlu1 %282  ;;  %v3754_v45 = vmul.f32 %v4677_v51, %v4676_v20  ;;  %v3758_v37 = vmul.f32 %v4679_v23, %v4678_v33  ;;  %v1493_v55 = vsel %vm1490_vm4, %v1492_v48, %v1488_v27  ;;  %v1478_v34 = vsel %vm3629_vm10, %v1477_v54, %v1473_v28  ;;  %v4684_v21 = vld [vmem:[#allocation59_spill] sm:$0xff]  ;;  %v4685_v53 = vld [vmem:[#allocation12_spill] sm:$0xff]  ;;  %v4688_v5 = vld [vmem:[#allocation26_spill] sm:$0xff] }
 0x3a5   :  { %v3734_v4 = vpop.permute.xlu2 %322  ;;  %4671 = vst [vmem:[#allocation96_spill] sm:$0xff] %v3742_v9  ;;  %v3767_v17 = vmul.f32 %v4681_v13, %v4680_v2  ;;  %v3771_v38 = vmul.f32 %v4683_v25, %v4682_v59  ;;  %v297_v39 = vperm.slane %v1587_v35, 1  ;;  %v3775_v41 = vmul.f32 %v4685_v53, %v4684_v21  ;;  %v4687_v58 = vld [vmem:[#allocation15_spill] sm:$0xff]  ;;  %v4693_v48 = vld [vmem:[#allocation17_spill] sm:$0xff]  ;;  %v4696_v8 = vld [vmem:[#allocation122_spill] sm:$0xff] }
 0x3a6   :  { %v3779_v27 = vmul.f32 %v4688_v5, %v4687_v58  ;;  %v4691_v54 = vld [vmem:[#allocation67_spill] sm:$0xff]  ;;  %v4694_v60 = vld [vmem:[#allocation13_spill] sm:$0xff]  ;;  %v4697_v20 = vld [vmem:[#allocation64_spill] sm:$0xff]  ;;  %v3793_v2 = vperm.slane %v1592_v15, 0  ;;  %v3795_v13 = vperm.slane %v1592_v15, 1 }
 0x3a7   :  { %1497 = vperm.xlu0 %1628, %v1448_v40   ;;  %v296_v40 = vperm.slane %v1587_v35, 0  ;;  %4686 = vst [vmem:[#allocation89_spill] sm:$0xff] %v3775_v41  ;;  %v3783_v28 = vmul.f32 %v4691_v54, %v4690_v30  ;;  %v3787_v43 = vmul.f32 %v4694_v60, %v4693_v48  ;;  %v539_v51 = vmul.f32 %v4697_v20, %v4696_v8  ;;  %v4698_v35 = vld [vmem:[#allocation123_spill] sm:$0xff]  ;;  %v4699_v33 = vld [vmem:[#allocation22_spill] sm:$0xff]  ;;  %v4700_v59 = vld [vmem:[#allocation100_spill] sm:$0xff] }
 0x3a8   :  { %4689 = vst [vmem:[#allocation116_spill] sm:$0xff] %v3779_v27  ;;  %v540_v23 = vmul.f32 %v4699_v33, %v4698_v35  ;;  %1331 = vperm.xlu1 %1629, %v4700_v59   ;;  %v4701_v25 = vld [vmem:[#allocation127_spill] sm:$0xff]  ;;  %v4702_v21 = vld [vmem:[#allocation70_spill] sm:$0xff]  ;;  %v4704_v58 = vld [vmem:[#allocation128_spill] sm:$0xff] }
 0x3a9   :  { %4692 = vst [vmem:[#allocation121_spill] sm:$0xff] %v3783_v28  ;;  %v3800_v53 = vmul.f32 %v4702_v21, %v4701_v25  ;;  %v4705_v5 = vld [vmem:[#allocation31_spill] sm:$0xff]  ;;  %v4707_v54 = vld [vmem:[#allocation32_spill] sm:$0xff]  ;;  %v4709_v8 = vld [vmem:[#allocation18_spill] sm:$0xff] }
 0x3aa   :  { %4695 = vst [vmem:[#allocation117_spill] sm:$0xff] %v3787_v43  ;;  %v3804_v30 = vmul.f32 %v4705_v5, %v4704_v58  ;;  %v4708_v48 = vld [vmem:[#allocation19_spill] sm:$0xff]  ;;  %v4711_v15 = vld [vmem:[#allocation129_spill] sm:$0xff]  ;;  %v4712_v33 = vld [vmem:[#allocation76_spill] sm:$0xff] }
 0x3ab   :  { %4703 = vst [vmem:[#allocation118_spill] sm:$0xff] %v3800_v53  ;;  %v3808_v60 = vmul.f32 %v4708_v48, %v4707_v54  ;;  %v4710_v20 = vld [vmem:[#allocation7_spill] sm:$0xff]  ;;  %v3816_v44 = vmul.f32 %v4712_v33, %v4711_v15  ;;  %v4713_v59 = vld [vmem:[#allocation130_spill] sm:$0xff]  ;;  %v4714_v24 = vld [vmem:[#allocation25_spill] sm:$0xff] }
 0x3ac   :  { %4706 = vst [vmem:[#allocation5_spill] sm:$0xff] %v3804_v30  ;;  %v3812_v35 = vmul.f32 %v4710_v20, %v4709_v8  ;;  %v3820_v25 = vmul.f32 %v4714_v24, %v4713_v59  ;;  %v4715_v21 = vld [vmem:[#allocation133_spill] sm:$0xff]  ;;  %v4717_v5 = vld [vmem:[#allocation134_spill] sm:$0xff]  ;;  %v318_v48 = vpop.permute.xlu1 %317  ;;  %v4719_v43 = vld [vmem:[#allocation43_spill] sm:$0xff] }
 0x3ad   :  { %v4716_v27 = vld [vmem:[#allocation29_spill] sm:$0xff]  ;;  %v4718_v41 = vld [vmem:[#allocation126_spill] sm:$0xff]  ;;  %v4721_v28 = vld [vmem:[#allocation136_spill] sm:$0xff]  ;;  %v364_v9 = vpop.permute.xlu2 %363 }
 0x3ae   :  { %v3824_v58 = vmul.f32 %v4716_v27, %v4715_v21  ;;  %v3828_v54 = vmul.f32 %v4718_v41, %v4717_v5  ;;  %v4720_v8 = vld [vmem:[#allocation30_spill] sm:$0xff]  ;;  %v4722_v15 = vld [vmem:[#allocation72_spill] sm:$0xff]  ;;  %v4724_v24 = vld [vmem:[#allocation61_spill] sm:$0xff] }
 0x3af   :  { %v3832_v20 = vmul.f32 %v4720_v8, %v4719_v43  ;;  %v3836_v33 = vmul.f32 %v4722_v15, %v4721_v28  ;;  %v4723_v30 = vld [vmem:[#allocation138_spill] sm:$0xff]  ;;  %v4725_v53 = vld [vmem:[#allocation139_spill] sm:$0xff]  ;;  %v4726_v27 = vld [vmem:[#allocation24_spill] sm:$0xff]  ;;  %1512 = vperm.xlu0 %1628, %v1493_v55  }
 0x3b0   :  { %v3840_v59 = vmul.f32 %v4724_v24, %v4723_v30  ;;  %v3844_v21 = vmul.f32 %v4726_v27, %v4725_v53  ;;  %v4728_v41 = vld [vmem:[#allocation35_spill] sm:$0xff]  ;;  %v4729_v43 = vld [vmem:[#allocation21_spill] sm:$0xff]  ;;  %v3863_v53 = vld [vmem:[%s4214_s0 + $0x8] sm:$0xff]  ;;  %1507 = vperm.xlu1 %1629, %v1478_v34  }
 0x3b1   :  { %v3848_v5 = vmul.f32 %v4728_v41, %v3524_v22  ;;  %v3852_v8 = vmul.f32 %v4729_v43, %v3527_v56  ;;  %v3857_v28 = vld [vmem:[%s4214_s0] sm:$0xff]  ;;  %4731 = vst [vmem:[#allocation62_spill] sm:$0xff] %v3863_v53  ;;  %v382_v55 = vmul.f32 %v3863_v53, %v364_v9  ;;  %v4733_v56 = vld [vmem:[#allocation132_spill] sm:$0xff]  ;;  %v4735_v43 = vld [vmem:[#allocation27_spill] sm:$0xff]  ;;  %v3922_v53 = vmul.f32 %v296_v40, %v293_v29 }
 0x3b2   :  { %4727 = vst [vmem:[#allocation11_spill] sm:$0xff] %v3844_v21  ;;  %v381_v30 = vmul.f32 %v3857_v28, %v364_v9  ;;  %v4732_v22 = vld [vmem:[#allocation33_spill] sm:$0xff]  ;;  %v3872_v24 = vmul.f32 %v4733_v56, %v3541_v11  ;;  %v4734_v27 = vld [vmem:[#allocation40_spill] sm:$0xff]  ;;  %v3882_v21 = vpop.permute.xlu0 %327  ;;  %v3885_v9 = vmul.f32 %v296_v40, %v3643_v16  ;;  %v3893_v56 = vmul.f32 %v296_v40, %v3602_v46 }
 0x3b3   :  { %4730 = vst [vmem:[#allocation90_spill] sm:$0xff] %v3857_v28  ;;  %v3868_v15 = vmul.f32 %v4732_v22, %v3538_v7  ;;  %v3876_v41 = vmul.f32 %v4734_v27, %v3562_v57  ;;  %v3880_v28 = vmul.f32 %v4735_v43, %v3565_v36  ;;  %v3888_v7 = vmul.f32 %v297_v39, %v3643_v16  ;;  %v4740_v43 = vld [vmem:[#allocation39_spill] sm:$0xff] }
 0x3b4   :  { %4736 = vst [vmem:[#allocation101_spill] sm:$0xff] %v3885_v9  ;;  %v424_v22 = vadd.f32 %v3635_v6, %v381_v30  ;;  %v425_v11 = vadd.f32 %v3647_v31, %v382_v55  ;;  %v3896_v57 = vmul.f32 %v297_v39, %v3602_v46  ;;  %v3899_v36 = vmul.f32 %v296_v40, %v3713_v62  ;;  %v4741_v6 = vld [vmem:[#allocation38_spill] sm:$0xff] }
 0x3b5   :  { %4737 = vst [vmem:[#allocation9_spill] sm:$0xff] %v3888_v7  ;;  %v3902_v27 = vmul.f32 %v297_v39, %v3713_v62  ;;  %v3906_v16 = vmul.f32 %v4740_v43, %v3605_v10  ;;  %v3910_v30 = vmul.f32 %v4741_v6, %v3608_v50  ;;  %v3916_v46 = vmul.f32 %v3793_v2, %v3734_v4  ;;  %v4747_v50 = vld [vmem:[#allocation44_spill] sm:$0xff]  ;;  %v4749_v6 = vld [vmem:[#allocation41_spill] sm:$0xff] }
 0x3b6   :  { %4738 = vst [vmem:[#allocation57_spill] sm:$0xff] %v3899_v36  ;;  %v465_v31 = vadd.f32 %v3594_v63, %v424_v22  ;;  %v466_v55 = vadd.f32 %v3623_v18, %v425_v11  ;;  %v3920_v62 = vmul.f32 %v3795_v13, %v3734_v4  ;;  %v3924_v10 = vmul.f32 %v297_v39, %v293_v29  ;;  %v4748_v63 = vld [vmem:[#allocation137_spill] sm:$0xff]  ;;  %v333_v11 = vpop.permute.xlu1 %332  ;;  %v4750_v4 = vld [vmem:[#allocation42_spill] sm:$0xff] }
 0x3b7   :  { %4739 = vst [vmem:[#allocation6_spill] sm:$0xff] %v3902_v27  ;;  %v662_v43 = vmul.f32 %v4747_v50, %v3885_v9  ;;  %v663_v22 = vmul.f32 %v4748_v63, %v3888_v7  ;;  %v3938_v40 = vmul.f32 %v4750_v4, %v3902_v27  ;;  %v3941_v29 = vmul.f32 %v3793_v2, %v318_v48  ;;  %v379_v50 = vpop.permute.xlu2 %378  ;;  %v4755_v7 = vld [vmem:[#allocation79_spill] sm:$0xff] }
 0x3b8   :  { %4742 = vst [vmem:[#allocation69_spill] sm:$0xff] %v3910_v30  ;;  %v506_v18 = vadd.f32 %v3725_v42, %v465_v31  ;;  %v507_v34 = vadd.f32 %v3729_v49, %v466_v55  ;;  %v3934_v30 = vmul.f32 %v4749_v6, %v3899_v36  ;;  %v3944_v39 = vmul.f32 %v3795_v13, %v318_v48  ;;  %v3949_v49 = vld [vmem:[%s4214_s0 + $0x30] sm:$0xff]  ;;  %v3955_v55 = vld [vmem:[%s4214_s0 + $0x38] sm:$0xff] }
 0x3b9   :  { %4743 = vst [vmem:[#allocation16_spill] sm:$0xff] %v3916_v46  ;;  %v387_v31 = vmul.f32 %v3949_v49, %v379_v50  ;;  %v388_v6 = vmul.f32 %v3955_v55, %v379_v50  ;;  %v4752_v48 = vld [vmem:[#allocation51_spill] sm:$0xff]  ;;  %v669_v9 = vmul.f32 %v4755_v7, %v3924_v10  ;;  %v4757_v7 = vld [vmem:[#allocation53_spill] sm:$0xff] }
 0x3ba   :  { %4744 = vst [vmem:[#allocation68_spill] sm:$0xff] %v3920_v62  ;;  %v547_v63 = vadd.f32 %v539_v51, %v506_v18  ;;  %v548_v42 = vadd.f32 %v540_v23, %v507_v34  ;;  %v3960_v4 = vmul.f32 %v4752_v48, %v3916_v46  ;;  %v4753_v51 = vld [vmem:[#allocation52_spill] sm:$0xff]  ;;  %v4754_v18 = vld [vmem:[#allocation46_spill] sm:$0xff]  ;;  %v369_v27 = vpop.permute.xlu0 %368  ;;  %v3975_v50 = vld [vmem:[%s4214_s0 + $0x10] sm:$0xff] }
 0x3bb   :  { %4745 = vst [vmem:[#allocation66_spill] sm:$0xff] %v3922_v53  ;;  %v3964_v23 = vmul.f32 %v4753_v51, %v3920_v62  ;;  %v668_v34 = vmul.f32 %v4754_v18, %v3922_v53  ;;  %v430_v36 = vadd.f32 %v3701_v14, %v387_v31  ;;  %v383_v48 = vmul.f32 %v3975_v50, %v369_v27  ;;  %v3981_v51 = vld [vmem:[%s4214_s0 + $0x18] sm:$0xff]  ;;  %v4758_v14 = vld [vmem:[#allocation54_spill] sm:$0xff] }
 0x3bc   :  { %4746 = vst [vmem:[#allocation59_spill] sm:$0xff] %v3924_v10  ;;  %v384_v18 = vmul.f32 %v3981_v51, %v369_v27  ;;  %v703_v10 = vmul.f32 %v4757_v7, %v3941_v29  ;;  %v588_v31 = vadd.f32 %v3824_v58, %v547_v63  ;;  %v3995_v27 = vmul.f32 %v3793_v2, %v333_v11 }
 0x3bd   :  { %4751 = vst [vmem:[#allocation12_spill] sm:$0xff] %v3949_v49  ;;  %v431_v49 = vadd.f32 %v3711_v1, %v388_v6  ;;  %v704_v1 = vmul.f32 %v4758_v14, %v3944_v39  ;;  %v589_v6 = vadd.f32 %v3828_v54, %v548_v42  ;;  %v471_v53 = vadd.f32 %v3746_v32, %v430_v36 }
 0x3be   :  { %4756 = vst [vmem:[#allocation15_spill] sm:$0xff] %v3975_v50  ;;  %v426_v46 = vadd.f32 %v3693_v47, %v383_v48  ;;  %v427_v50 = vadd.f32 %v3697_v12, %v384_v18  ;;  %v3998_v7 = vmul.f32 %v3795_v13, %v333_v11  ;;  %v629_v14 = vadd.f32 %v3832_v20, %v588_v31  ;;  %v374_v36 = vpop.permute.xlu1 %373  ;;  %v4011_v11 = vld [vmem:[%s4214_s0 + $0x20] sm:$0xff]  ;;  %v4762_v31 = vld [vmem:[#allocation55_spill] sm:$0xff] }
 0x3bf   :  { %v472_v62 = vadd.f32 %v3750_v52, %v431_v49  ;;  %v630_v58 = vadd.f32 %v3836_v33, %v589_v6  ;;  %v512_v54 = vadd.f32 %v3754_v45, %v471_v53  ;;  %v4006_v12 = vpop.permute.xlu2 %730  ;;  %v385_v20 = vmul.f32 %v4011_v11, %v374_v36  ;;  %v4017_v45 = vld [vmem:[%s4214_s0 + $0x28] sm:$0xff]  ;;  %v4763_v6 = vld [vmem:[#allocation56_spill] sm:$0xff] }
 0x3c0   :  { %v467_v52 = vadd.f32 %v3667_v3, %v426_v46  ;;  %v468_v47 = vadd.f32 %v3689_v61, %v427_v50  ;;  %v670_v3 = vadd.f32 %v662_v43, %v629_v14  ;;  %v710_v14 = vmul.f32 %v4763_v6, %v3998_v7  ;;  %v4775_v6 = vld [vmem:[#allocation62_spill] sm:$0xff] }
 0x3c1   :  { %v513_v32 = vadd.f32 %v3758_v37, %v472_v62  ;;  %v386_v37 = vmul.f32 %v4017_v45, %v374_v36  ;;  %v671_v33 = vadd.f32 %v663_v22, %v630_v58  ;;  %v553_v61 = vadd.f32 %v3816_v44, %v512_v54  ;;  %v4760_v22 = vld [vmem:[#allocation118_spill] sm:$0xff]  ;;  %v4765_v58 = vld [vmem:[#allocation117_spill] sm:$0xff] }
 0x3c2   :  { %v508_v46 = vadd.f32 %v3767_v17, %v467_v52  ;;  %v509_v62 = vadd.f32 %v3771_v38, %v468_v47  ;;  %v428_v63 = vadd.f32 %v3671_v19, %v385_v20  ;;  %v4026_v49 = vpop.permute.xlu0 %735  ;;  %v711_v50 = vadd.f32 %v703_v10, %v670_v3  ;;  %v4759_v38 = vld [vmem:[#allocation96_spill] sm:$0xff] }
 0x3c3   :  { %v554_v53 = vadd.f32 %v3820_v25, %v513_v32  ;;  %v429_v42 = vadd.f32 %v3675_v0, %v386_v37  ;;  %v712_v48 = vadd.f32 %v704_v1, %v671_v33  ;;  %v594_v44 = vadd.f32 %v3848_v5, %v553_v61  ;;  %v4761_v1 = vld [vmem:[#allocation5_spill] sm:$0xff] }
 0x3c4   :  { %v549_v18 = vadd.f32 %v3808_v60, %v508_v46  ;;  %v550_v43 = vadd.f32 %v3812_v35, %v509_v62  ;;  %v4034_v17 = vmul.f32 %v3793_v2, %v3882_v21  ;;  %v4038_v19 = vmul.f32 %v3795_v13, %v3882_v21  ;;  %v4764_v13 = vld [vmem:[#allocation121_spill] sm:$0xff] }
 0x3c5   :  { %v595_v25 = vadd.f32 %v3852_v8, %v554_v53  ;;  %v469_v0 = vadd.f32 %v3738_v26, %v428_v63  ;;  %v470_v10 = vadd.f32 %v4759_v38, %v429_v42  ;;  %v635_v5 = vadd.f32 %v3868_v15, %v594_v44  ;;  %v4766_v15 = vld [vmem:[#allocation89_spill] sm:$0xff]  ;;  %v4768_v42 = vld [vmem:[#allocation11_spill] sm:$0xff] }
 0x3c6   :  { %v590_v60 = vadd.f32 %v4760_v22, %v549_v18  ;;  %v591_v35 = vadd.f32 %v4761_v1, %v550_v43  ;;  %v709_v2 = vmul.f32 %v4762_v31, %v3995_v27  ;;  %v726_v52 = vpop.permute.xlu1 %725  ;;  %v4769_v43 = vld [vmem:[#allocation47_spill] sm:$0xff]  ;;  %v4772_v22 = vld [vmem:[#allocation49_spill] sm:$0xff]  ;;  %v4773_v1 = vld [vmem:[#allocation50_spill] sm:$0xff] }
 0x3c7   :  { %v636_v8 = vadd.f32 %v3872_v24, %v595_v25  ;;  %v510_v21 = vadd.f32 %v4764_v13, %v469_v0  ;;  %v511_v26 = vadd.f32 %v4765_v58, %v470_v10  ;;  %v676_v47 = vadd.f32 %v668_v34, %v635_v5  ;;  %v4767_v24 = vld [vmem:[#allocation116_spill] sm:$0xff]  ;;  %v918_v3 = vpop.permute.xlu2 %917  ;;  %v4771_v0 = vld [vmem:[#allocation69_spill] sm:$0xff]  ;;  %v4774_v31 = vld [vmem:[#allocation90_spill] sm:$0xff] }
 0x3c8   :  { %v631_v54 = vadd.f32 %v3876_v41, %v590_v60  ;;  %v632_v32 = vadd.f32 %v3880_v28, %v591_v35  ;;  %v743_v33 = vadd.f32 %v726_v52, %v711_v50  ;;  %v744_v61 = vadd.f32 %v726_v52, %v712_v48  ;;  %v4770_v25 = vld [vmem:[#allocation88_spill] sm:$0xff] }
 0x3c9   :  { %v677_v36 = vadd.f32 %v669_v9, %v636_v8  ;;  %v551_v20 = vadd.f32 %v4766_v15, %v510_v21  ;;  %v552_v37 = vadd.f32 %v4767_v24, %v511_v26  ;;  %v717_v62 = vadd.f32 %v709_v2, %v676_v47  ;;  %v4777_v47 = vld [vmem:[#allocation93_spill] sm:$0xff] }
 0x3ca   :  { %v672_v53 = vadd.f32 %v3934_v30, %v631_v54  ;;  %v673_v46 = vadd.f32 %v3938_v40, %v632_v32  ;;  %v751_v18 = vmax.f32 %v743_v33, 0.0  ;;  %v752_v34 = vmax.f32 %v744_v61, 0.0  ;;  %v908_v9 = vpop.permute.xlu0 %907  ;;  %v4776_v32 = vld [vmem:[#allocation92_spill] sm:$0xff]  ;;  %v4778_v61 = vld [vmem:[#allocation106_spill] sm:$0xff] }
 0x3cb   :  { %v718_v63 = vadd.f32 %v710_v14, %v677_v36  ;;  %v592_v41 = vadd.f32 %v3840_v59, %v551_v20  ;;  %v593_v28 = vadd.f32 %v4768_v42, %v552_v37  ;;  %v666_v44 = vmul.f32 %v4769_v43, %v3893_v56  ;;  %v4781_v43 = vld [vmem:[#allocation120_spill] sm:$0xff] }
 0x3cc   :  { %v667_v50 = vmul.f32 %v4770_v25, %v3896_v57  ;;  %v713_v48 = vadd.f32 %v3960_v4, %v672_v53  ;;  %v714_v30 = vadd.f32 %v3964_v23, %v673_v46  ;;  %v925_v59 = vmul.f32 %v908_v9, %v751_v18  ;;  %v4779_v46 = vld [vmem:[#allocation107_spill] sm:$0xff] }
 0x3cd   :  { %v633_v40 = vadd.f32 %v3906_v16, %v592_v41  ;;  %v634_v38 = vadd.f32 %v4771_v0, %v593_v28  ;;  %v926_v10 = vmul.f32 %v908_v9, %v752_v34  ;;  %v707_v60 = vmul.f32 %v4772_v22, %v4034_v17  ;;  %v4780_v34 = vld [vmem:[#allocation119_spill] sm:$0xff] }
 0x3ce   :  { %v708_v35 = vmul.f32 %v4773_v1, %v4038_v19  ;;  %v933_v2 = vadd.f32 %v4774_v31, %v925_v59  ;;  %v741_v14 = vpop.permute.xlu1 %740  ;;  %v745_v26 = vadd.f32 %v4006_v12, %v713_v48  ;;  %v746_v54 = vadd.f32 %v4006_v12, %v714_v30 }
 0x3cf   :  { %v674_v5 = vadd.f32 %v666_v44, %v633_v40  ;;  %v675_v8 = vadd.f32 %v667_v50, %v634_v38  ;;  %v934_v4 = vadd.f32 %v4775_v6, %v926_v10  ;;  %v975_v16 = vpop.permute.xlu2 %974  ;;  %v749_v21 = vadd.f32 %v741_v14, %v717_v62  ;;  %v4783_v40 = vld [vmem:[#allocation20_spill] sm:$0xff]  ;;  %v4784_v38 = vld [vmem:[#allocation65_spill] sm:$0xff] }
 0x3d0   :  { %941 = vst [vmem:[#allocation2] sm:$0xff] %v933_v2  ;;  %v750_v58 = vadd.f32 %v741_v14, %v718_v63  ;;  %v986_v52 = vmul.f32 %v4776_v32, %v975_v16  ;;  %v987_v36 = vmul.f32 %v4777_v47, %v975_v16  ;;  %v753_v28 = vmax.f32 %v745_v26, 0.0  ;;  %v4790_v16 = vld [vmem:[#allocation86_spill] sm:$0xff] }
 0x3d1   :  { %v715_v23 = vadd.f32 %v707_v60, %v674_v5  ;;  %v716_v13 = vadd.f32 %v708_v35, %v675_v8  ;;  %942 = vst [vmem:[#allocation2 + $0x8] sm:$0xff] %v934_v4  ;;  %v757_v24 = vmax.f32 %v749_v21, 0.0  ;;  %v754_v18 = vmax.f32 %v746_v54, 0.0  ;;  %v4785_v8 = vld [vmem:[#allocation23_spill] sm:$0xff]  ;;  %v4792_v54 = vld [vmem:[#allocation110_spill] sm:$0xff] }
 0x3d2   :  { %v758_v37 = vmax.f32 %v750_v58, 0.0  ;;  %v923_v33 = vpop.permute.xlu0 %922  ;;  %v1026_v53 = vadd.f32 %v4778_v61, %v986_v52  ;;  %v1027_v62 = vadd.f32 %v4779_v46, %v987_v36  ;;  %v4791_v58 = vld [vmem:[#allocation97_spill] sm:$0xff]  ;;  %v4793_v36 = vld [vmem:[#allocation111_spill] sm:$0xff] }
 0x3d3   :  { %v747_v15 = vadd.f32 %v4026_v49, %v715_v23  ;;  %v748_v20 = vadd.f32 %v4026_v49, %v716_v13  ;;  %v931_v42 = vmul.f32 %v923_v33, %v757_v24  ;;  %v4782_v49 = vld [vmem:[#allocation12_spill] sm:$0xff]  ;;  %v4789_v13 = vld [vmem:[#allocation82_spill] sm:$0xff] }
 0x3d4   :  { %v932_v12 = vmul.f32 %v923_v33, %v758_v37  ;;  %v1066_v9 = vadd.f32 %v4780_v34, %v1026_v53  ;;  %v1067_v44 = vadd.f32 %v4781_v43, %v1027_v62  ;;  %v4788_v23 = vld [vmem:[#allocation124_spill] sm:$0xff]  ;;  %v4797_v53 = vld [vmem:[#allocation109_spill] sm:$0xff] }
 0x3d5   :  { %v755_v63 = vmax.f32 %v747_v15, 0.0  ;;  %v756_v41 = vmax.f32 %v748_v20, 0.0  ;;  %v939_v48 = vadd.f32 %v4782_v49, %v931_v42  ;;  %v4794_v20 = vld [vmem:[#allocation99_spill] sm:$0xff]  ;;  %v4795_v37 = vld [vmem:[#allocation140_spill] sm:$0xff] }
 0x3d6   :  { %v940_v30 = vadd.f32 %v3955_v55, %v932_v12  ;;  %v1106_v0 = vadd.f32 %v4783_v40, %v1066_v9  ;;  %v1107_v59 = vadd.f32 %v4784_v38, %v1067_v44  ;;  %v913_v10 = vpop.permute.xlu1 %912  ;;  %v4787_v55 = vld [vmem:[#allocation15_spill] sm:$0xff]  ;;  %v4796_v33 = vld [vmem:[#allocation108_spill] sm:$0xff]  ;;  %v4799_v12 = vld [vmem:[#allocation37_spill] sm:$0xff] }
 0x3d7   :  { %v929_v25 = vmul.f32 %v918_v3, %v755_v63  ;;  %v930_v50 = vmul.f32 %v918_v3, %v756_v41  ;;  %947 = vst [vmem:[#allocation2 + $0x30] sm:$0xff] %v939_v48  ;;  %v1235_v1 = vpop.permute.xlu2 %1234  ;;  %v927_v35 = vmul.f32 %v913_v10, %v753_v28  ;;  %v928_v5 = vmul.f32 %v913_v10, %v754_v18  ;;  %v4786_v3 = vld [vmem:[#allocation77_spill] sm:$0xff]  ;;  %v4800_v18 = vld [vmem:[#allocation60_spill] sm:$0xff]  ;;  %v4801_v9 = vld [vmem:[#allocation58_spill] sm:$0xff] }
 0x3d8   :  { %v1146_v31 = vadd.f32 %v4785_v8, %v1106_v0  ;;  %v1147_v2 = vadd.f32 %v4786_v3, %v1107_v59  ;;  %948 = vst [vmem:[#allocation2 + $0x38] sm:$0xff] %v940_v30  ;;  %v4798_v41 = vld [vmem:[#allocation125_spill] sm:$0xff]  ;;  %v4803_v30 = vld [vmem:[#allocation104_spill] sm:$0xff]  ;;  %v4805_v10 = vld [vmem:[#allocation34_spill] sm:$0xff] }
 0x3d9   :  { %v937_v22 = vadd.f32 %v4011_v11, %v929_v25  ;;  %v938_v60 = vadd.f32 %v4017_v45, %v930_v50  ;;  %v935_v6 = vadd.f32 %v4787_v55, %v927_v35  ;;  %v936_v4 = vadd.f32 %v3981_v51, %v928_v5  ;;  %v4804_v0 = vld [vmem:[#allocation105_spill] sm:$0xff] }
 0x3da   :  { %v970_v14 = vpop.permute.xlu0 %969  ;;  %v1186_v21 = vadd.f32 %v4790_v16, %v1146_v31  ;;  %v1187_v26 = vadd.f32 %v4791_v58, %v1147_v2  ;;  %v4807_v31 = vld [vmem:[#allocation102_spill] sm:$0xff]  ;;  %v4813_v16 = vld [vmem:[#allocation83_spill] sm:$0xff] }
 0x3db   :  { %945 = vst [vmem:[#allocation2 + $0x20] sm:$0xff] %v937_v22  ;;  %v984_v11 = vmul.f32 %v4788_v23, %v970_v14  ;;  %v985_v45 = vmul.f32 %v4789_v13, %v970_v14  ;;  %v4812_v23 = vld [vmem:[#allocation115_spill] sm:$0xff]  ;;  %v4814_v58 = vld [vmem:[#allocation94_spill] sm:$0xff] }
 0x3dc   :  { %946 = vst [vmem:[#allocation2 + $0x28] sm:$0xff] %v938_v60  ;;  %v1226_v24 = vadd.f32 %v4794_v20, %v1186_v21  ;;  %v1227_v51 = vadd.f32 %v4795_v37, %v1187_v26  ;;  %v4806_v60 = vld [vmem:[#allocation73_spill] sm:$0xff]  ;;  %v4817_v20 = vld [vmem:[#allocation135_spill] sm:$0xff] }
 0x3dd   :  { %943 = vst [vmem:[#allocation2 + $0x10] sm:$0xff] %v935_v6  ;;  %v1024_v52 = vadd.f32 %v4792_v54, %v984_v11  ;;  %v1025_v15 = vadd.f32 %v4793_v36, %v985_v45  ;;  %v4815_v54 = vld [vmem:[#allocation28_spill] sm:$0xff]  ;;  %v4816_v36 = vld [vmem:[#allocation71_spill] sm:$0xff] }
 0x3de   :  { %944 = vst [vmem:[#allocation2 + $0x18] sm:$0xff] %v936_v4  ;;  %v965_v62 = vpop.permute.xlu1 %964  ;;  %v4811_v4 = vld [vmem:[#allocation114_spill] sm:$0xff]  ;;  %v4818_v37 = vld [vmem:[#allocation131_spill] sm:$0xff] }
 0x3df   :  { %v1064_v61 = vadd.f32 %v4796_v33, %v1024_v52  ;;  %v1065_v46 = vadd.f32 %v4797_v53, %v1025_v15  ;;  %v1243_v63 = vpop.permute.xlu2 %1242  ;;  %v982_v42 = vmul.f32 %v4798_v41, %v965_v62  ;;  %v983_v28 = vmul.f32 %v4799_v12, %v965_v62  ;;  %v4819_v33 = vld [vmem:[#allocation112_spill] sm:$0xff]  ;;  %v4820_v53 = vld [vmem:[#allocation113_spill] sm:$0xff] }
 0x3e0   :  { %v1248_v25 = vsel %vm653_vm2, %v1235_v1, %v1243_v63  ;;  %v1252_v50 = vsel %vm653_vm2, %v1243_v63, %v1235_v1  ;;  %v4808_v1 = vld [vmem:[#allocation103_spill] sm:$0xff]  ;;  %v4821_v63 = vld [vmem:[#allocation45_spill] sm:$0xff] }
 0x3e1   :  { %v1104_v34 = vadd.f32 %v4800_v18, %v1064_v61  ;;  %v1105_v43 = vadd.f32 %v4801_v9, %v1065_v46  ;;  %v1258_v49 = vmul.f32 %v1248_v25, %v3893_v56  ;;  %v1259_v48 = vmul.f32 %v1252_v50, %v3896_v57  ;;  %v4809_v56 = vld [vmem:[#allocation84_spill] sm:$0xff]  ;;  %v4810_v57 = vld [vmem:[#allocation85_spill] sm:$0xff]  ;;  %v4823_v18 = vld [vmem:[#allocation98_spill] sm:$0xff] }
 0x3e2   :  { %v1022_v40 = vadd.f32 %v4803_v30, %v982_v42  ;;  %v1023_v38 = vadd.f32 %v4804_v0, %v983_v28  ;;  %v1231_v59 = vpop.permute.xlu0 %1230  ;;  %v4822_v42 = vld [vmem:[#allocation78_spill] sm:$0xff]  ;;  %v4824_v9 = vld [vmem:[#allocation8_spill] sm:$0xff]  ;;  %v4828_v0 = vld [vmem:[#allocation63_spill] sm:$0xff] }
 0x3e3   :  { %v1144_v22 = vadd.f32 %v4805_v10, %v1104_v34  ;;  %v1145_v35 = vadd.f32 %v4806_v60, %v1105_v43  ;;  %v4118_v5 = vadd.f32 %v1258_v49, %v1226_v24  ;;  %v4120_v8 = vadd.f32 %v1259_v48, %v1227_v51  ;;  %v4825_v25 = vld [vmem:[#allocation36_spill] sm:$0xff]  ;;  %v4826_v49 = vld [vmem:[#allocation87_spill] sm:$0xff]  ;;  %v4827_v30 = vld [vmem:[#allocation10_spill] sm:$0xff] }
 0x3e4   :  { %v1062_v3 = vadd.f32 %v4807_v31, %v1022_v40  ;;  %v1063_v2 = vadd.f32 %v4808_v1, %v1023_v38  ;;  %v4829_v60 = vld [vmem:[#allocation75_spill] sm:$0xff]  ;;  %v4830_v31 = vld [vmem:[#allocation74_spill] sm:$0xff] }
 0x3e5   :  { %v1184_v55 = vadd.f32 %v4809_v56, %v1144_v22  ;;  %v1185_v6 = vadd.f32 %v4810_v57, %v1145_v35 }
 0x3e6   :  { %v1102_v14 = vadd.f32 %v4811_v4, %v1062_v3  ;;  %v1103_v11 = vadd.f32 %v4812_v23, %v1063_v2  ;;  %v980_v45 = vpop.permute.xlu1 %979  ;;  %v4831_v2 = vld [vmem:[#allocation95_spill] sm:$0xff] }
 0x3e7   :  { %v1224_v21 = vadd.f32 %v4813_v16, %v1184_v55  ;;  %v1225_v26 = vadd.f32 %v4814_v58, %v1185_v6  ;;  %v988_v24 = vmul.f32 %v4817_v20, %v980_v45  ;;  %v989_v51 = vmul.f32 %v4818_v37, %v980_v45  ;;  %v1273_v22 = vpop.permute.xlu2 %1272  ;;  %v4832_v55 = vld [vmem:[#allocation91_spill] sm:$0xff]  ;;  %v4833_v6 = vld [vmem:[#allocation80_spill] sm:$0xff] }
 0x3e8   :  { %v1142_v52 = vadd.f32 %v4815_v54, %v1102_v14  ;;  %v1143_v15 = vadd.f32 %v4816_v36, %v1103_v11  ;;  %v4834_v14 = vld [vmem:[#allocation81_spill] sm:$0xff] }
 0x3e9   :  { %v1028_v61 = vadd.f32 %v4819_v33, %v988_v24  ;;  %v1029_v46 = vadd.f32 %v4820_v53, %v989_v51  ;;  %v4835_v53 = vld [vmem:[#allocation57_spill] sm:$0xff] }
 0x3ea   :  { %v1237_v62 = vpop.permute.xlu0 %1236  ;;  %v1182_v41 = vadd.f32 %v4821_v63, %v1142_v52  ;;  %v1183_v28 = vadd.f32 %v4822_v42, %v1143_v15  ;;  %v4836_v63 = vld [vmem:[#allocation6_spill] sm:$0xff]  ;;  %v4837_v42 = vld [vmem:[#allocation101_spill] sm:$0xff] }
 0x3eb   :  { %v1068_v34 = vadd.f32 %v4823_v18, %v1028_v61  ;;  %v1069_v43 = vadd.f32 %v4824_v9, %v1029_v46  ;;  %v4838_v18 = vld [vmem:[#allocation9_spill] sm:$0xff] }
 0x3ec   :  { %v1222_v50 = vadd.f32 %v4825_v25, %v1182_v41  ;;  %v1223_v48 = vadd.f32 %v4826_v49, %v1183_v28 }
 0x3ed   :  { %v1108_v40 = vadd.f32 %v4827_v30, %v1068_v34  ;;  %v1109_v38 = vadd.f32 %v4828_v0, %v1069_v43 }
 0x3ee   :  { %v1233_v10 = vpop.permute.xlu1 %1232 }
 0x3ef   :  { %v1148_v35 = vadd.f32 %v4829_v60, %v1108_v40  ;;  %v1149_v3 = vadd.f32 %v4830_v31, %v1109_v38  ;;  %v1279_v45 = vpop.permute.xlu2 %1278  ;;  %v4839_v60 = vld [vmem:[#allocation16_spill] sm:$0xff] }
 0x3f0   :  { %v4840_v31 = vld [vmem:[#allocation68_spill] sm:$0xff] }
 0x3f1   :  { %v1188_v56 = vadd.f32 %v4831_v2, %v1148_v35  ;;  %v1189_v57 = vadd.f32 %v4832_v55, %v1149_v3 }
 0x3f2   :  { %v1241_v1 = vpop.permute.xlu0 %1240 }
 0x3f3   :  { %v1228_v4 = vadd.f32 %v4833_v6, %v1188_v56  ;;  %v1229_v23 = vadd.f32 %v4834_v14, %v1189_v57  ;;  %v1247_v15 = vsel %vm653_vm2, %v1233_v10, %v1241_v1  ;;  %v1251_v24 = vsel %vm653_vm2, %v1241_v1, %v1233_v10  ;;  %v4842_v14 = vld [vmem:[#allocation59_spill] sm:$0xff] }
 0x3f4   :  { %v1256_v46 = vmul.f32 %v1247_v15, %v4835_v53  ;;  %v1257_v41 = vmul.f32 %v1251_v24, %v4836_v63 }
 0x3f6   :  { %v1239_v11 = vpop.permute.xlu1 %1238  ;;  %v1264_v30 = vadd.f32 %v1256_v46, %v1224_v21  ;;  %v1265_v40 = vadd.f32 %v1257_v41, %v1225_v26 }
 0x3f7   :  { %v1285_v52 = vpop.permute.xlu2 %1284  ;;  %v1246_v33 = vsel %vm653_vm2, %v1231_v59, %v1239_v11  ;;  %v1250_v61 = vsel %vm653_vm2, %v1239_v11, %v1231_v59 }
 0x3f8   :  { %v1254_v28 = vmul.f32 %v1246_v33, %v4837_v42  ;;  %v1255_v34 = vmul.f32 %v1250_v61, %v4838_v18 }
 0x3fa   :  { %v1271_v16 = vpop.permute.xlu0 %1270  ;;  %v1262_v1 = vadd.f32 %v1254_v28, %v1222_v50  ;;  %v1263_v2 = vadd.f32 %v1255_v34, %v1223_v48 }
 0x3fb   :  { %v1286_v43 = vsel %vm694_vm0, %v1271_v16, %v1279_v45  ;;  %v1290_v25 = vsel %vm694_vm0, %v1279_v45, %v1271_v16 }
 0x3fc   :  { %v1294_v21 = vmul.f32 %v1286_v43, %v3941_v29  ;;  %v1295_v26 = vmul.f32 %v1290_v25, %v3944_v39 }
 0x3fe   :  { %v1245_v58 = vpop.permute.xlu1 %1244  ;;  %v1302_v48 = vadd.f32 %v1294_v21, %v1262_v1 }
 0x3ff   :  { %v4162_v9 = vpop.permute.xlu2 %1326  ;;  %v1249_v38 = vsel %vm653_vm2, %v1237_v62, %v1245_v58  ;;  %v1253_v10 = vsel %vm653_vm2, %v1245_v58, %v1237_v62  ;;  %v1303_v58 = vadd.f32 %v1295_v26, %v1263_v2 }
 0x400   :  { %v1261_v11 = vmul.f32 %v1253_v10, %v4842_v14 }
 0x402   :  { %v1277_v54 = vpop.permute.xlu0 %1276  ;;  %v1269_v53 = vadd.f32 %v1261_v11, %v1229_v23 }
 0x403   :  { %v1289_v62 = vsel %vm694_vm0, %v1277_v54, %v1285_v52  ;;  %v1293_v50 = vsel %vm694_vm0, %v1285_v52, %v1277_v54 }
 0x404   :  { %v1300_v42 = vmul.f32 %v1289_v62, %v3995_v27  ;;  %v1301_v54 = vmul.f32 %v1293_v50, %v3998_v7 }
 0x406   :  { %v1275_v36 = vpop.permute.xlu1 %1274 }
 0x407   :  { %v1503_v46 = vpop.permute.xlu2 %1502 }
 0x40a   :  { %v1283_v51 = vpop.permute.xlu0 %1282 }
 0x40b   :  { %v1288_v29 = vsel %vm694_vm0, %v1275_v36, %v1283_v51  ;;  %v1292_v39 = vsel %vm694_vm0, %v1283_v51, %v1275_v36 }
 0x40c   :  { %v1298_v18 = vmul.f32 %v1288_v29, %v4034_v17  ;;  %v1299_v34 = vmul.f32 %v1292_v39, %v4038_v19  ;;  %v1680_v19 = vld [vmem:[%s4214_s0 + $0x40] sm:$0xff] }
 0x40e   :  { %v1281_v49 = vpop.permute.xlu1 %1280  ;;  %v1307_v17 = vadd.f32 %v1299_v34, %v4120_v8 }
 0x40f   :  { %v1287_v59 = vsel %vm694_vm0, %v1273_v22, %v1281_v49  ;;  %v1291_v0 = vsel %vm694_vm0, %v1281_v49, %v1273_v22  ;;  %v4841_v22 = vld [vmem:[#allocation66_spill] sm:$0xff]  ;;  %v1309_v49 = vadd.f32 %v1301_v54, %v1269_v53 }
 0x410   :  { %v1296_v35 = vmul.f32 %v1287_v59, %v4839_v60  ;;  %v1297_v3 = vmul.f32 %v1291_v0, %v4840_v31  ;;  %v1260_v6 = vmul.f32 %v1249_v38, %v4841_v22  ;;  %v1339_v8 = vadd.f32 %v4162_v9, %v1307_v17 }
 0x412   :  { %v1322_v56 = vpop.permute.xlu0 %1321  ;;  %v1304_v55 = vadd.f32 %v1296_v35, %v1264_v30  ;;  %v1305_v57 = vadd.f32 %v1297_v3, %v1265_v40  ;;  %v1268_v61 = vadd.f32 %v1260_v6, %v1228_v4  ;;  %v1679_v4 = vld [vmem:[%s4214_s0 + $0x50] sm:$0xff]  ;;  %v1306_v30 = vadd.f32 %v1298_v18, %v4118_v5 }
 0x414   :  { %v1336_v45 = vadd.f32 %v1322_v56, %v1304_v55  ;;  %v1337_v16 = vadd.f32 %v1322_v56, %v1305_v57  ;;  %v1308_v7 = vadd.f32 %v1300_v42, %v1268_v61  ;;  %v1338_v5 = vadd.f32 %v4162_v9, %v1306_v30 }
 0x416   :  { %v1344_v15 = vmax.f32 %v1336_v45, 0.0  ;;  %v1345_v24 = vmax.f32 %v1337_v16, 0.0  ;;  %v1317_v33 = vpop.permute.xlu1 %1316  ;;  %v1346_v21 = vmax.f32 %v1338_v5, 0.0 }
 0x417   :  { %v1334_v63 = vadd.f32 %v1317_v33, %v1302_v48  ;;  %v1335_v41 = vadd.f32 %v1317_v33, %v1303_v58 }
 0x418   :  { %v1517_v52 = vmul.f32 %v1503_v46, %v1344_v15  ;;  %v1518_v28 = vmul.f32 %v1503_v46, %v1345_v24 }
 0x419   :  { %v1342_v44 = vmax.f32 %v1334_v63, 0.0  ;;  %v1343_v36 = vmax.f32 %v1335_v41, 0.0 }
 0x41a   :  { %v1498_v51 = vpop.permute.xlu0 %1497  ;;  %v1525_v23 = vadd.f32 %v1679_v4, %v1517_v52  ;;  %v1526_v43 = vadd.f32 %v4789_v13, %v1518_v28 }
 0x41b   :  { %v1515_v25 = vmul.f32 %v1498_v51, %v1342_v44  ;;  %v1516_v27 = vmul.f32 %v1498_v51, %v1343_v36 }
 0x41c   :  { %1534 = vst [vmem:[#allocation2 + $0x50] sm:$0xff] %v1525_v23 }
 0x41d   :  { %1535 = vst [vmem:[#allocation2 + $0x58] sm:$0xff] %v1526_v43  ;;  %v1523_v40 = vadd.f32 %v1680_v19, %v1515_v25  ;;  %v1524_v59 = vadd.f32 %v4799_v12, %v1516_v27  ;;  %v1347_v12 = vmax.f32 %v1339_v8, 0.0 }
 0x41e   :  { %v1332_v0 = vpop.permute.xlu1 %1331 }
 0x41f   :  { %1532 = vst [vmem:[#allocation2 + $0x40] sm:$0xff] %v1523_v40  ;;  %v1340_v13 = vadd.f32 %v1332_v0, %v1308_v7  ;;  %v1341_v38 = vadd.f32 %v1332_v0, %v1309_v49 }
 0x420   :  { %1533 = vst [vmem:[#allocation2 + $0x48] sm:$0xff] %v1524_v59 }
 0x421   :  { %v1348_v10 = vmax.f32 %v1340_v13, 0.0  ;;  %v1349_v60 = vmax.f32 %v1341_v38, 0.0 }
 0x422   :  { %v1513_v35 = vpop.permute.xlu0 %1512 }
 0x423   :  { %v1521_v31 = vmul.f32 %v1513_v35, %v1348_v10  ;;  %v1522_v3 = vmul.f32 %v1513_v35, %v1349_v60 }
 0x425   :  { %v1529_v1 = vadd.f32 %v4817_v20, %v1521_v31  ;;  %v1530_v2 = vadd.f32 %v4818_v37, %v1522_v3 }
 0x426   :  { %v1508_v26 = vpop.permute.xlu1 %1507 }
 0x427   :  { %1538 = vst [vmem:[#allocation2 + $0x70] sm:$0xff] %v1529_v1  ;;  %v1519_v56 = vmul.f32 %v1508_v26, %v1346_v21  ;;  %v1520_v55 = vmul.f32 %v1508_v26, %v1347_v12 }
 0x428   :  { %1539 = vst [vmem:[#allocation2 + $0x78] sm:$0xff] %v1530_v2 }
 0x429   :  { %v1527_v9 = vadd.f32 %v4776_v32, %v1519_v56  ;;  %v1528_v57 = vadd.f32 %v4777_v47, %v1520_v55 }
 0x42b   :  { %1536 = vst [vmem:[#allocation2 + $0x60] sm:$0xff] %v1527_v9 }
 0x42c   :  { %1537 = vst [vmem:[#allocation2 + $0x68] sm:$0xff] %v1528_v57 }
 0x42d   :  { %1552 = dma.vmem_to_hbm [thread:$0]  %s1545_s11, 2048, %s1547_s30, [#allocation3], %s1717_s28, %s1717_s28, %s1708_s22  }
 0x42e   :  { %1705 = dma.done.wait [#allocation3], 2048  }
 0x42f   :  { %1706 = vsyncadd [#allocation3], 4294965248 }
 0x430   :  { %1557 = vsyncpa [#allocation3], 1 }

</bundles_post_ra>
